<compile_context>
chip_gen: v7x
topology: tpu7x:2x2x1
jax: 0.10.0
libtpu: 0.0.40
codegen_flags: <defaults>
</compile_context>

<pallas_src>
import functools

import jax
import jax.numpy as jnp
from jax.experimental import pallas as pl
from jax.experimental.pallas import tpu as pltpu

# Logical (PyTorch) dims and lane-aligned padded dims.
D_IN, D_H1, D_H2, D_HEAD, N_ACT = 845, 1500, 700, 200, 5
PD_IN, PD_H1, PD_H2, PD_HEAD = 896, 1536, 768, 256
PD_OUT = 128                     # lane-dense Q slab: cols [0:5] real, rest zero

VMEM_LIMIT = 32 * 1024 * 1024    # well under v7x's 64 MiB physical VMEM


def qnetwork_kernel(x_ref,
                    w1_ref, b1_ref,
                    w2_ref, b2_ref,
                    wh_ref, bh_ref,
                    wo_ref, bo_ref,
                    q_ref):
    """Whole network for one batch tile; everything resident in VMEM."""
    x = x_ref[...]                                                     # (B, 896) bf16

    h1 = jnp.maximum(
        jnp.dot(x, w1_ref[...], preferred_element_type=jnp.float32)
        + b1_ref[...], 0.0)                                            # (B, 1536)

    h2 = jnp.maximum(
        jnp.dot(h1.astype(jnp.bfloat16), w2_ref[...],
                preferred_element_type=jnp.float32)
        + b2_ref[...], 0.0)                                            # (B, 768)

    # Fused dueling heads: columns [0:256] = value branch, [256:512] = adv branch.
    hva = jnp.maximum(
        jnp.dot(h2.astype(jnp.bfloat16), wh_ref[...],
                preferred_element_type=jnp.float32)
        + bh_ref[...], 0.0)                                            # (B, 512)

    # Output layer with the dueling combine folded in (see pack_params):
    # cols [0:5] are Q values directly; cols [5:128] are zero padding.
    q_ref[...] = (jnp.dot(hva.astype(jnp.bfloat16), wo_ref[...],
                          preferred_element_type=jnp.float32)
                  + bo_ref[...])                                       # (B, 128)


@functools.partial(jax.jit, static_argnames=("batch_tile",))
def qnetwork_forward(state, packed, *, batch_tile=512):
    batch = state.shape[0]
    # Pad to lane-aligned width and cast to bf16 host-side (halves x DMA bytes).
    x = jnp.pad(state, ((0, 0), (0, PD_IN - D_IN))).astype(jnp.bfloat16)

    args = (x,
            packed["w1"], packed["b1"],
            packed["w2"], packed["b2"],
            packed["wh"], packed["bh"],
            packed["wo"], packed["bo"])

    n_tiles = -(-batch // batch_tile)
    batch_p = n_tiles * batch_tile

    weight_bytes = sum(int(v.size) * v.dtype.itemsize for v in packed.values())
    flops = 2 * batch_p * (PD_IN * PD_H1 + PD_H1 * PD_H2
                           + PD_H2 * 2 * PD_HEAD + 2 * PD_HEAD * PD_OUT)
    cost = pl.CostEstimate(
        flops=int(flops), transcendentals=0,
        bytes_accessed=int(weight_bytes
                           + batch_p * PD_IN * 2        # bf16 input tiles
                           + batch_p * PD_OUT * 4))     # f32 output slab

    if batch <= batch_tile:
        # Small batch: single invocation, whole arrays as VMEM blocks.
        vmem = pl.BlockSpec(memory_space=pltpu.MemorySpace.VMEM)
        q = pl.pallas_call(
            qnetwork_kernel,
            out_shape=jax.ShapeDtypeStruct((batch, PD_OUT), jnp.float32),
            in_specs=[vmem] * len(args),
            out_specs=vmem,
            compiler_params=pltpu.CompilerParams(
                vmem_limit_bytes=VMEM_LIMIT),
            cost_estimate=cost,
        )(*args)
        return q[:, :N_ACT]

    # Large batch: grid over row tiles.  Weights use constant index_maps so they
    # are DMA'd once and stay VMEM-resident; only x / q tiles stream.
    if batch_p != batch:
        x = jnp.pad(x, ((0, batch_p - batch), (0, 0)))
        args = (x,) + args[1:]

    def const_spec(arr):
        return pl.BlockSpec(arr.shape, lambda i: (0, 0))

    in_specs = [pl.BlockSpec((batch_tile, PD_IN), lambda i: (i, 0))] + \
               [const_spec(a) for a in args[1:]]
    out_specs = pl.BlockSpec((batch_tile, PD_OUT), lambda i: (i, 0))

    # Only split rows across v7x's two TensorCores when each core's compute
    # amortizes its own ~6 MiB weight fetch; otherwise keep a single fetch.
    semantics = ("parallel",) if n_tiles >= 4 else ("arbitrary",)

    q = pl.pallas_call(
        qnetwork_kernel,
        out_shape=jax.ShapeDtypeStruct((batch_p, PD_OUT), jnp.float32),
        grid=(n_tiles,),
        in_specs=in_specs,
        out_specs=out_specs,
        compiler_params=pltpu.CompilerParams(
            dimension_semantics=semantics,
            vmem_limit_bytes=VMEM_LIMIT),
        cost_estimate=cost,
    )(*args)
    return q[:batch, :N_ACT]


def init_params(key):
    """Deterministic init mimicking PyTorch nn.Linear default bounds.

    Weights are (in_features, out_features) so y = x @ W + b, identical to
    PyTorch's x @ W_pt.T + b with W_pt of shape (out, in).
    """
    def linear(k, fan_in, fan_out):
        kw, kb = jax.random.split(k)
        bound = 1.0 / jnp.sqrt(float(fan_in))
        w = jax.random.uniform(kw, (fan_in, fan_out), jnp.float32, -bound, bound)
        b = jax.random.uniform(kb, (1, fan_out), jnp.float32, -bound, bound)
        return w, b

    keys = jax.random.split(key, 6)
    w1, b1 = linear(keys[0], D_IN, D_H1)
    w2, b2 = linear(keys[1], D_H1, D_H2)
    wv, bv = linear(keys[2], D_H2, D_HEAD)
    wa, ba = linear(keys[3], D_H2, D_HEAD)
    wvo, bvo = linear(keys[4], D_HEAD, 1)
    wao, bao = linear(keys[5], D_HEAD, N_ACT)
    return dict(w1=w1, b1=b1, w2=w2, b2=b2, wv=wv, bv=bv, wa=wa, ba=ba,
                wvo=wvo, bvo=bvo, wao=wao, bao=bao)


def pack_params(p):
    """Zero-pad to lane-aligned dims, fuse the dueling heads, fold the dueling
    combine into the output layer, cast weights to bf16."""
    def pad2(a, rows, cols):
        return jnp.pad(a, ((0, rows - a.shape[0]), (0, cols - a.shape[1])))

    w1 = pad2(p["w1"], PD_IN, PD_H1).astype(jnp.bfloat16)
    b1 = pad2(p["b1"], 1, PD_H1)                                   # f32 bias
    w2 = pad2(p["w2"], PD_H1, PD_H2).astype(jnp.bfloat16)
    b2 = pad2(p["b2"], 1, PD_H2)

    # Fused value/adv hidden layer: columns [0:200] = wv, [256:456] = wa.
    wh = jnp.zeros((PD_H2, 2 * PD_HEAD), jnp.float32)
    wh = wh.at[:D_H2, :D_HEAD].set(p["wv"])
    wh = wh.at[:D_H2, PD_HEAD:PD_HEAD + D_HEAD].set(p["wa"])
    bh = jnp.zeros((1, 2 * PD_HEAD), jnp.float32)
    bh = bh.at[:, :D_HEAD].set(p["bv"])
    bh = bh.at[:, PD_HEAD:PD_HEAD + D_HEAD].set(p["ba"])

    # Output layer with the dueling combine folded in (exact algebra):
    #   Q[:, a] = hv @ wvo + bvo + ha @ (wao[:, a] - mean_b wao[:, b])
    #                            + bao[a] - mean_b bao[b]
    wao_c = p["wao"] - jnp.mean(p["wao"], axis=1, keepdims=True)   # (200, 5)
    bao_c = p["bao"] - jnp.mean(p["bao"], axis=1, keepdims=True)   # (1, 5)
    wo = jnp.zeros((2 * PD_HEAD, PD_OUT), jnp.float32)
    wo = wo.at[:D_HEAD, :N_ACT].set(jnp.broadcast_to(p["wvo"], (D_HEAD, N_ACT)))
    wo = wo.at[PD_HEAD:PD_HEAD + D_HEAD, :N_ACT].set(wao_c)
    bo = jnp.zeros((1, PD_OUT), jnp.float32)
    bo = bo.at[:, :N_ACT].set(p["bvo"] + bao_c)

    return dict(w1=w1, b1=b1, w2=w2, b2=b2,
                wh=wh.astype(jnp.bfloat16), bh=bh,
                wo=wo.astype(jnp.bfloat16), bo=bo)


def qnetwork_reference(state, p):
    """Pure-JAX f32 reference matching the PyTorch forward."""
    relu = lambda z: jnp.maximum(z, 0.0)
    h1 = relu(state @ p["w1"] + p["b1"])
    h2 = relu(h1 @ p["w2"] + p["b2"])
    hv = relu(h2 @ p["wv"] + p["bv"])
    ha = relu(h2 @ p["wa"] + p["ba"])
    value = hv @ p["wvo"] + p["bvo"]
    adv = ha @ p["wao"] + p["bao"]
    return value + adv - jnp.mean(adv, axis=1, keepdims=True)


if __name__ == "__main__":
    key = jax.random.PRNGKey(0)
    k_params, k_state, k_big = jax.random.split(key, 3)

    params = init_params(k_params)
    packed = pack_params(params)

    # Small batch (gridless, fully fused path).
    state = jax.random.uniform(k_state, (8, D_IN), jnp.float32)
    q = qnetwork_forward(state, packed)
    jax.block_until_ready(q)
    q_ref = qnetwork_reference(state, params)
    assert q.shape == (8, N_ACT)
    assert jnp.allclose(q, q_ref, rtol=2e-2, atol=2e-2), "small-batch mismatch"

    # Larger batch exercises the weight-resident, batch-tiled grid path.
    state_big = jax.random.uniform(k_big, (1024, D_IN), jnp.float32)
    q_big = qnetwork_forward(state_big, packed)
    jax.block_until_ready(q_big)
    q_big_ref = qnetwork_reference(state_big, params)
    assert q_big.shape == (1024, N_ACT)
    assert jnp.allclose(q_big, q_big_ref, rtol=2e-2, atol=2e-2), "tiled mismatch"

    print("KERNEL_OK")
</pallas_src>

<mosaic_0001>
module attributes {stable_mosaic.version = 11 : i64} {
  func.func @qnetwork_kernel(%arg0: memref<8x896xbf16, #tpu.memory_space<vmem>>, %arg1: memref<896x1536xbf16, #tpu.memory_space<vmem>>, %arg2: memref<1x1536xf32, #tpu.memory_space<vmem>>, %arg3: memref<1536x768xbf16, #tpu.memory_space<vmem>>, %arg4: memref<1x768xf32, #tpu.memory_space<vmem>>, %arg5: memref<768x512xbf16, #tpu.memory_space<vmem>>, %arg6: memref<1x512xf32, #tpu.memory_space<vmem>>, %arg7: memref<512x128xbf16, #tpu.memory_space<vmem>>, %arg8: memref<1x128xf32, #tpu.memory_space<vmem>>, %arg9: memref<8x128xf32, #tpu.memory_space<vmem>>) attributes {dimension_semantics = [], scalar_prefetch = 0 : i64, scratch_operands = 0 : i64, tpu.core_type = #tpu.core_type<tc>} {
    %c0 = arith.constant 0 : index
    %c0_0 = arith.constant 0 : index
    %0 = vector.load %arg0[%c0, %c0_0] : memref<8x896xbf16, #tpu.memory_space<vmem>>, vector<8x896xbf16>
    %c0_1 = arith.constant 0 : index
    %c0_2 = arith.constant 0 : index
    %1 = vector.load %arg1[%c0_1, %c0_2] : memref<896x1536xbf16, #tpu.memory_space<vmem>>, vector<896x1536xbf16>
    %cst = arith.constant dense<0.000000e+00> : vector<8x1536xf32>
    %2 = tpu.matmul %0, %1, %cst {dimension_numbers = #tpu.dot_dimension_numbers<[1], [0], [0], [1], [0, 0, 1, 1], [], []>} : vector<8x896xbf16>, vector<896x1536xbf16>, vector<8x1536xf32> -> vector<8x1536xf32>
    %c0_3 = arith.constant 0 : index
    %c0_4 = arith.constant 0 : index
    %3 = vector.load %arg2[%c0_3, %c0_4] : memref<1x1536xf32, #tpu.memory_space<vmem>>, vector<1x1536xf32>
    %4 = vector.broadcast %3 : vector<1x1536xf32> to vector<8x1536xf32>
    %5 = arith.addf %2, %4 : vector<8x1536xf32>
    %cst_5 = arith.constant 0.000000e+00 : f32
    %6 = vector.broadcast %cst_5 : f32 to vector<8x1536xf32>
    %7 = arith.maximumf %5, %6 : vector<8x1536xf32>
    %8 = arith.truncf %7 : vector<8x1536xf32> to vector<8x1536xbf16>
    %c0_6 = arith.constant 0 : index
    %c0_7 = arith.constant 0 : index
    %9 = vector.load %arg3[%c0_6, %c0_7] : memref<1536x768xbf16, #tpu.memory_space<vmem>>, vector<1536x768xbf16>
    %cst_8 = arith.constant dense<0.000000e+00> : vector<8x768xf32>
    %10 = tpu.matmul %8, %9, %cst_8 {dimension_numbers = #tpu.dot_dimension_numbers<[1], [0], [0], [1], [0, 0, 1, 1], [], []>} : vector<8x1536xbf16>, vector<1536x768xbf16>, vector<8x768xf32> -> vector<8x768xf32>
    %c0_9 = arith.constant 0 : index
    %c0_10 = arith.constant 0 : index
    %11 = vector.load %arg4[%c0_9, %c0_10] : memref<1x768xf32, #tpu.memory_space<vmem>>, vector<1x768xf32>
    %12 = vector.broadcast %11 : vector<1x768xf32> to vector<8x768xf32>
    %13 = arith.addf %10, %12 : vector<8x768xf32>
    %cst_11 = arith.constant 0.000000e+00 : f32
    %14 = vector.broadcast %cst_11 : f32 to vector<8x768xf32>
    %15 = arith.maximumf %13, %14 : vector<8x768xf32>
    %16 = arith.truncf %15 : vector<8x768xf32> to vector<8x768xbf16>
    %c0_12 = arith.constant 0 : index
    %c0_13 = arith.constant 0 : index
    %17 = vector.load %arg5[%c0_12, %c0_13] : memref<768x512xbf16, #tpu.memory_space<vmem>>, vector<768x512xbf16>
    %cst_14 = arith.constant dense<0.000000e+00> : vector<8x512xf32>
    %18 = tpu.matmul %16, %17, %cst_14 {dimension_numbers = #tpu.dot_dimension_numbers<[1], [0], [0], [1], [0, 0, 1, 1], [], []>} : vector<8x768xbf16>, vector<768x512xbf16>, vector<8x512xf32> -> vector<8x512xf32>
    %c0_15 = arith.constant 0 : index
    %c0_16 = arith.constant 0 : index
    %19 = vector.load %arg6[%c0_15, %c0_16] : memref<1x512xf32, #tpu.memory_space<vmem>>, vector<1x512xf32>
    %20 = vector.broadcast %19 : vector<1x512xf32> to vector<8x512xf32>
    %21 = arith.addf %18, %20 : vector<8x512xf32>
    %cst_17 = arith.constant 0.000000e+00 : f32
    %22 = vector.broadcast %cst_17 : f32 to vector<8x512xf32>
    %23 = arith.maximumf %21, %22 : vector<8x512xf32>
    %24 = arith.truncf %23 : vector<8x512xf32> to vector<8x512xbf16>
    %c0_18 = arith.constant 0 : index
    %c0_19 = arith.constant 0 : index
    %25 = vector.load %arg7[%c0_18, %c0_19] : memref<512x128xbf16, #tpu.memory_space<vmem>>, vector<512x128xbf16>
    %cst_20 = arith.constant dense<0.000000e+00> : vector<8x128xf32>
    %26 = tpu.matmul %24, %25, %cst_20 {dimension_numbers = #tpu.dot_dimension_numbers<[1], [0], [0], [1], [0, 0, 1, 1], [], []>} : vector<8x512xbf16>, vector<512x128xbf16>, vector<8x128xf32> -> vector<8x128xf32>
    %c0_21 = arith.constant 0 : index
    %c0_22 = arith.constant 0 : index
    %27 = vector.load %arg8[%c0_21, %c0_22] : memref<1x128xf32, #tpu.memory_space<vmem>>, vector<1x128xf32>
    %28 = vector.broadcast %27 : vector<1x128xf32> to vector<8x128xf32>
    %29 = arith.addf %26, %28 : vector<8x128xf32>
    %c0_23 = arith.constant 0 : index
    %c0_24 = arith.constant 0 : index
    %30 = vector.load %arg9[%c0_23, %c0_24] : memref<8x128xf32, #tpu.memory_space<vmem>>, vector<8x128xf32>
    tpu.vector_store %arg9[%c0_23, %c0_24], %29 {strides = array<i32>} : memref<8x128xf32, #tpu.memory_space<vmem>>, vector<8x128xf32>,
    return
  }
}

</mosaic_0001>

<bundles_post_ra>
// kernel: qnetwork_forward.1
= control target key start
LH: loop header
LB: loop body
LE: loop exit
PB: predicated region body
PF: predicated region fallthrough
CT: control target
= control target key end

     0   :  { %14 = vsyncpa [#allocation3], 0  ;;  %s15879_s0 = inlined_call_operand.vmem [shape: bf16[8,896], index: 0, kind: input, shape index: {}]   ;;  %s15880_s1 = inlined_call_operand.hbm [shape: bf16[896,1536], index: 1, kind: input, shape index: {}]   ;;  %s15881_s2 = inlined_call_operand.hbm [shape: f32[1,1536], index: 2, kind: input, shape index: {}]   ;;  %s15882_s3 = inlined_call_operand.hbm [shape: bf16[1536,768], index: 3, kind: input, shape index: {}]   ;;  %s15883_s4 = inlined_call_operand.hbm [shape: f32[1,768], index: 4, kind: input, shape index: {}]   ;;  %s15884_s5 = inlined_call_operand.hbm [shape: bf16[768,512], index: 5, kind: input, shape index: {}]   ;;  %s15885_s6 = inlined_call_operand.hbm [shape: f32[1,512], index: 6, kind: input, shape index: {}]   ;;  %s15886_s7 = inlined_call_operand.hbm [shape: bf16[512,128], index: 7, kind: input, shape index: {}]   ;;  %s15887_s8 = inlined_call_operand.hbm [shape: f32[1,128], index: 8, kind: input, shape index: {}]   ;;  %s15888_s9 = inlined_call_operand.hbm [shape: f32[8,128], index: 9, kind: output, shape index: {}]  }
   0x1   :  { %15 = vsyncpa [#allocation6], 0 }
   0x2   :  { %16 = vsyncpa [#allocation9], 0 }
   0x3   :  { %17 = vsyncpa [#allocation12], 0 }
   0x4   :  { %18 = vsyncpa [#allocation15], 0 }
   0x5   :  { %19 = vsyncpa [#allocation4], 0  ;;  %s15421_s30 = smov [#allocation5]   ;;  %s15422_s11 = smov [#allocation8]  }
   0x6   :  { %s40_s10 = sshll.u32 %s15421_s30, 4  ;;  %s62_s12 = sshll.u32 %s15422_s11, 4  ;;  %s41_s10 = int_to_ptr.vmem [resolvable:$true] %s40_s10  ;;  %s63_s12 = int_to_ptr.vmem [resolvable:$true] %s62_s12 }
   0x7   :  { %s15211_s15 = scalar_lea.hbm %s15881_s2, 192 }
   0x8   :  { %p15212_p0 = scmp.ne.s32.totalorder %s15881_s2, %s15211_s15  ;;  %p15215_p1 = scmp.lt.u32.totalorder %s15211_s15, %s15881_s2 }
   0xa   :  { %p15217_p2 = pnand %p15215_p1, %p15212_p0 }
   0xc   :  { %15220 = shalt.err (!%p15217_p2)
}
   0xd   :  { %s15221_s20 = scalar_lea.vmem %s41_s10, 192  ;;  %p15226_p4 = scmp.lt.s32.totalorder %s41_s10, %s41_s10 }
   0xe   :  { %p15222_p3 = scmp.ne.s32.totalorder %s41_s10, %s15221_s20  ;;  %p15227_p5 = scmp.lt.s32.totalorder %s15221_s20, %s15221_s20 }
  0x10   :  { %p15228_p6 = por %p15227_p5, %p15226_p4 }
  0x12   :  { %p15229_p7 = pnand %p15228_p6, %p15222_p3 }
  0x14   :  { %15232 = shalt.err (!%p15229_p7)
}
  0x15   :  { %43 = dma.hbm_to_vmem [thread:$0]  %s15881_s2, 192, %s41_s10, [#allocation6]  }
  0x16   :  { %s15233_s25 = scalar_lea.hbm %s15883_s4, 96 }
  0x17   :  { %p15234_p8 = scmp.ne.s32.totalorder %s15883_s4, %s15233_s25  ;;  %p15237_p9 = scmp.lt.u32.totalorder %s15233_s25, %s15883_s4 }
  0x19   :  { %p15239_p10 = pnand %p15237_p9, %p15234_p8 }
  0x1b   :  { %15242 = shalt.err (!%p15239_p10)
}
  0x1c   :  { %s15243_s30 = scalar_lea.vmem %s63_s12, 96  ;;  %p15248_p12 = scmp.lt.s32.totalorder %s63_s12, %s63_s12 }
  0x1d   :  { %p15244_p11 = scmp.ne.s32.totalorder %s63_s12, %s15243_s30  ;;  %p15249_p13 = scmp.lt.s32.totalorder %s15243_s30, %s15243_s30 }
  0x1f   :  { %p15250_p0 = por %p15249_p13, %p15248_p12 }
  0x21   :  { %p15251_p1 = pnand %p15250_p0, %p15244_p11 }
  0x23   :  { %15254 = shalt.err (!%p15251_p1)
}
  0x24   :  { %65 = dma.hbm_to_vmem [thread:$0]  %s15883_s4, 96, %s63_s12, [#allocation9]  }
  0x25   :  { %s15423_s11 = smov [#allocation11]   ;;  %s15424_s14 = smov [#allocation2]  }
  0x26   :  { %s84_s13 = sshll.u32 %s15423_s11, 4  ;;  %s27_s15 = sshll.u32 %s15424_s14, 4  ;;  %s85_s13 = int_to_ptr.vmem [resolvable:$true] %s84_s13  ;;  %s15513_s15 = int_to_ptr.vmem [resolvable:$true] %s27_s15 }
  0x27   :  { %s15255_s18 = scalar_lea.hbm %s15885_s6, 64 }
  0x28   :  { %p15256_p2 = scmp.ne.s32.totalorder %s15885_s6, %s15255_s18  ;;  %p15259_p3 = scmp.lt.u32.totalorder %s15255_s18, %s15885_s6 }
  0x2a   :  { %p15261_p4 = pnand %p15259_p3, %p15256_p2 }
  0x2c   :  { %15264 = shalt.err (!%p15261_p4)
}
  0x2d   :  { %s15265_s4 = scalar_lea.vmem %s85_s13, 64  ;;  %p15270_p6 = scmp.lt.s32.totalorder %s85_s13, %s85_s13 }
  0x2e   :  { %p15266_p5 = scmp.ne.s32.totalorder %s85_s13, %s15265_s4  ;;  %p15271_p7 = scmp.lt.s32.totalorder %s15265_s4, %s15265_s4 }
  0x30   :  { %p15272_p8 = por %p15271_p7, %p15270_p6 }
  0x32   :  { %p15273_p9 = pnand %p15272_p8, %p15266_p5 }
  0x34   :  { %15276 = shalt.err (!%p15273_p9)
}
  0x35   :  { %87 = dma.hbm_to_vmem [thread:$0]  %s15885_s6, 64, %s85_s13, [#allocation12]  }
  0x36   :  { %s15277_s26 = scalar_lea.hbm %s15880_s1, 86016 }
  0x37   :  { %p15278_p10 = scmp.ne.s32.totalorder %s15880_s1, %s15277_s26  ;;  %p15281_p11 = scmp.lt.u32.totalorder %s15277_s26, %s15880_s1 }
  0x39   :  { %p15283_p12 = pnand %p15281_p11, %p15278_p10 }
  0x3b   :  { %15286 = shalt.err (!%p15283_p12)
}
  0x3c   :  { %s15287_s2 = scalar_lea.vmem %s15513_s15, 86016  ;;  %p15292_p0 = scmp.lt.s32.totalorder %s15513_s15, %s15513_s15 }
  0x3d   :  { %p15288_p13 = scmp.ne.s32.totalorder %s15513_s15, %s15287_s2  ;;  %p15293_p1 = scmp.lt.s32.totalorder %s15287_s2, %s15287_s2 }
  0x3f   :  { %p15294_p2 = por %p15293_p1, %p15292_p0 }
  0x41   :  { %p15295_p3 = pnand %p15294_p2, %p15288_p13 }
  0x43   :  { %15298 = shalt.err (!%p15295_p3)
}
  0x44   :  { %s15425_s6 = smov 768   ;;  %s15426_s10 = smov 48  }
  0x45   :  { %33 = dma.hbm_to_vmem [thread:$0]  %s15880_s1, 86016, %s15513_s15, [#allocation3], %s15425_s6, %s15425_s6, %s15426_s10  }
  0x46   :  { %s15427_s14 = smov [#allocation7]   ;;  %s15299_s19 = scalar_lea.hbm %s15882_s3, 73728 }
  0x47   :  { %s49_s16 = sshll.u32 %s15427_s14, 4  ;;  %p15300_p4 = scmp.ne.s32.totalorder %s15882_s3, %s15299_s19  ;;  %s50_s16 = int_to_ptr.vmem [resolvable:$true] %s49_s16 }
  0x48   :  { %p15303_p5 = scmp.lt.u32.totalorder %s15299_s19, %s15882_s3 }
  0x4a   :  { %p15305_p6 = pnand %p15303_p5, %p15300_p4 }
  0x4c   :  { %15308 = shalt.err (!%p15305_p6)
}
  0x4d   :  { %s15309_s12 = scalar_lea.vmem %s50_s16, 73728  ;;  %p15314_p8 = scmp.lt.s32.totalorder %s50_s16, %s50_s16 }
  0x4e   :  { %p15310_p7 = scmp.ne.s32.totalorder %s50_s16, %s15309_s12  ;;  %p15315_p9 = scmp.lt.s32.totalorder %s15309_s12, %s15309_s12 }
  0x50   :  { %p15316_p10 = por %p15315_p9, %p15314_p8 }
  0x52   :  { %p15317_p11 = pnand %p15316_p10, %p15310_p7 }
  0x54   :  { %15320 = shalt.err (!%p15317_p11)
}
  0x55   :  { %s15428_s1 = smov 384   ;;  %s15429_s15 = smov 24  }
  0x56   :  { %55 = dma.hbm_to_vmem [thread:$0]  %s15882_s3, 73728, %s50_s16, [#allocation6], %s15428_s1, %s15428_s1, %s15429_s15  }
  0x57   :  { %s15430_s25 = smov [#allocation10]   ;;  %s15321_s29 = scalar_lea.hbm %s15884_s5, 24576 }
  0x58   :  { %s71_s26 = sshll.u32 %s15430_s25, 4  ;;  %p15322_p12 = scmp.ne.s32.totalorder %s15884_s5, %s15321_s29  ;;  %s72_s26 = int_to_ptr.vmem [resolvable:$true] %s71_s26 }
  0x59   :  { %p15325_p13 = scmp.lt.u32.totalorder %s15321_s29, %s15884_s5 }
  0x5b   :  { %p15327_p0 = pnand %p15325_p13, %p15322_p12 }
  0x5d   :  { %15330 = shalt.err (!%p15327_p0)
}
  0x5e   :  { %s15331_s11 = scalar_lea.vmem %s72_s26, 24576  ;;  %p15336_p2 = scmp.lt.s32.totalorder %s72_s26, %s72_s26 }
  0x5f   :  { %p15332_p1 = scmp.ne.s32.totalorder %s72_s26, %s15331_s11  ;;  %p15337_p3 = scmp.lt.s32.totalorder %s15331_s11, %s15331_s11 }
  0x61   :  { %p15338_p4 = por %p15337_p3, %p15336_p2 }
  0x63   :  { %p15339_p5 = pnand %p15338_p4, %p15332_p1 }
  0x65   :  { %15342 = shalt.err (!%p15339_p5)
}
  0x66   :  { %s15431_s3 = smov 256   ;;  %s15432_s13 = smov 16  }
  0x67   :  { %77 = dma.hbm_to_vmem [thread:$0]  %s15884_s5, 24576, %s72_s26, [#allocation9], %s15431_s3, %s15431_s3, %s15432_s13  }
  0x68   :  { %s15433_s17 = smov [#allocation13]   ;;  %s15343_s21 = scalar_lea.hbm %s15886_s7, 4096 }
  0x69   :  { %s93_s18 = sshll.u32 %s15433_s17, 4  ;;  %p15344_p6 = scmp.ne.s32.totalorder %s15886_s7, %s15343_s21  ;;  %s94_s18 = int_to_ptr.vmem [resolvable:$true] %s93_s18 }
  0x6a   :  { %p15347_p7 = scmp.lt.u32.totalorder %s15343_s21, %s15886_s7 }
  0x6c   :  { %p15349_p8 = pnand %p15347_p7, %p15344_p6 }
  0x6e   :  { %15352 = shalt.err (!%p15349_p8)
}
  0x6f   :  { %s15353_s15 = scalar_lea.vmem %s94_s18, 4096  ;;  %p15358_p10 = scmp.lt.s32.totalorder %s94_s18, %s94_s18 }
  0x70   :  { %p15354_p9 = scmp.ne.s32.totalorder %s94_s18, %s15353_s15  ;;  %p15359_p11 = scmp.lt.s32.totalorder %s15353_s15, %s15353_s15 }
  0x72   :  { %p15360_p12 = por %p15359_p11, %p15358_p10 }
  0x74   :  { %p15361_p13 = pnand %p15360_p12, %p15354_p9 }
  0x76   :  { %15364 = shalt.err (!%p15361_p13)
}
  0x77   :  { %s15434_s5 = smov 64   ;;  %s15435_s23 = smov 4  }
  0x78   :  { %99 = dma.hbm_to_vmem [thread:$0]  %s15886_s7, 4096, %s94_s18, [#allocation12], %s15434_s5, %s15434_s5, %s15435_s23  }
  0x79   :  { %s15436_s26 = smov [#allocation14]   ;;  %s15365_s30 = scalar_lea.hbm %s15887_s8, 16 }
  0x7a   :  { %s106_s27 = sshll.u32 %s15436_s26, 4  ;;  %p15366_p0 = scmp.ne.s32.totalorder %s15887_s8, %s15365_s30  ;;  %s107_s27 = int_to_ptr.vmem [resolvable:$true] %s106_s27 }
  0x7b   :  { %p15369_p1 = scmp.lt.u32.totalorder %s15365_s30, %s15887_s8 }
  0x7d   :  { %p15371_p2 = pnand %p15369_p1, %p15366_p0 }
  0x7f   :  { %15374 = shalt.err (!%p15371_p2)
}
  0x80   :  { %s15375_s3 = scalar_lea.vmem %s107_s27, 16  ;;  %s15379_s7 = scalar_lea.vmem %s107_s27, 32 }
  0x81   :  { %p15376_p3 = scmp.ne.s32.totalorder %s107_s27, %s15375_s3  ;;  %p15380_p4 = scmp.lt.s32.totalorder %s107_s27, %s107_s27 }
  0x82   :  { %p15381_p5 = scmp.lt.s32.totalorder %s15379_s7, %s15375_s3 }
  0x84   :  { %p15382_p6 = por %p15381_p5, %p15380_p4 }
  0x86   :  { %p15383_p7 = pnand %p15382_p6, %p15376_p3 }
  0x88   :  { %15386 = shalt.err (!%p15383_p7)
}
  0x89   :  { %109 = dma.hbm_to_vmem [thread:$0]  %s15887_s8, 16, %s107_s27, [#allocation15]  }
  0x8a   :  { %15409 = dma.done.wait [#allocation3], 86016  }
  0x8b   :  { %15410 = vsyncadd [#allocation3], 4294881280 }
  0x8c   :  { %15411 = dma.done.wait [#allocation6], 73920  }
  0x8d   :  { %15412 = vsyncadd [#allocation6], 4294893376 }
  0x8e   :  { %15413 = dma.done.wait [#allocation9], 24672  }
  0x8f   :  { %15414 = vsyncadd [#allocation9], 4294942624 }
  0x90   :  { %15415 = dma.done.wait [#allocation12], 4160  }
  0x91   :  { %15416 = vsyncadd [#allocation12], 4294963136 }
  0x92   :  { %15417 = dma.done.wait [#allocation15], 16  }
  0x93   :  { %15418 = vsyncadd [#allocation15], 4294967280  ;;  %v13009_v0 = vld [vmem:[#allocation2 + $0x4] ss:$48 sps:$4 sm:$0xff]   ;;  %v13011_v1 = vld [vmem:[#allocation2 + $0xc] ss:$48 sps:$4 sm:$0xff]  }
  0x94   :  { %4260 = vmatprep.subr.bf16.mxu0 %v13009_v0  ;;  %v13013_v2 = vld [vmem:[#allocation2] ss:$48 sps:$4 sm:$0xff]   ;;  %v13014_v3 = vld [vmem:[#allocation2 + $0x8] ss:$48 sps:$4 sm:$0xff]   ;;  %4424 = vmatprep.subr.bf16.mxu1 %v13011_v1  ;;  %v13015_v4 = vld [vmem:[#allocation2 + $0x64] ss:$48 sps:$4 sm:$0xff]  }
  0x95   :  { %4261 = vmatpush1.bf16.msra.mxu0 %v13013_v2  ;;  %4425 = vmatpush1.bf16.msra.mxu1 %v13014_v3  ;;  %v13017_v5 = vld [vmem:[#allocation2 + $0x6c] ss:$48 sps:$4 sm:$0xff]   ;;  %v13019_v6 = vld [vmem:[#allocation2 + $0x60] ss:$48 sps:$4 sm:$0xff]   ;;  %v13020_v7 = vld [vmem:[#allocation2 + $0x68] ss:$48 sps:$4 sm:$0xff]  }
  0x96   :  { %4262 = vmatprep.subr.bf16.mxu0 %v13015_v4  ;;  %4426 = vmatprep.subr.bf16.mxu1 %v13017_v5  ;;  %v13021_v8 = vld [vmem:[#allocation2 + $0xc4] ss:$48 sps:$4 sm:$0xff]   ;;  %v13023_v9 = vld [vmem:[#allocation2 + $0xcc] ss:$48 sps:$4 sm:$0xff]   ;;  %v13025_v10 = vld [vmem:[#allocation2 + $0xc0] ss:$48 sps:$4 sm:$0xff]  }
  0x97   :  { %v13026_v11 = vld [vmem:[#allocation2 + $0xc8] ss:$48 sps:$4 sm:$0xff]   ;;  %v13027_v12 = vld [vmem:[#allocation2 + $0x124] ss:$48 sps:$4 sm:$0xff]   ;;  %v13029_v13 = vld [vmem:[#allocation2 + $0x12c] ss:$48 sps:$4 sm:$0xff]  }
  0x98   :  { %v13031_v14 = vld [vmem:[#allocation2 + $0x120] ss:$48 sps:$4 sm:$0xff]   ;;  %v13032_v15 = vld [vmem:[#allocation2 + $0x128] ss:$48 sps:$4 sm:$0xff]   ;;  %v13033_v16 = vld [vmem:[#allocation2 + $0x184] ss:$48 sps:$4 sm:$0xff]  }
  0x99   :  { %4263 = vmatpush1.bf16.msra.mxu0 %v13019_v6  ;;  %4427 = vmatpush1.bf16.msra.mxu1 %v13020_v7  ;;  %v13035_v17 = vld [vmem:[#allocation2 + $0x18c] ss:$48 sps:$4 sm:$0xff]   ;;  %v13037_v18 = vld [vmem:[#allocation2 + $0x180] ss:$48 sps:$4 sm:$0xff]   ;;  %v13038_v19 = vld [vmem:[#allocation2 + $0x188] ss:$48 sps:$4 sm:$0xff]  }
  0x9a   :  { %4264 = vmatprep.subr.bf16.mxu0 %v13021_v8  ;;  %4428 = vmatprep.subr.bf16.mxu1 %v13023_v9  ;;  %v13039_v20 = vld [vmem:[#allocation2 + $0x1e4] ss:$48 sps:$4 sm:$0xff]   ;;  %v13041_v21 = vld [vmem:[#allocation2 + $0x1ec] ss:$48 sps:$4 sm:$0xff]   ;;  %v13043_v22 = vld [vmem:[#allocation2 + $0x1e0] ss:$48 sps:$4 sm:$0xff]  }
  0x9b   :  { %v13044_v23 = vld [vmem:[#allocation2 + $0x1e8] ss:$48 sps:$4 sm:$0xff]   ;;  %v13045_v24 = vld [vmem:[#allocation2 + $0x244] ss:$48 sps:$4 sm:$0xff]   ;;  %v13047_v25 = vld [vmem:[#allocation2 + $0x24c] ss:$48 sps:$4 sm:$0xff]  }
  0x9c   :  { %v13049_v26 = vld [vmem:[#allocation2 + $0x240] ss:$48 sps:$4 sm:$0xff]   ;;  %v13050_v27 = vld [vmem:[#allocation2 + $0x248] ss:$48 sps:$4 sm:$0xff]   ;;  %v13051_v28 = vld [vmem:[#allocation2 + $0x2a4] ss:$48 sps:$4 sm:$0xff]  }
  0x9d   :  { %4265 = vmatpush1.bf16.msra.mxu0 %v13025_v10  ;;  %4429 = vmatpush1.bf16.msra.mxu1 %v13026_v11  ;;  %v13053_v29 = vld [vmem:[#allocation2 + $0x2ac] ss:$48 sps:$4 sm:$0xff]   ;;  %v13055_v30 = vld [vmem:[#allocation2 + $0x2a0] ss:$48 sps:$4 sm:$0xff]   ;;  %v13056_v31 = vld [vmem:[#allocation2 + $0x2a8] ss:$48 sps:$4 sm:$0xff]  }
  0x9e   :  { %4266 = vmatprep.subr.bf16.mxu0 %v13027_v12  ;;  %4430 = vmatprep.subr.bf16.mxu1 %v13029_v13  ;;  %v13057_v32 = vld [vmem:[#allocation2 + $0x304] ss:$48 sps:$4 sm:$0xff]   ;;  %v13059_v33 = vld [vmem:[#allocation2 + $0x30c] ss:$48 sps:$4 sm:$0xff]   ;;  %v13061_v34 = vld [vmem:[#allocation2 + $0x300] ss:$48 sps:$4 sm:$0xff]  }
  0x9f   :  { %v13062_v35 = vld [vmem:[#allocation2 + $0x308] ss:$48 sps:$4 sm:$0xff]   ;;  %v13063_v36 = vld [vmem:[#allocation2 + $0x364] ss:$48 sps:$4 sm:$0xff]   ;;  %v13065_v37 = vld [vmem:[#allocation2 + $0x36c] ss:$48 sps:$4 sm:$0xff]  }
  0xa0   :  { %v13067_v38 = vld [vmem:[#allocation2 + $0x360] ss:$48 sps:$4 sm:$0xff]   ;;  %v13068_v39 = vld [vmem:[#allocation2 + $0x368] ss:$48 sps:$4 sm:$0xff]   ;;  %v13069_v40 = vld [vmem:[#allocation2 + $0x3c4] ss:$48 sps:$4 sm:$0xff]  }
  0xa1   :  { %4267 = vmatpush1.bf16.msra.mxu0 %v13031_v14  ;;  %4431 = vmatpush1.bf16.msra.mxu1 %v13032_v15  ;;  %v13071_v41 = vld [vmem:[#allocation2 + $0x3cc] ss:$48 sps:$4 sm:$0xff]   ;;  %v13073_v42 = vld [vmem:[#allocation2 + $0x3c0] ss:$48 sps:$4 sm:$0xff]   ;;  %v13074_v43 = vld [vmem:[#allocation2 + $0x3c8] ss:$48 sps:$4 sm:$0xff]  }
  0xa2   :  { %4268 = vmatprep.subr.bf16.mxu0 %v13033_v16  ;;  %4432 = vmatprep.subr.bf16.mxu1 %v13035_v17  ;;  %v13075_v44 = vld [vmem:[#allocation2 + $0x424] ss:$48 sps:$4 sm:$0xff]   ;;  %v13077_v45 = vld [vmem:[#allocation2 + $0x42c] ss:$48 sps:$4 sm:$0xff]   ;;  %v13079_v47 = vld [vmem:[#allocation2 + $0x420] ss:$48 sps:$4 sm:$0xff]  }
  0xa3   :  { %v135_v46 = vld [vmem:[%s15879_s0] sm:$0xff]  ;;  %v13080_v49 = vld [vmem:[#allocation2 + $0x428] ss:$48 sps:$4 sm:$0xff]   ;;  %v13083_v51 = vld [vmem:[#allocation2 + $0x48c] ss:$48 sps:$4 sm:$0xff]  }
  0xa4   :  { %v15595_v48 = vcombine.high %v135_v46, %v135_v46  ;;  %v13081_v50 = vld [vmem:[#allocation2 + $0x484] ss:$48 sps:$4 sm:$0xff]   ;;  %v13085_v52 = vld [vmem:[#allocation2 + $0x480] ss:$48 sps:$4 sm:$0xff]   ;;  %v13086_v53 = vld [vmem:[#allocation2 + $0x488] ss:$48 sps:$4 sm:$0xff]   ;;  %v15599_v5 = vcombine.low %v135_v46, %v135_v46 }
  0xa5   :  { %4269 = vmatpush1.bf16.msra.mxu0 %v13037_v18  ;;  %4433 = vmatpush1.bf16.msra.mxu1 %v13038_v19  ;;  %v13087_v54 = vld [vmem:[#allocation2 + $0x4e4] ss:$48 sps:$4 sm:$0xff]   ;;  %v13089_v55 = vld [vmem:[#allocation2 + $0x4ec] ss:$48 sps:$4 sm:$0xff]   ;;  %v13091_v56 = vld [vmem:[#allocation2 + $0x4e0] ss:$48 sps:$4 sm:$0xff]  }
  0xa6   :  { %4270 = vmatprep.subr.bf16.mxu0 %v13039_v20  ;;  %4434 = vmatprep.subr.bf16.mxu1 %v13041_v21  ;;  %v13092_v57 = vld [vmem:[#allocation2 + $0x4e8] ss:$48 sps:$4 sm:$0xff]   ;;  %v13093_v58 = vld [vmem:[#allocation2 + $0x544] ss:$48 sps:$4 sm:$0xff]   ;;  %v13095_v59 = vld [vmem:[#allocation2 + $0x54c] ss:$48 sps:$4 sm:$0xff]  }
  0xa7   :  { %4292 = vmatprep.mubr.bf16.mxu0 %v15595_v48  ;;  %4456 = vmatprep.mubr.bf16.mxu1 %v15595_v48  ;;  %v13097_v60 = vld [vmem:[#allocation2 + $0x540] ss:$48 sps:$4 sm:$0xff]   ;;  %v13098_v61 = vld [vmem:[#allocation2 + $0x548] ss:$48 sps:$4 sm:$0xff]   ;;  %v13099_v62 = vld [vmem:[#allocation2 + $0x5a4] ss:$48 sps:$4 sm:$0xff]  }
  0xa8   :  { %v13101_v63 = vld [vmem:[#allocation2 + $0x5ac] ss:$48 sps:$4 sm:$0xff]   ;;  %v13103_v0 = vld [vmem:[#allocation2 + $0x5a0] ss:$48 sps:$4 sm:$0xff]   ;;  %v13104_v1 = vld [vmem:[#allocation2 + $0x5a8] ss:$48 sps:$4 sm:$0xff]  }
  0xa9   :  { %4271 = vmatpush1.bf16.msra.mxu0 %v13043_v22  ;;  %4435 = vmatpush1.bf16.msra.mxu1 %v13044_v23  ;;  %v13108_v2 = vld [vmem:[#allocation2 + $0x604] ss:$48 sps:$4 sm:$0xff]   ;;  %v13111_v3 = vld [vmem:[#allocation2 + $0x60c] ss:$48 sps:$4 sm:$0xff]   ;;  %v13106_v4 = vld [vmem:[#allocation2 + $0x600] ss:$48 sps:$4 sm:$0xff]  }
  0xaa   :  { %4272 = vmatprep.subr.bf16.mxu0 %v13045_v24  ;;  %4436 = vmatprep.subr.bf16.mxu1 %v13047_v25  ;;  %v13109_v6 = vld [vmem:[#allocation2 + $0x608] ss:$48 sps:$4 sm:$0xff]   ;;  %v13115_v7 = vld [vmem:[#allocation2 + $0x664] ss:$48 sps:$4 sm:$0xff]   ;;  %v13118_v8 = vld [vmem:[#allocation2 + $0x66c] ss:$48 sps:$4 sm:$0xff]  }
  0xab   :  { %v13113_v9 = vld [vmem:[#allocation2 + $0x660] ss:$48 sps:$4 sm:$0xff]   ;;  %v13116_v10 = vld [vmem:[#allocation2 + $0x668] ss:$48 sps:$4 sm:$0xff]   ;;  %v13121_v11 = vld [vmem:[#allocation2 + $0x6c4] ss:$48 sps:$4 sm:$0xff]  }
  0xac   :  { %v13124_v12 = vld [vmem:[#allocation2 + $0x6cc] ss:$48 sps:$4 sm:$0xff]   ;;  %v13119_v13 = vld [vmem:[#allocation2 + $0x6c0] ss:$48 sps:$4 sm:$0xff]   ;;  %v13122_v14 = vld [vmem:[#allocation2 + $0x6c8] ss:$48 sps:$4 sm:$0xff]  }
  0xad   :  { %4273 = vmatpush1.bf16.msra.mxu0 %v13049_v26  ;;  %4437 = vmatpush1.bf16.msra.mxu1 %v13050_v27  ;;  %v13127_v15 = vld [vmem:[#allocation2 + $0x724] ss:$48 sps:$4 sm:$0xff]   ;;  %v13130_v16 = vld [vmem:[#allocation2 + $0x72c] ss:$48 sps:$4 sm:$0xff]   ;;  %v13125_v17 = vld [vmem:[#allocation2 + $0x720] ss:$48 sps:$4 sm:$0xff]  }
  0xae   :  { %4274 = vmatprep.subr.bf16.mxu0 %v13051_v28  ;;  %4438 = vmatprep.subr.bf16.mxu1 %v13053_v29  ;;  %v13128_v18 = vld [vmem:[#allocation2 + $0x728] ss:$48 sps:$4 sm:$0xff]   ;;  %v13133_v19 = vld [vmem:[#allocation2 + $0x784] ss:$48 sps:$4 sm:$0xff]   ;;  %v13136_v20 = vld [vmem:[#allocation2 + $0x78c] ss:$48 sps:$4 sm:$0xff]  }
  0xaf   :  { %v13131_v21 = vld [vmem:[#allocation2 + $0x780] ss:$48 sps:$4 sm:$0xff]   ;;  %v13134_v22 = vld [vmem:[#allocation2 + $0x788] ss:$48 sps:$4 sm:$0xff]   ;;  %v13139_v23 = vld [vmem:[#allocation2 + $0x7e4] ss:$48 sps:$4 sm:$0xff]  }
  0xb0   :  { %v13142_v24 = vld [vmem:[#allocation2 + $0x7ec] ss:$48 sps:$4 sm:$0xff]   ;;  %v13137_v25 = vld [vmem:[#allocation2 + $0x7e0] ss:$48 sps:$4 sm:$0xff]   ;;  %v13140_v26 = vld [vmem:[#allocation2 + $0x7e8] ss:$48 sps:$4 sm:$0xff]  }
  0xb1   :  { %4275 = vmatpush1.bf16.msra.mxu0 %v13055_v30  ;;  %4439 = vmatpush1.bf16.msra.mxu1 %v13056_v31  ;;  %v13145_v27 = vld [vmem:[#allocation2 + $0x844] ss:$48 sps:$4 sm:$0xff]   ;;  %v13148_v28 = vld [vmem:[#allocation2 + $0x84c] ss:$48 sps:$4 sm:$0xff]   ;;  %v13143_v31 = vld [vmem:[#allocation2 + $0x840] ss:$48 sps:$4 sm:$0xff]  }
  0xb2   :  { %4276 = vmatprep.subr.bf16.mxu0 %v13057_v32  ;;  %4440 = vmatprep.subr.bf16.mxu1 %v13059_v33  ;;  %v15606_v29 = vld [vmem:[%s15879_s0 + $0x8] sm:$0xff]  ;;  %v13151_v33 = vld [vmem:[#allocation2 + $0x8a4] ss:$48 sps:$4 sm:$0xff]  }
  0xb3   :  { %v15610_v30 = vcombine.high %v15606_v29, %v15606_v29  ;;  %v13146_v32 = vld [vmem:[#allocation2 + $0x848] ss:$48 sps:$4 sm:$0xff]   ;;  %v13172_v46 = vld [vmem:[#allocation2 + $0x9cc] ss:$48 sps:$4 sm:$0xff]  }
  0xb5   :  { %4277 = vmatpush1.bf16.msra.mxu0 %v13061_v34  ;;  %4441 = vmatpush1.bf16.msra.mxu1 %v13062_v35  ;;  %v13154_v34 = vld [vmem:[#allocation2 + $0x8ac] ss:$48 sps:$4 sm:$0xff]   ;;  %v13149_v35 = vld [vmem:[#allocation2 + $0x8a0] ss:$48 sps:$4 sm:$0xff]  }
  0xb6   :  { %4278 = vmatprep.subr.bf16.mxu0 %v13063_v36  ;;  %4442 = vmatprep.subr.bf16.mxu1 %v13065_v37  ;;  %v13152_v36 = vld [vmem:[#allocation2 + $0x8a8] ss:$48 sps:$4 sm:$0xff]   ;;  %v13157_v37 = vld [vmem:[#allocation2 + $0x904] ss:$48 sps:$4 sm:$0xff]  }
  0xb9   :  { %4279 = vmatpush1.bf16.msra.mxu0 %v13067_v38  ;;  %4443 = vmatpush1.bf16.msra.mxu1 %v13068_v39  ;;  %v13160_v38 = vld [vmem:[#allocation2 + $0x90c] ss:$48 sps:$4 sm:$0xff]   ;;  %v13155_v39 = vld [vmem:[#allocation2 + $0x900] ss:$48 sps:$4 sm:$0xff]  }
  0xba   :  { %4280 = vmatprep.subr.bf16.mxu0 %v13069_v40  ;;  %4444 = vmatprep.subr.bf16.mxu1 %v13071_v41  ;;  %v13158_v40 = vld [vmem:[#allocation2 + $0x908] ss:$48 sps:$4 sm:$0xff]   ;;  %v13163_v41 = vld [vmem:[#allocation2 + $0x964] ss:$48 sps:$4 sm:$0xff]  }
  0xbd   :  { %4281 = vmatpush1.bf16.msra.mxu0 %v13073_v42  ;;  %4445 = vmatpush1.bf16.msra.mxu1 %v13074_v43  ;;  %v13166_v42 = vld [vmem:[#allocation2 + $0x96c] ss:$48 sps:$4 sm:$0xff]   ;;  %v13161_v43 = vld [vmem:[#allocation2 + $0x960] ss:$48 sps:$4 sm:$0xff]  }
  0xbe   :  { %4282 = vmatprep.subr.bf16.mxu0 %v13075_v44  ;;  %4446 = vmatprep.subr.bf16.mxu1 %v13077_v45  ;;  %v13164_v44 = vld [vmem:[#allocation2 + $0x968] ss:$48 sps:$4 sm:$0xff]   ;;  %v13169_v45 = vld [vmem:[#allocation2 + $0x9c4] ss:$48 sps:$4 sm:$0xff]  }
  0xc1   :  { %4283 = vmatpush1.bf16.msra.mxu0 %v13079_v47  ;;  %4447 = vmatpush1.bf16.msra.mxu1 %v13080_v49  ;;  %v13167_v47 = vld [vmem:[#allocation2 + $0x9c0] ss:$48 sps:$4 sm:$0xff]   ;;  %v13170_v49 = vld [vmem:[#allocation2 + $0x9c8] ss:$48 sps:$4 sm:$0xff]  }
  0xc2   :  { %4284 = vmatprep.subr.bf16.mxu0 %v13081_v50  ;;  %4448 = vmatprep.subr.bf16.mxu1 %v13083_v51  ;;  %v13175_v50 = vld [vmem:[#allocation2 + $0xa24] ss:$48 sps:$4 sm:$0xff]   ;;  %v13178_v51 = vld [vmem:[#allocation2 + $0xa2c] ss:$48 sps:$4 sm:$0xff]  }
  0xc5   :  { %4285 = vmatpush1.bf16.msra.mxu0 %v13085_v52  ;;  %4449 = vmatpush1.bf16.msra.mxu1 %v13086_v53  ;;  %v13173_v52 = vld [vmem:[#allocation2 + $0xa20] ss:$48 sps:$4 sm:$0xff]   ;;  %v13176_v53 = vld [vmem:[#allocation2 + $0xa28] ss:$48 sps:$4 sm:$0xff]  }
  0xc6   :  { %4286 = vmatprep.subr.bf16.mxu0 %v13087_v54  ;;  %4450 = vmatprep.subr.bf16.mxu1 %v13089_v55  ;;  %v13181_v54 = vld [vmem:[#allocation2 + $0xa84] ss:$48 sps:$4 sm:$0xff]   ;;  %v13184_v55 = vld [vmem:[#allocation2 + $0xa8c] ss:$48 sps:$4 sm:$0xff]  }
  0xc9   :  { %4287 = vmatpush1.bf16.msra.mxu0 %v13091_v56  ;;  %4451 = vmatpush1.bf16.msra.mxu1 %v13092_v57  ;;  %v13179_v56 = vld [vmem:[#allocation2 + $0xa80] ss:$48 sps:$4 sm:$0xff]   ;;  %v13182_v57 = vld [vmem:[#allocation2 + $0xa88] ss:$48 sps:$4 sm:$0xff]  }
  0xca   :  { %4288 = vmatprep.subr.bf16.mxu0 %v13093_v58  ;;  %4452 = vmatprep.subr.bf16.mxu1 %v13095_v59  ;;  %v13187_v58 = vld [vmem:[#allocation2 + $0xae4] ss:$48 sps:$4 sm:$0xff]   ;;  %v13190_v59 = vld [vmem:[#allocation2 + $0xaec] ss:$48 sps:$4 sm:$0xff]  }
  0xcd   :  { %4289 = vmatpush1.bf16.msra.mxu0 %v13097_v60  ;;  %4453 = vmatpush1.bf16.msra.mxu1 %v13098_v61  ;;  %v13185_v60 = vld [vmem:[#allocation2 + $0xae0] ss:$48 sps:$4 sm:$0xff]   ;;  %v13188_v61 = vld [vmem:[#allocation2 + $0xae8] ss:$48 sps:$4 sm:$0xff]  }
  0xce   :  { %4290 = vmatprep.subr.bf16.mxu0 %v13099_v62  ;;  %4454 = vmatprep.subr.bf16.mxu1 %v13101_v63  ;;  %v13193_v62 = vld [vmem:[#allocation2 + $0xb44] ss:$48 sps:$4 sm:$0xff]   ;;  %v13196_v63 = vld [vmem:[#allocation2 + $0xb4c] ss:$48 sps:$4 sm:$0xff]  }
  0xd1   :  { %4291 = vmatpush1.bf16.msra.mxu0 %v13103_v0  ;;  %4455 = vmatpush1.bf16.msra.mxu1 %v13104_v1  ;;  %v13191_v0 = vld [vmem:[#allocation2 + $0xb40] ss:$48 sps:$4 sm:$0xff]   ;;  %v13194_v1 = vld [vmem:[#allocation2 + $0xb48] ss:$48 sps:$4 sm:$0xff]  }
  0xd2   :  { %4301 = vmatprep.subr.bf16.mxu0 %v13108_v2  ;;  %4465 = vmatprep.subr.bf16.mxu1 %v13111_v3  ;;  %v13199_v2 = vld [vmem:[#allocation2 + $0xba4] ss:$48 sps:$4 sm:$0xff]   ;;  %v13202_v3 = vld [vmem:[#allocation2 + $0xbac] ss:$48 sps:$4 sm:$0xff]  }
  0xd4   :  { %4293 = vmatmul.mubr.bf16.vlgmr.msra.gmra.mrb[0].mxu0 %v15599_v5  ;;  %4457 = vmatmul.mubr.bf16.vlgmr.msra.gmra.mrb[0].mxu1 %v15599_v5 }
  0xd5   :  { %4302 = vmatpush1.bf16.msra.mxu0 %v13106_v4  ;;  %4466 = vmatpush1.bf16.msra.mxu1 %v13109_v6  ;;  %v13197_v4 = vld [vmem:[#allocation2 + $0xba0] ss:$48 sps:$4 sm:$0xff]   ;;  %v13200_v6 = vld [vmem:[#allocation2 + $0xba8] ss:$48 sps:$4 sm:$0xff]  }
  0xd6   :  { %4303 = vmatprep.subr.bf16.mxu0 %v13115_v7  ;;  %4467 = vmatprep.subr.bf16.mxu1 %v13118_v8  ;;  %v13206_v7 = vld [vmem:[#allocation2 + $0xc04] ss:$48 sps:$4 sm:$0xff]   ;;  %v13209_v8 = vld [vmem:[#allocation2 + $0xc0c] ss:$48 sps:$4 sm:$0xff]  }
  0xd7   :  { %4333 = vmatprep.mubr.bf16.mxu0 %v15610_v30  ;;  %4497 = vmatprep.mubr.bf16.mxu1 %v15610_v30 }
  0xd9   :  { %4304 = vmatpush1.bf16.msra.mxu0 %v13113_v9  ;;  %4468 = vmatpush1.bf16.msra.mxu1 %v13116_v10  ;;  %v13204_v9 = vld [vmem:[#allocation2 + $0xc00] ss:$48 sps:$4 sm:$0xff]   ;;  %v15616_v10 = vcombine.low %v15606_v29, %v15606_v29  ;;  %v13232_v29 = vld [vmem:[#allocation2 + $0xd88] ss:$48 sps:$4 sm:$0xff]  }
  0xda   :  { %4305 = vmatprep.subr.bf16.mxu0 %v13121_v11  ;;  %4469 = vmatprep.subr.bf16.mxu1 %v13124_v12  ;;  %v13207_v11 = vld [vmem:[#allocation2 + $0xc08] ss:$48 sps:$4 sm:$0xff]   ;;  %v13213_v12 = vld [vmem:[#allocation2 + $0xc64] ss:$48 sps:$4 sm:$0xff]  }
  0xdd   :  { %4306 = vmatpush1.bf16.msra.mxu0 %v13119_v13  ;;  %4470 = vmatpush1.bf16.msra.mxu1 %v13122_v14  ;;  %v15621_v13 = vld [vmem:[%s15879_s0 + $0x10] sm:$0xff]  ;;  %v13216_v14 = vld [vmem:[#allocation2 + $0xc6c] ss:$48 sps:$4 sm:$0xff]  }
  0xde   :  { %4307 = vmatprep.subr.bf16.mxu0 %v13127_v15  ;;  %4471 = vmatprep.subr.bf16.mxu1 %v13130_v16  ;;  %v15625_v15 = vcombine.high %v15621_v13, %v15621_v13  ;;  %v13211_v16 = vld [vmem:[#allocation2 + $0xc60] ss:$48 sps:$4 sm:$0xff]  }
  0xe1   :  { %4308 = vmatpush1.bf16.msra.mxu0 %v13125_v17  ;;  %4472 = vmatpush1.bf16.msra.mxu1 %v13128_v18  ;;  %v13214_v17 = vld [vmem:[#allocation2 + $0xc68] ss:$48 sps:$4 sm:$0xff]   ;;  %v13219_v18 = vld [vmem:[#allocation2 + $0xcc4] ss:$48 sps:$4 sm:$0xff]  }
  0xe2   :  { %4309 = vmatprep.subr.bf16.mxu0 %v13133_v19  ;;  %4473 = vmatprep.subr.bf16.mxu1 %v13136_v20  ;;  %v13222_v19 = vld [vmem:[#allocation2 + $0xccc] ss:$48 sps:$4 sm:$0xff]   ;;  %v13217_v20 = vld [vmem:[#allocation2 + $0xcc0] ss:$48 sps:$4 sm:$0xff]  }
  0xe5   :  { %4310 = vmatpush1.bf16.msra.mxu0 %v13131_v21  ;;  %4474 = vmatpush1.bf16.msra.mxu1 %v13134_v22  ;;  %v13220_v21 = vld [vmem:[#allocation2 + $0xcc8] ss:$48 sps:$4 sm:$0xff]   ;;  %v13225_v22 = vld [vmem:[#allocation2 + $0xd24] ss:$48 sps:$4 sm:$0xff]  }
  0xe6   :  { %4311 = vmatprep.subr.bf16.mxu0 %v13139_v23  ;;  %4475 = vmatprep.subr.bf16.mxu1 %v13142_v24  ;;  %v13228_v23 = vld [vmem:[#allocation2 + $0xd2c] ss:$48 sps:$4 sm:$0xff]   ;;  %v13223_v24 = vld [vmem:[#allocation2 + $0xd20] ss:$48 sps:$4 sm:$0xff]  }
  0xe9   :  { %4312 = vmatpush1.bf16.msra.mxu0 %v13137_v25  ;;  %4476 = vmatpush1.bf16.msra.mxu1 %v13140_v26  ;;  %v13226_v25 = vld [vmem:[#allocation2 + $0xd28] ss:$48 sps:$4 sm:$0xff]   ;;  %v13231_v26 = vld [vmem:[#allocation2 + $0xd84] ss:$48 sps:$4 sm:$0xff]  }
  0xea   :  { %4313 = vmatprep.subr.bf16.mxu0 %v13145_v27  ;;  %4477 = vmatprep.subr.bf16.mxu1 %v13148_v28  ;;  %v13234_v27 = vld [vmem:[#allocation2 + $0xd8c] ss:$48 sps:$4 sm:$0xff]   ;;  %v13229_v28 = vld [vmem:[#allocation2 + $0xd80] ss:$48 sps:$4 sm:$0xff]  }
  0xed   :  { %4314 = vmatpush1.bf16.msra.mxu0 %v13143_v31  ;;  %4478 = vmatpush1.bf16.msra.mxu1 %v13146_v32  ;;  %v13237_v31 = vld [vmem:[#allocation2 + $0xde4] ss:$48 sps:$4 sm:$0xff]   ;;  %v13240_v32 = vld [vmem:[#allocation2 + $0xdec] ss:$48 sps:$4 sm:$0xff]  }
  0xee   :  { %4315 = vmatprep.subr.bf16.mxu0 %v13151_v33  ;;  %4479 = vmatprep.subr.bf16.mxu1 %v13154_v34  ;;  %v13235_v33 = vld [vmem:[#allocation2 + $0xde0] ss:$48 sps:$4 sm:$0xff]   ;;  %v13238_v34 = vld [vmem:[#allocation2 + $0xde8] ss:$48 sps:$4 sm:$0xff]  }
  0xf1   :  { %4316 = vmatpush1.bf16.msra.mxu0 %v13149_v35  ;;  %4480 = vmatpush1.bf16.msra.mxu1 %v13152_v36  ;;  %v13243_v35 = vld [vmem:[#allocation2 + $0xe44] ss:$48 sps:$4 sm:$0xff]   ;;  %v13246_v36 = vld [vmem:[#allocation2 + $0xe4c] ss:$48 sps:$4 sm:$0xff]  }
  0xf2   :  { %4317 = vmatprep.subr.bf16.mxu0 %v13157_v37  ;;  %4481 = vmatprep.subr.bf16.mxu1 %v13160_v38  ;;  %v13241_v37 = vld [vmem:[#allocation2 + $0xe40] ss:$48 sps:$4 sm:$0xff]   ;;  %v13244_v38 = vld [vmem:[#allocation2 + $0xe48] ss:$48 sps:$4 sm:$0xff]  }
  0xf5   :  { %4318 = vmatpush1.bf16.msra.mxu0 %v13155_v39  ;;  %4482 = vmatpush1.bf16.msra.mxu1 %v13158_v40  ;;  %v13249_v39 = vld [vmem:[#allocation2 + $0xea4] ss:$48 sps:$4 sm:$0xff]   ;;  %v13252_v40 = vld [vmem:[#allocation2 + $0xeac] ss:$48 sps:$4 sm:$0xff]  }
  0xf6   :  { %4319 = vmatprep.subr.bf16.mxu0 %v13163_v41  ;;  %4483 = vmatprep.subr.bf16.mxu1 %v13166_v42  ;;  %v13247_v41 = vld [vmem:[#allocation2 + $0xea0] ss:$48 sps:$4 sm:$0xff]   ;;  %v13250_v42 = vld [vmem:[#allocation2 + $0xea8] ss:$48 sps:$4 sm:$0xff]  }
  0xf9   :  { %4320 = vmatpush1.bf16.msra.mxu0 %v13161_v43  ;;  %4484 = vmatpush1.bf16.msra.mxu1 %v13164_v44  ;;  %v13255_v43 = vld [vmem:[#allocation2 + $0xf04] ss:$48 sps:$4 sm:$0xff]   ;;  %v13258_v44 = vld [vmem:[#allocation2 + $0xf0c] ss:$48 sps:$4 sm:$0xff]  }
  0xfa   :  { %4321 = vmatprep.subr.bf16.mxu0 %v13169_v45  ;;  %4485 = vmatprep.subr.bf16.mxu1 %v13172_v46  ;;  %v13253_v45 = vld [vmem:[#allocation2 + $0xf00] ss:$48 sps:$4 sm:$0xff]   ;;  %v13256_v46 = vld [vmem:[#allocation2 + $0xf08] ss:$48 sps:$4 sm:$0xff]  }
  0xfd   :  { %4322 = vmatpush1.bf16.msra.mxu0 %v13167_v47  ;;  %4486 = vmatpush1.bf16.msra.mxu1 %v13170_v49  ;;  %v13261_v47 = vld [vmem:[#allocation2 + $0xf64] ss:$48 sps:$4 sm:$0xff]   ;;  %v13264_v49 = vld [vmem:[#allocation2 + $0xf6c] ss:$48 sps:$4 sm:$0xff]  }
  0xfe   :  { %4323 = vmatprep.subr.bf16.mxu0 %v13175_v50  ;;  %4487 = vmatprep.subr.bf16.mxu1 %v13178_v51  ;;  %v13259_v50 = vld [vmem:[#allocation2 + $0xf60] ss:$48 sps:$4 sm:$0xff]   ;;  %v13262_v51 = vld [vmem:[#allocation2 + $0xf68] ss:$48 sps:$4 sm:$0xff]  }
 0x101   :  { %4324 = vmatpush1.bf16.msra.mxu0 %v13173_v52  ;;  %4488 = vmatpush1.bf16.msra.mxu1 %v13176_v53  ;;  %v13267_v52 = vld [vmem:[#allocation2 + $0xfc4] ss:$48 sps:$4 sm:$0xff]   ;;  %v13270_v53 = vld [vmem:[#allocation2 + $0xfcc] ss:$48 sps:$4 sm:$0xff]  }
 0x102   :  { %4325 = vmatprep.subr.bf16.mxu0 %v13181_v54  ;;  %4489 = vmatprep.subr.bf16.mxu1 %v13184_v55  ;;  %v13265_v54 = vld [vmem:[#allocation2 + $0xfc0] ss:$48 sps:$4 sm:$0xff]   ;;  %v13268_v55 = vld [vmem:[#allocation2 + $0xfc8] ss:$48 sps:$4 sm:$0xff]  }
 0x105   :  { %4326 = vmatpush1.bf16.msra.mxu0 %v13179_v56  ;;  %4490 = vmatpush1.bf16.msra.mxu1 %v13182_v57  ;;  %v13273_v56 = vld [vmem:[#allocation2 + $0x1024] ss:$48 sps:$4 sm:$0xff]   ;;  %v13276_v57 = vld [vmem:[#allocation2 + $0x102c] ss:$48 sps:$4 sm:$0xff]  }
 0x106   :  { %4327 = vmatprep.subr.bf16.mxu0 %v13187_v58  ;;  %4491 = vmatprep.subr.bf16.mxu1 %v13190_v59  ;;  %v13271_v58 = vld [vmem:[#allocation2 + $0x1020] ss:$48 sps:$4 sm:$0xff]   ;;  %v13274_v59 = vld [vmem:[#allocation2 + $0x1028] ss:$48 sps:$4 sm:$0xff]  }
 0x109   :  { %4328 = vmatpush1.bf16.msra.mxu0 %v13185_v60  ;;  %4492 = vmatpush1.bf16.msra.mxu1 %v13188_v61  ;;  %v13279_v60 = vld [vmem:[#allocation2 + $0x1084] ss:$48 sps:$4 sm:$0xff]   ;;  %v13282_v61 = vld [vmem:[#allocation2 + $0x108c] ss:$48 sps:$4 sm:$0xff]  }
 0x10a   :  { %4329 = vmatprep.subr.bf16.mxu0 %v13193_v62  ;;  %4493 = vmatprep.subr.bf16.mxu1 %v13196_v63  ;;  %v13277_v62 = vld [vmem:[#allocation2 + $0x1080] ss:$48 sps:$4 sm:$0xff]   ;;  %v13280_v63 = vld [vmem:[#allocation2 + $0x1088] ss:$48 sps:$4 sm:$0xff]  }
 0x10d   :  { %4330 = vmatpush1.bf16.msra.mxu0 %v13191_v0  ;;  %4494 = vmatpush1.bf16.msra.mxu1 %v13194_v1  ;;  %v13285_v0 = vld [vmem:[#allocation2 + $0x10e4] ss:$48 sps:$4 sm:$0xff]   ;;  %v13288_v1 = vld [vmem:[#allocation2 + $0x10ec] ss:$48 sps:$4 sm:$0xff]  }
 0x10e   :  { %4331 = vmatprep.subr.bf16.mxu0 %v13199_v2  ;;  %4495 = vmatprep.subr.bf16.mxu1 %v13202_v3  ;;  %v13283_v2 = vld [vmem:[#allocation2 + $0x10e0] ss:$48 sps:$4 sm:$0xff]   ;;  %v13286_v3 = vld [vmem:[#allocation2 + $0x10e8] ss:$48 sps:$4 sm:$0xff]  }
 0x111   :  { %4332 = vmatpush1.bf16.msra.mxu0 %v13197_v4  ;;  %4496 = vmatpush1.bf16.msra.mxu1 %v13200_v6  ;;  %v13291_v4 = vld [vmem:[#allocation2 + $0x1144] ss:$48 sps:$4 sm:$0xff]   ;;  %v13294_v6 = vld [vmem:[#allocation2 + $0x114c] ss:$48 sps:$4 sm:$0xff]  }
 0x112   :  { %4342 = vmatprep.subr.bf16.mxu0 %v13206_v7  ;;  %4506 = vmatprep.subr.bf16.mxu1 %v13209_v8  ;;  %v13289_v7 = vld [vmem:[#allocation2 + $0x1140] ss:$48 sps:$4 sm:$0xff]   ;;  %v13292_v8 = vld [vmem:[#allocation2 + $0x1148] ss:$48 sps:$4 sm:$0xff]  }
 0x114   :  { %4334 = vmatmul.mubr.bf16.vlgmr.msra.gmra.mrb[0].mxu0 %v15616_v10  ;;  %4498 = vmatmul.mubr.bf16.vlgmr.msra.gmra.mrb[0].mxu1 %v15616_v10 }
 0x115   :  { %4343 = vmatpush1.bf16.msra.mxu0 %v13204_v9  ;;  %4507 = vmatpush1.bf16.msra.mxu1 %v13207_v11  ;;  %v13297_v9 = vld [vmem:[#allocation2 + $0x11a4] ss:$48 sps:$4 sm:$0xff]   ;;  %v13300_v11 = vld [vmem:[#allocation2 + $0x11ac] ss:$48 sps:$4 sm:$0xff]  }
 0x116   :  { %4344 = vmatprep.subr.bf16.mxu0 %v13213_v12  ;;  %4508 = vmatprep.subr.bf16.mxu1 %v13216_v14  ;;  %v13295_v12 = vld [vmem:[#allocation2 + $0x11a0] ss:$48 sps:$4 sm:$0xff]   ;;  %v13298_v14 = vld [vmem:[#allocation2 + $0x11a8] ss:$48 sps:$4 sm:$0xff]  }
 0x117   :  { %4374 = vmatprep.mubr.bf16.mxu0 %v15625_v15  ;;  %4538 = vmatprep.mubr.bf16.mxu1 %v15625_v15 }
 0x119   :  { %4345 = vmatpush1.bf16.msra.mxu0 %v13211_v16  ;;  %4509 = vmatpush1.bf16.msra.mxu1 %v13214_v17  ;;  %v13304_v16 = vld [vmem:[#allocation2 + $0x1204] ss:$48 sps:$4 sm:$0xff]   ;;  %v13307_v17 = vld [vmem:[#allocation2 + $0x120c] ss:$48 sps:$4 sm:$0xff]  }
 0x11a   :  { %4346 = vmatprep.subr.bf16.mxu0 %v13219_v18  ;;  %4510 = vmatprep.subr.bf16.mxu1 %v13222_v19  ;;  %v13302_v18 = vld [vmem:[#allocation2 + $0x1200] ss:$48 sps:$4 sm:$0xff]   ;;  %v15633_v19 = vcombine.low %v15621_v13, %v15621_v13  ;;  %v13320_v13 = vld [vmem:[#allocation2 + $0x12cc] ss:$48 sps:$4 sm:$0xff]  }
 0x11d   :  { %4347 = vmatpush1.bf16.msra.mxu0 %v13217_v20  ;;  %4511 = vmatpush1.bf16.msra.mxu1 %v13220_v21  ;;  %v13305_v20 = vld [vmem:[#allocation2 + $0x1208] ss:$48 sps:$4 sm:$0xff]   ;;  %v13311_v21 = vld [vmem:[#allocation2 + $0x1264] ss:$48 sps:$4 sm:$0xff]  }
 0x11e   :  { %4348 = vmatprep.subr.bf16.mxu0 %v13225_v22  ;;  %4512 = vmatprep.subr.bf16.mxu1 %v13228_v23  ;;  %v13314_v22 = vld [vmem:[#allocation2 + $0x126c] ss:$48 sps:$4 sm:$0xff]   ;;  %v13309_v23 = vld [vmem:[#allocation2 + $0x1260] ss:$48 sps:$4 sm:$0xff]  }
 0x121   :  { %4349 = vmatpush1.bf16.msra.mxu0 %v13223_v24  ;;  %4513 = vmatpush1.bf16.msra.mxu1 %v13226_v25  ;;  %v13312_v24 = vld [vmem:[#allocation2 + $0x1268] ss:$48 sps:$4 sm:$0xff]   ;;  %v13317_v25 = vld [vmem:[#allocation2 + $0x12c4] ss:$48 sps:$4 sm:$0xff]  }
 0x122   :  { %4350 = vmatprep.subr.bf16.mxu0 %v13231_v26  ;;  %4514 = vmatprep.subr.bf16.mxu1 %v13234_v27  ;;  %v15437_v26 = vmov 0   ;;  %v13315_v27 = vld [vmem:[#allocation2 + $0x12c0] ss:$48 sps:$4 sm:$0xff]  }
 0x125   :  { %4351 = vmatpush1.bf16.msra.mxu0 %v13229_v28  ;;  %4515 = vmatpush1.bf16.msra.mxu1 %v13232_v29  ;;  %v13318_v28 = vld [vmem:[#allocation2 + $0x12c8] ss:$48 sps:$4 sm:$0xff]   ;;  %v13323_v29 = vld [vmem:[#allocation2 + $0x1324] ss:$48 sps:$4 sm:$0xff]  }
 0x126   :  { %4352 = vmatprep.subr.bf16.mxu0 %v13237_v31  ;;  %4516 = vmatprep.subr.bf16.mxu1 %v13240_v32  ;;  %v13326_v31 = vld [vmem:[#allocation2 + $0x132c] ss:$48 sps:$4 sm:$0xff]   ;;  %v13321_v32 = vld [vmem:[#allocation2 + $0x1320] ss:$48 sps:$4 sm:$0xff]  }
 0x129   :  { %4353 = vmatpush1.bf16.msra.mxu0 %v13235_v33  ;;  %4517 = vmatpush1.bf16.msra.mxu1 %v13238_v34  ;;  %v13324_v33 = vld [vmem:[#allocation2 + $0x1328] ss:$48 sps:$4 sm:$0xff]   ;;  %v13329_v34 = vld [vmem:[#allocation2 + $0x1384] ss:$48 sps:$4 sm:$0xff]  }
 0x12a   :  { %4354 = vmatprep.subr.bf16.mxu0 %v13243_v35  ;;  %4518 = vmatprep.subr.bf16.mxu1 %v13246_v36  ;;  %v13332_v35 = vld [vmem:[#allocation2 + $0x138c] ss:$48 sps:$4 sm:$0xff]   ;;  %v13327_v36 = vld [vmem:[#allocation2 + $0x1380] ss:$48 sps:$4 sm:$0xff]  }
 0x12d   :  { %4355 = vmatpush1.bf16.msra.mxu0 %v13241_v37  ;;  %4519 = vmatpush1.bf16.msra.mxu1 %v13244_v38  ;;  %v13330_v37 = vld [vmem:[#allocation2 + $0x1388] ss:$48 sps:$4 sm:$0xff]   ;;  %v13335_v38 = vld [vmem:[#allocation2 + $0x13e4] ss:$48 sps:$4 sm:$0xff]  }
 0x12e   :  { %4356 = vmatprep.subr.bf16.mxu0 %v13249_v39  ;;  %4520 = vmatprep.subr.bf16.mxu1 %v13252_v40  ;;  %v13338_v39 = vld [vmem:[#allocation2 + $0x13ec] ss:$48 sps:$4 sm:$0xff]   ;;  %v13333_v40 = vld [vmem:[#allocation2 + $0x13e0] ss:$48 sps:$4 sm:$0xff]  }
 0x131   :  { %4357 = vmatpush1.bf16.msra.mxu0 %v13247_v41  ;;  %4521 = vmatpush1.bf16.msra.mxu1 %v13250_v42  ;;  %v13336_v41 = vld [vmem:[#allocation2 + $0x13e8] ss:$48 sps:$4 sm:$0xff]   ;;  %v13341_v42 = vld [vmem:[#allocation2 + $0x1444] ss:$48 sps:$4 sm:$0xff]  }
 0x132   :  { %4358 = vmatprep.subr.bf16.mxu0 %v13255_v43  ;;  %4522 = vmatprep.subr.bf16.mxu1 %v13258_v44  ;;  %v13344_v43 = vld [vmem:[#allocation2 + $0x144c] ss:$48 sps:$4 sm:$0xff]   ;;  %v13339_v44 = vld [vmem:[#allocation2 + $0x1440] ss:$48 sps:$4 sm:$0xff]  }
 0x135   :  { %4359 = vmatpush1.bf16.msra.mxu0 %v13253_v45  ;;  %4523 = vmatpush1.bf16.msra.mxu1 %v13256_v46  ;;  %v13342_v45 = vld [vmem:[#allocation2 + $0x1448] ss:$48 sps:$4 sm:$0xff]   ;;  %v13347_v46 = vld [vmem:[#allocation2 + $0x14a4] ss:$48 sps:$4 sm:$0xff]  }
 0x136   :  { %4360 = vmatprep.subr.bf16.mxu0 %v13261_v47  ;;  %4524 = vmatprep.subr.bf16.mxu1 %v13264_v49  ;;  %v13350_v47 = vld [vmem:[#allocation2 + $0x14ac] ss:$48 sps:$4 sm:$0xff]   ;;  %v13345_v49 = vld [vmem:[#allocation2 + $0x14a0] ss:$48 sps:$4 sm:$0xff]  }
 0x139   :  { %4361 = vmatpush1.bf16.msra.mxu0 %v13259_v50  ;;  %4525 = vmatpush1.bf16.msra.mxu1 %v13262_v51  ;;  %v13348_v50 = vld [vmem:[#allocation2 + $0x14a8] ss:$48 sps:$4 sm:$0xff]   ;;  %v13354_v51 = vld [vmem:[#allocation2 + $0x14] ss:$48 sps:$4 sm:$0xff]  }
 0x13a   :  { %4362 = vmatprep.subr.bf16.mxu0 %v13267_v52  ;;  %4526 = vmatprep.subr.bf16.mxu1 %v13270_v53  ;;  %v13357_v52 = vld [vmem:[#allocation2 + $0x1c] ss:$48 sps:$4 sm:$0xff]   ;;  %v13351_v53 = vld [vmem:[%s15879_s0 + $0x18] ss:$0 sps:$4 sm:$0xff]  }
 0x13d   :  { %4363 = vmatpush1.bf16.msra.mxu0 %v13265_v54  ;;  %4527 = vmatpush1.bf16.msra.mxu1 %v13268_v55  ;;  %v13352_v54 = vld [vmem:[#allocation2 + $0x10] ss:$48 sps:$4 sm:$0xff]   ;;  %v13355_v55 = vld [vmem:[#allocation2 + $0x18] ss:$48 sps:$4 sm:$0xff]  }
 0x13e   :  { %4364 = vmatprep.subr.bf16.mxu0 %v13273_v56  ;;  %4528 = vmatprep.subr.bf16.mxu1 %v13276_v57  ;;  %v13360_v56 = vld [vmem:[#allocation2 + $0x74] ss:$48 sps:$4 sm:$0xff]   ;;  %v13363_v57 = vld [vmem:[#allocation2 + $0x7c] ss:$48 sps:$4 sm:$0xff]  }
 0x141   :  { %4365 = vmatpush1.bf16.msra.mxu0 %v13271_v58  ;;  %4529 = vmatpush1.bf16.msra.mxu1 %v13274_v59  ;;  %v13358_v58 = vld [vmem:[#allocation2 + $0x70] ss:$48 sps:$4 sm:$0xff]   ;;  %v13361_v59 = vld [vmem:[#allocation2 + $0x78] ss:$48 sps:$4 sm:$0xff]  }
 0x142   :  { %4366 = vmatprep.subr.bf16.mxu0 %v13279_v60  ;;  %4530 = vmatprep.subr.bf16.mxu1 %v13282_v61  ;;  %v13366_v60 = vld [vmem:[#allocation2 + $0xd4] ss:$48 sps:$4 sm:$0xff]   ;;  %v13369_v61 = vld [vmem:[#allocation2 + $0xdc] ss:$48 sps:$4 sm:$0xff]  }
 0x145   :  { %4367 = vmatpush1.bf16.msra.mxu0 %v13277_v62  ;;  %4531 = vmatpush1.bf16.msra.mxu1 %v13280_v63  ;;  %v13364_v62 = vld [vmem:[#allocation2 + $0xd0] ss:$48 sps:$4 sm:$0xff]   ;;  %v13367_v63 = vld [vmem:[#allocation2 + $0xd8] ss:$48 sps:$4 sm:$0xff]  }
 0x146   :  { %4368 = vmatprep.subr.bf16.mxu0 %v13285_v0  ;;  %4532 = vmatprep.subr.bf16.mxu1 %v13288_v1  ;;  %v13372_v0 = vld [vmem:[#allocation2 + $0x134] ss:$48 sps:$4 sm:$0xff]   ;;  %v13375_v1 = vld [vmem:[#allocation2 + $0x13c] ss:$48 sps:$4 sm:$0xff]  }
 0x149   :  { %4369 = vmatpush1.bf16.msra.mxu0 %v13283_v2  ;;  %4533 = vmatpush1.bf16.msra.mxu1 %v13286_v3  ;;  %v13370_v2 = vld [vmem:[#allocation2 + $0x130] ss:$48 sps:$4 sm:$0xff]   ;;  %v13373_v3 = vld [vmem:[#allocation2 + $0x138] ss:$48 sps:$4 sm:$0xff]  }
 0x14a   :  { %4370 = vmatprep.subr.bf16.mxu0 %v13291_v4  ;;  %4534 = vmatprep.subr.bf16.mxu1 %v13294_v6  ;;  %v13378_v4 = vld [vmem:[#allocation2 + $0x194] ss:$48 sps:$4 sm:$0xff]   ;;  %v13381_v6 = vld [vmem:[#allocation2 + $0x19c] ss:$48 sps:$4 sm:$0xff]  }
 0x14d   :  { %4371 = vmatpush1.bf16.msra.mxu0 %v13289_v7  ;;  %4535 = vmatpush1.bf16.msra.mxu1 %v13292_v8  ;;  %v13376_v7 = vld [vmem:[#allocation2 + $0x190] ss:$48 sps:$4 sm:$0xff]   ;;  %v13379_v8 = vld [vmem:[#allocation2 + $0x198] ss:$48 sps:$4 sm:$0xff]  }
 0x14e   :  { %4372 = vmatprep.subr.bf16.mxu0 %v13297_v9  ;;  %4536 = vmatprep.subr.bf16.mxu1 %v13300_v11  ;;  %v13384_v9 = vld [vmem:[#allocation2 + $0x1f4] ss:$48 sps:$4 sm:$0xff]   ;;  %v13387_v11 = vld [vmem:[#allocation2 + $0x1fc] ss:$48 sps:$4 sm:$0xff]  }
 0x151   :  { %4373 = vmatpush1.bf16.msra.mxu0 %v13295_v12  ;;  %4537 = vmatpush1.bf16.msra.mxu1 %v13298_v14  ;;  %v13382_v12 = vld [vmem:[#allocation2 + $0x1f0] ss:$48 sps:$4 sm:$0xff]   ;;  %v13385_v14 = vld [vmem:[#allocation2 + $0x1f8] ss:$48 sps:$4 sm:$0xff]  }
 0x152   :  { %4383 = vmatprep.subr.bf16.mxu0 %v13304_v16  ;;  %4547 = vmatprep.subr.bf16.mxu1 %v13307_v17  ;;  %v13390_v16 = vld [vmem:[#allocation2 + $0x254] ss:$48 sps:$4 sm:$0xff]   ;;  %v13393_v17 = vld [vmem:[#allocation2 + $0x25c] ss:$48 sps:$4 sm:$0xff]  }
 0x154   :  { %4375 = vmatmul.mubr.bf16.vlgmr.msra.gmra.mrb[0].mxu0 %v15633_v19  ;;  %4539 = vmatmul.mubr.bf16.vlgmr.msra.gmra.mrb[0].mxu1 %v15633_v19 }
 0x155   :  { %4384 = vmatpush1.bf16.msra.mxu0 %v13302_v18  ;;  %4548 = vmatpush1.bf16.msra.mxu1 %v13305_v20  ;;  %v13388_v18 = vld [vmem:[#allocation2 + $0x250] ss:$48 sps:$4 sm:$0xff]   ;;  %v13391_v20 = vld [vmem:[#allocation2 + $0x258] ss:$48 sps:$4 sm:$0xff]  }
 0x156   :  { %4385 = vmatprep.subr.bf16.mxu0 %v13311_v21  ;;  %4549 = vmatprep.subr.bf16.mxu1 %v13314_v22  ;;  %v13396_v21 = vld [vmem:[#allocation2 + $0x2b4] ss:$48 sps:$4 sm:$0xff]   ;;  %v13399_v22 = vld [vmem:[#allocation2 + $0x2bc] ss:$48 sps:$4 sm:$0xff]  }
 0x157   :  { %4415 = vmatprep.mubr.bf16.mxu0 %v15437_v26  ;;  %4579 = vmatprep.mubr.bf16.mxu1 %v15437_v26 }
 0x159   :  { %4386 = vmatpush1.bf16.msra.mxu0 %v13309_v23  ;;  %4550 = vmatpush1.bf16.msra.mxu1 %v13312_v24  ;;  %v13394_v23 = vld [vmem:[#allocation2 + $0x2b0] ss:$48 sps:$4 sm:$0xff]   ;;  %v13397_v24 = vld [vmem:[#allocation2 + $0x2b8] ss:$48 sps:$4 sm:$0xff]  }
 0x15a   :  { %4387 = vmatprep.subr.bf16.mxu0 %v13317_v25  ;;  %4551 = vmatprep.subr.bf16.mxu1 %v13320_v13  ;;  %v13402_v25 = vld [vmem:[#allocation2 + $0x314] ss:$48 sps:$4 sm:$0xff]   ;;  %v13405_v13 = vld [vmem:[#allocation2 + $0x31c] ss:$48 sps:$4 sm:$0xff]  }
 0x15d   :  { %4388 = vmatpush1.bf16.msra.mxu0 %v13315_v27  ;;  %4552 = vmatpush1.bf16.msra.mxu1 %v13318_v28  ;;  %v13400_v27 = vld [vmem:[#allocation2 + $0x310] ss:$48 sps:$4 sm:$0xff]   ;;  %v13403_v28 = vld [vmem:[#allocation2 + $0x318] ss:$48 sps:$4 sm:$0xff]  }
 0x15e   :  { %4389 = vmatprep.subr.bf16.mxu0 %v13323_v29  ;;  %4553 = vmatprep.subr.bf16.mxu1 %v13326_v31  ;;  %v13408_v29 = vld [vmem:[#allocation2 + $0x374] ss:$48 sps:$4 sm:$0xff]   ;;  %v13411_v31 = vld [vmem:[#allocation2 + $0x37c] ss:$48 sps:$4 sm:$0xff]  }
 0x161   :  { %4390 = vmatpush1.bf16.msra.mxu0 %v13321_v32  ;;  %4554 = vmatpush1.bf16.msra.mxu1 %v13324_v33  ;;  %v13406_v32 = vld [vmem:[#allocation2 + $0x370] ss:$48 sps:$4 sm:$0xff]   ;;  %v13409_v33 = vld [vmem:[#allocation2 + $0x378] ss:$48 sps:$4 sm:$0xff]  }
 0x162   :  { %4391 = vmatprep.subr.bf16.mxu0 %v13329_v34  ;;  %4555 = vmatprep.subr.bf16.mxu1 %v13332_v35  ;;  %v13414_v34 = vld [vmem:[#allocation2 + $0x3d4] ss:$48 sps:$4 sm:$0xff]   ;;  %v13417_v35 = vld [vmem:[#allocation2 + $0x3dc] ss:$48 sps:$4 sm:$0xff]  }
 0x165   :  { %4392 = vmatpush1.bf16.msra.mxu0 %v13327_v36  ;;  %4556 = vmatpush1.bf16.msra.mxu1 %v13330_v37  ;;  %v13412_v36 = vld [vmem:[#allocation2 + $0x3d0] ss:$48 sps:$4 sm:$0xff]   ;;  %v13415_v37 = vld [vmem:[#allocation2 + $0x3d8] ss:$48 sps:$4 sm:$0xff]  }
 0x166   :  { %4393 = vmatprep.subr.bf16.mxu0 %v13335_v38  ;;  %4557 = vmatprep.subr.bf16.mxu1 %v13338_v39  ;;  %v13420_v38 = vld [vmem:[#allocation2 + $0x434] ss:$48 sps:$4 sm:$0xff]   ;;  %v13423_v39 = vld [vmem:[#allocation2 + $0x43c] ss:$48 sps:$4 sm:$0xff]  }
 0x169   :  { %4394 = vmatpush1.bf16.msra.mxu0 %v13333_v40  ;;  %4558 = vmatpush1.bf16.msra.mxu1 %v13336_v41  ;;  %v13418_v40 = vld [vmem:[#allocation2 + $0x430] ss:$48 sps:$4 sm:$0xff]   ;;  %v13421_v41 = vld [vmem:[#allocation2 + $0x438] ss:$48 sps:$4 sm:$0xff]  }
 0x16a   :  { %4395 = vmatprep.subr.bf16.mxu0 %v13341_v42  ;;  %4559 = vmatprep.subr.bf16.mxu1 %v13344_v43  ;;  %v13426_v42 = vld [vmem:[#allocation2 + $0x494] ss:$48 sps:$4 sm:$0xff]   ;;  %v13429_v43 = vld [vmem:[#allocation2 + $0x49c] ss:$48 sps:$4 sm:$0xff]  }
 0x16d   :  { %4396 = vmatpush1.bf16.msra.mxu0 %v13339_v44  ;;  %4560 = vmatpush1.bf16.msra.mxu1 %v13342_v45  ;;  %v13424_v44 = vld [vmem:[#allocation2 + $0x490] ss:$48 sps:$4 sm:$0xff]   ;;  %v13427_v45 = vld [vmem:[#allocation2 + $0x498] ss:$48 sps:$4 sm:$0xff]  }
 0x16e   :  { %4397 = vmatprep.subr.bf16.mxu0 %v13347_v46  ;;  %4561 = vmatprep.subr.bf16.mxu1 %v13350_v47  ;;  %v13432_v46 = vld [vmem:[#allocation2 + $0x4f4] ss:$48 sps:$4 sm:$0xff]   ;;  %v13435_v47 = vld [vmem:[#allocation2 + $0x4fc] ss:$48 sps:$4 sm:$0xff]  }
 0x171   :  { %4398 = vmatpush1.bf16.msra.mxu0 %v13345_v49  ;;  %4562 = vmatpush1.bf16.msra.mxu1 %v13348_v50  ;;  %v13430_v49 = vld [vmem:[#allocation2 + $0x4f0] ss:$48 sps:$4 sm:$0xff]   ;;  %v13433_v50 = vld [vmem:[#allocation2 + $0x4f8] ss:$48 sps:$4 sm:$0xff]  }
 0x172   :  { %4588 = vmatprep.subr.bf16.mxu0 %v13354_v51  ;;  %4752 = vmatprep.subr.bf16.mxu1 %v13357_v52  ;;  %v13438_v51 = vld [vmem:[#allocation2 + $0x554] ss:$48 sps:$4 sm:$0xff]   ;;  %v13441_v52 = vld [vmem:[#allocation2 + $0x55c] ss:$48 sps:$4 sm:$0xff]  }
 0x174   :  { %4416 = vmatmul.mubr.bf16.vlgmr.msra.gmra.mrb[0].mxu0 %v13351_v53  ;;  %4580 = vmatmul.mubr.bf16.vlgmr.msra.gmra.mrb[0].mxu1 %v13351_v53  ;;  %v13436_v53 = vld [vmem:[#allocation2 + $0x550] ss:$48 sps:$4 sm:$0xff]  }
 0x175   :  { %4589 = vmatpush1.bf16.msra.mxu0 %v13352_v54  ;;  %4753 = vmatpush1.bf16.msra.mxu1 %v13355_v55  ;;  %v13439_v54 = vld [vmem:[#allocation2 + $0x558] ss:$48 sps:$4 sm:$0xff]   ;;  %v13444_v55 = vld [vmem:[#allocation2 + $0x5b4] ss:$48 sps:$4 sm:$0xff]  }
 0x176   :  { %4590 = vmatprep.subr.bf16.mxu0 %v13360_v56  ;;  %4754 = vmatprep.subr.bf16.mxu1 %v13363_v57  ;;  %v13447_v56 = vld [vmem:[#allocation2 + $0x5bc] ss:$48 sps:$4 sm:$0xff]   ;;  %v13442_v57 = vld [vmem:[#allocation2 + $0x5b0] ss:$48 sps:$4 sm:$0xff]  }
 0x177   :  { %4620 = vmatprep.mubr.bf16.mxu0 %v15595_v48  ;;  %4784 = vmatprep.mubr.bf16.mxu1 %v15595_v48 }
 0x179   :  { %4591 = vmatpush1.bf16.msra.mxu0 %v13358_v58  ;;  %4755 = vmatpush1.bf16.msra.mxu1 %v13361_v59  ;;  %v13445_v58 = vld [vmem:[#allocation2 + $0x5b8] ss:$48 sps:$4 sm:$0xff]   ;;  %v13450_v59 = vld [vmem:[#allocation2 + $0x614] ss:$48 sps:$4 sm:$0xff]  }
 0x17a   :  { %4592 = vmatprep.subr.bf16.mxu0 %v13366_v60  ;;  %4756 = vmatprep.subr.bf16.mxu1 %v13369_v61  ;;  %v13453_v60 = vld [vmem:[#allocation2 + $0x61c] ss:$48 sps:$4 sm:$0xff]   ;;  %v13448_v61 = vld [vmem:[#allocation2 + $0x610] ss:$48 sps:$4 sm:$0xff]  }
 0x17d   :  { %4593 = vmatpush1.bf16.msra.mxu0 %v13364_v62  ;;  %4757 = vmatpush1.bf16.msra.mxu1 %v13367_v63  ;;  %v13451_v62 = vld [vmem:[#allocation2 + $0x618] ss:$48 sps:$4 sm:$0xff]   ;;  %v13456_v63 = vld [vmem:[#allocation2 + $0x674] ss:$48 sps:$4 sm:$0xff]  }
 0x17e   :  { %4594 = vmatprep.subr.bf16.mxu0 %v13372_v0  ;;  %4758 = vmatprep.subr.bf16.mxu1 %v13375_v1  ;;  %v13459_v0 = vld [vmem:[#allocation2 + $0x67c] ss:$48 sps:$4 sm:$0xff]   ;;  %v13454_v1 = vld [vmem:[#allocation2 + $0x670] ss:$48 sps:$4 sm:$0xff]  }
 0x181   :  { %4595 = vmatpush1.bf16.msra.mxu0 %v13370_v2  ;;  %4759 = vmatpush1.bf16.msra.mxu1 %v13373_v3  ;;  %v13457_v2 = vld [vmem:[#allocation2 + $0x678] ss:$48 sps:$4 sm:$0xff]   ;;  %v13462_v3 = vld [vmem:[#allocation2 + $0x6d4] ss:$48 sps:$4 sm:$0xff]  }
 0x182   :  { %4596 = vmatprep.subr.bf16.mxu0 %v13378_v4  ;;  %4760 = vmatprep.subr.bf16.mxu1 %v13381_v6  ;;  %v13465_v4 = vld [vmem:[#allocation2 + $0x6dc] ss:$48 sps:$4 sm:$0xff]   ;;  %v13460_v6 = vld [vmem:[#allocation2 + $0x6d0] ss:$48 sps:$4 sm:$0xff]  }
 0x185   :  { %4597 = vmatpush1.bf16.msra.mxu0 %v13376_v7  ;;  %4761 = vmatpush1.bf16.msra.mxu1 %v13379_v8  ;;  %v13463_v7 = vld [vmem:[#allocation2 + $0x6d8] ss:$48 sps:$4 sm:$0xff]   ;;  %v13468_v8 = vld [vmem:[#allocation2 + $0x734] ss:$48 sps:$4 sm:$0xff]  }
 0x186   :  { %4598 = vmatprep.subr.bf16.mxu0 %v13384_v9  ;;  %4762 = vmatprep.subr.bf16.mxu1 %v13387_v11  ;;  %v13471_v9 = vld [vmem:[#allocation2 + $0x73c] ss:$48 sps:$4 sm:$0xff]   ;;  %v13466_v11 = vld [vmem:[#allocation2 + $0x730] ss:$48 sps:$4 sm:$0xff]  }
 0x189   :  { %4599 = vmatpush1.bf16.msra.mxu0 %v13382_v12  ;;  %4763 = vmatpush1.bf16.msra.mxu1 %v13385_v14  ;;  %v13469_v12 = vld [vmem:[#allocation2 + $0x738] ss:$48 sps:$4 sm:$0xff]   ;;  %v13474_v14 = vld [vmem:[#allocation2 + $0x794] ss:$48 sps:$4 sm:$0xff]  }
 0x18a   :  { %4600 = vmatprep.subr.bf16.mxu0 %v13390_v16  ;;  %4764 = vmatprep.subr.bf16.mxu1 %v13393_v17  ;;  %v13477_v16 = vld [vmem:[#allocation2 + $0x79c] ss:$48 sps:$4 sm:$0xff]   ;;  %v13472_v17 = vld [vmem:[#allocation2 + $0x790] ss:$48 sps:$4 sm:$0xff]  }
 0x18d   :  { %4601 = vmatpush1.bf16.msra.mxu0 %v13388_v18  ;;  %4765 = vmatpush1.bf16.msra.mxu1 %v13391_v20  ;;  %v13475_v18 = vld [vmem:[#allocation2 + $0x798] ss:$48 sps:$4 sm:$0xff]   ;;  %v13480_v20 = vld [vmem:[#allocation2 + $0x7f4] ss:$48 sps:$4 sm:$0xff]  }
 0x18e   :  { %4602 = vmatprep.subr.bf16.mxu0 %v13396_v21  ;;  %4766 = vmatprep.subr.bf16.mxu1 %v13399_v22  ;;  %v13483_v21 = vld [vmem:[#allocation2 + $0x7fc] ss:$48 sps:$4 sm:$0xff]   ;;  %v13478_v22 = vld [vmem:[#allocation2 + $0x7f0] ss:$48 sps:$4 sm:$0xff]  }
 0x191   :  { %4603 = vmatpush1.bf16.msra.mxu0 %v13394_v23  ;;  %4767 = vmatpush1.bf16.msra.mxu1 %v13397_v24  ;;  %v13481_v23 = vld [vmem:[#allocation2 + $0x7f8] ss:$48 sps:$4 sm:$0xff]   ;;  %v13486_v24 = vld [vmem:[#allocation2 + $0x854] ss:$48 sps:$4 sm:$0xff]  }
 0x192   :  { %4604 = vmatprep.subr.bf16.mxu0 %v13402_v25  ;;  %4768 = vmatprep.subr.bf16.mxu1 %v13405_v13  ;;  %v13489_v25 = vld [vmem:[#allocation2 + $0x85c] ss:$48 sps:$4 sm:$0xff]   ;;  %v13484_v13 = vld [vmem:[#allocation2 + $0x850] ss:$48 sps:$4 sm:$0xff]  }
 0x195   :  { %4605 = vmatpush1.bf16.msra.mxu0 %v13400_v27  ;;  %4769 = vmatpush1.bf16.msra.mxu1 %v13403_v28  ;;  %v13487_v27 = vld [vmem:[#allocation2 + $0x858] ss:$48 sps:$4 sm:$0xff]   ;;  %v13492_v28 = vld [vmem:[#allocation2 + $0x8b4] ss:$48 sps:$4 sm:$0xff]  }
 0x196   :  { %4606 = vmatprep.subr.bf16.mxu0 %v13408_v29  ;;  %4770 = vmatprep.subr.bf16.mxu1 %v13411_v31  ;;  %v13495_v29 = vld [vmem:[#allocation2 + $0x8bc] ss:$48 sps:$4 sm:$0xff]   ;;  %v13490_v31 = vld [vmem:[#allocation2 + $0x8b0] ss:$48 sps:$4 sm:$0xff]  }
 0x199   :  { %4607 = vmatpush1.bf16.msra.mxu0 %v13406_v32  ;;  %4771 = vmatpush1.bf16.msra.mxu1 %v13409_v33  ;;  %v13493_v32 = vld [vmem:[#allocation2 + $0x8b8] ss:$48 sps:$4 sm:$0xff]   ;;  %v13498_v33 = vld [vmem:[#allocation2 + $0x914] ss:$48 sps:$4 sm:$0xff]  }
 0x19a   :  { %4608 = vmatprep.subr.bf16.mxu0 %v13414_v34  ;;  %4772 = vmatprep.subr.bf16.mxu1 %v13417_v35  ;;  %v13501_v34 = vld [vmem:[#allocation2 + $0x91c] ss:$48 sps:$4 sm:$0xff]   ;;  %v13496_v35 = vld [vmem:[#allocation2 + $0x910] ss:$48 sps:$4 sm:$0xff]  }
 0x19d   :  { %4609 = vmatpush1.bf16.msra.mxu0 %v13412_v36  ;;  %4773 = vmatpush1.bf16.msra.mxu1 %v13415_v37  ;;  %v13499_v36 = vld [vmem:[#allocation2 + $0x918] ss:$48 sps:$4 sm:$0xff]   ;;  %v13504_v37 = vld [vmem:[#allocation2 + $0x974] ss:$48 sps:$4 sm:$0xff]  }
 0x19e   :  { %4610 = vmatprep.subr.bf16.mxu0 %v13420_v38  ;;  %4774 = vmatprep.subr.bf16.mxu1 %v13423_v39  ;;  %v13507_v38 = vld [vmem:[#allocation2 + $0x97c] ss:$48 sps:$4 sm:$0xff]   ;;  %v13502_v39 = vld [vmem:[#allocation2 + $0x970] ss:$48 sps:$4 sm:$0xff]  }
 0x1a1   :  { %4611 = vmatpush1.bf16.msra.mxu0 %v13418_v40  ;;  %4775 = vmatpush1.bf16.msra.mxu1 %v13421_v41  ;;  %v13505_v40 = vld [vmem:[#allocation2 + $0x978] ss:$48 sps:$4 sm:$0xff]   ;;  %v13510_v41 = vld [vmem:[#allocation2 + $0x9d4] ss:$48 sps:$4 sm:$0xff]  }
 0x1a2   :  { %4612 = vmatprep.subr.bf16.mxu0 %v13426_v42  ;;  %4776 = vmatprep.subr.bf16.mxu1 %v13429_v43  ;;  %v13513_v42 = vld [vmem:[#allocation2 + $0x9dc] ss:$48 sps:$4 sm:$0xff]   ;;  %v13508_v43 = vld [vmem:[#allocation2 + $0x9d0] ss:$48 sps:$4 sm:$0xff]  }
 0x1a5   :  { %4613 = vmatpush1.bf16.msra.mxu0 %v13424_v44  ;;  %4777 = vmatpush1.bf16.msra.mxu1 %v13427_v45  ;;  %v13511_v44 = vld [vmem:[#allocation2 + $0x9d8] ss:$48 sps:$4 sm:$0xff]   ;;  %v13516_v45 = vld [vmem:[#allocation2 + $0xa34] ss:$48 sps:$4 sm:$0xff]  }
 0x1a6   :  { %4614 = vmatprep.subr.bf16.mxu0 %v13432_v46  ;;  %4778 = vmatprep.subr.bf16.mxu1 %v13435_v47  ;;  %v13519_v46 = vld [vmem:[#allocation2 + $0xa3c] ss:$48 sps:$4 sm:$0xff]   ;;  %v13514_v47 = vld [vmem:[#allocation2 + $0xa30] ss:$48 sps:$4 sm:$0xff]  }
 0x1a9   :  { %4615 = vmatpush1.bf16.msra.mxu0 %v13430_v49  ;;  %4779 = vmatpush1.bf16.msra.mxu1 %v13433_v50  ;;  %v13517_v49 = vld [vmem:[#allocation2 + $0xa38] ss:$48 sps:$4 sm:$0xff]   ;;  %v13522_v50 = vld [vmem:[#allocation2 + $0xa94] ss:$48 sps:$4 sm:$0xff]  }
 0x1aa   :  { %4616 = vmatprep.subr.bf16.mxu0 %v13438_v51  ;;  %4780 = vmatprep.subr.bf16.mxu1 %v13441_v52  ;;  %v13525_v51 = vld [vmem:[#allocation2 + $0xa9c] ss:$48 sps:$4 sm:$0xff]   ;;  %v13520_v52 = vld [vmem:[#allocation2 + $0xa90] ss:$48 sps:$4 sm:$0xff]  }
 0x1ad   :  { %4617 = vmatpush1.bf16.msra.mxu0 %v13436_v53  ;;  %4781 = vmatpush1.bf16.msra.mxu1 %v13439_v54  ;;  %v13523_v53 = vld [vmem:[#allocation2 + $0xa98] ss:$48 sps:$4 sm:$0xff]   ;;  %v13528_v54 = vld [vmem:[#allocation2 + $0xaf4] ss:$48 sps:$4 sm:$0xff]  }
 0x1ae   :  { %4618 = vmatprep.subr.bf16.mxu0 %v13444_v55  ;;  %4782 = vmatprep.subr.bf16.mxu1 %v13447_v56  ;;  %v13531_v55 = vld [vmem:[#allocation2 + $0xafc] ss:$48 sps:$4 sm:$0xff]   ;;  %v13526_v56 = vld [vmem:[#allocation2 + $0xaf0] ss:$48 sps:$4 sm:$0xff]  }
 0x1b1   :  { %4619 = vmatpush1.bf16.msra.mxu0 %v13442_v57  ;;  %4783 = vmatpush1.bf16.msra.mxu1 %v13445_v58  ;;  %v13529_v57 = vld [vmem:[#allocation2 + $0xaf8] ss:$48 sps:$4 sm:$0xff]   ;;  %v13534_v58 = vld [vmem:[#allocation2 + $0xb54] ss:$48 sps:$4 sm:$0xff]  }
 0x1b2   :  { %4629 = vmatprep.subr.bf16.mxu0 %v13450_v59  ;;  %4793 = vmatprep.subr.bf16.mxu1 %v13453_v60  ;;  %v13537_v59 = vld [vmem:[#allocation2 + $0xb5c] ss:$48 sps:$4 sm:$0xff]   ;;  %v13532_v60 = vld [vmem:[#allocation2 + $0xb50] ss:$48 sps:$4 sm:$0xff]  }
 0x1b4   :  { %4621 = vmatmul.mubr.bf16.vlgmr.msra.gmra.mrb[4].mxu0 %v15599_v5  ;;  %4785 = vmatmul.mubr.bf16.vlgmr.msra.gmra.mrb[4].mxu1 %v15599_v5 }
 0x1b5   :  { %4630 = vmatpush1.bf16.msra.mxu0 %v13448_v61  ;;  %4794 = vmatpush1.bf16.msra.mxu1 %v13451_v62  ;;  %v13535_v61 = vld [vmem:[#allocation2 + $0xb58] ss:$48 sps:$4 sm:$0xff]   ;;  %v13540_v62 = vld [vmem:[#allocation2 + $0xbb4] ss:$48 sps:$4 sm:$0xff]  }
 0x1b6   :  { %4631 = vmatprep.subr.bf16.mxu0 %v13456_v63  ;;  %4795 = vmatprep.subr.bf16.mxu1 %v13459_v0  ;;  %v13543_v63 = vld [vmem:[#allocation2 + $0xbbc] ss:$48 sps:$4 sm:$0xff]   ;;  %v13538_v0 = vld [vmem:[#allocation2 + $0xbb0] ss:$48 sps:$4 sm:$0xff]  }
 0x1b7   :  { %4661 = vmatprep.mubr.bf16.mxu0 %v15610_v30  ;;  %4825 = vmatprep.mubr.bf16.mxu1 %v15610_v30 }
 0x1b9   :  { %4632 = vmatpush1.bf16.msra.mxu0 %v13454_v1  ;;  %4796 = vmatpush1.bf16.msra.mxu1 %v13457_v2  ;;  %v13541_v1 = vld [vmem:[#allocation2 + $0xbb8] ss:$48 sps:$4 sm:$0xff]   ;;  %v13546_v2 = vld [vmem:[#allocation2 + $0xc14] ss:$48 sps:$4 sm:$0xff]  }
 0x1ba   :  { %4633 = vmatprep.subr.bf16.mxu0 %v13462_v3  ;;  %4797 = vmatprep.subr.bf16.mxu1 %v13465_v4  ;;  %v13549_v3 = vld [vmem:[#allocation2 + $0xc1c] ss:$48 sps:$4 sm:$0xff]   ;;  %v13544_v4 = vld [vmem:[#allocation2 + $0xc10] ss:$48 sps:$4 sm:$0xff]  }
 0x1bd   :  { %4634 = vmatpush1.bf16.msra.mxu0 %v13460_v6  ;;  %4798 = vmatpush1.bf16.msra.mxu1 %v13463_v7  ;;  %v13547_v6 = vld [vmem:[#allocation2 + $0xc18] ss:$48 sps:$4 sm:$0xff]   ;;  %v13552_v7 = vld [vmem:[#allocation2 + $0xc74] ss:$48 sps:$4 sm:$0xff]  }
 0x1be   :  { %4635 = vmatprep.subr.bf16.mxu0 %v13468_v8  ;;  %4799 = vmatprep.subr.bf16.mxu1 %v13471_v9  ;;  %v13555_v8 = vld [vmem:[#allocation2 + $0xc7c] ss:$48 sps:$4 sm:$0xff]   ;;  %v13550_v9 = vld [vmem:[#allocation2 + $0xc70] ss:$48 sps:$4 sm:$0xff]  }
 0x1c1   :  { %4636 = vmatpush1.bf16.msra.mxu0 %v13466_v11  ;;  %4800 = vmatpush1.bf16.msra.mxu1 %v13469_v12  ;;  %v13553_v11 = vld [vmem:[#allocation2 + $0xc78] ss:$48 sps:$4 sm:$0xff]   ;;  %v13558_v12 = vld [vmem:[#allocation2 + $0xcd4] ss:$48 sps:$4 sm:$0xff]  }
 0x1c2   :  { %4637 = vmatprep.subr.bf16.mxu0 %v13474_v14  ;;  %4801 = vmatprep.subr.bf16.mxu1 %v13477_v16  ;;  %v13561_v14 = vld [vmem:[#allocation2 + $0xcdc] ss:$48 sps:$4 sm:$0xff]   ;;  %v13556_v16 = vld [vmem:[#allocation2 + $0xcd0] ss:$48 sps:$4 sm:$0xff]  }
 0x1c5   :  { %4638 = vmatpush1.bf16.msra.mxu0 %v13472_v17  ;;  %4802 = vmatpush1.bf16.msra.mxu1 %v13475_v18  ;;  %v13559_v17 = vld [vmem:[#allocation2 + $0xcd8] ss:$48 sps:$4 sm:$0xff]   ;;  %v13564_v18 = vld [vmem:[#allocation2 + $0xd34] ss:$48 sps:$4 sm:$0xff]  }
 0x1c6   :  { %4639 = vmatprep.subr.bf16.mxu0 %v13480_v20  ;;  %4803 = vmatprep.subr.bf16.mxu1 %v13483_v21  ;;  %v13567_v20 = vld [vmem:[#allocation2 + $0xd3c] ss:$48 sps:$4 sm:$0xff]   ;;  %v13562_v21 = vld [vmem:[#allocation2 + $0xd30] ss:$48 sps:$4 sm:$0xff]  }
 0x1c9   :  { %4640 = vmatpush1.bf16.msra.mxu0 %v13478_v22  ;;  %4804 = vmatpush1.bf16.msra.mxu1 %v13481_v23  ;;  %v13565_v22 = vld [vmem:[#allocation2 + $0xd38] ss:$48 sps:$4 sm:$0xff]   ;;  %v13570_v23 = vld [vmem:[#allocation2 + $0xd94] ss:$48 sps:$4 sm:$0xff]  }
 0x1ca   :  { %4641 = vmatprep.subr.bf16.mxu0 %v13486_v24  ;;  %4805 = vmatprep.subr.bf16.mxu1 %v13489_v25  ;;  %v13573_v24 = vld [vmem:[#allocation2 + $0xd9c] ss:$48 sps:$4 sm:$0xff]   ;;  %v13568_v25 = vld [vmem:[#allocation2 + $0xd90] ss:$48 sps:$4 sm:$0xff]  }
 0x1cd   :  { %4642 = vmatpush1.bf16.msra.mxu0 %v13484_v13  ;;  %4806 = vmatpush1.bf16.msra.mxu1 %v13487_v27  ;;  %v13571_v13 = vld [vmem:[#allocation2 + $0xd98] ss:$48 sps:$4 sm:$0xff]   ;;  %v13576_v27 = vld [vmem:[#allocation2 + $0xdf4] ss:$48 sps:$4 sm:$0xff]  }
 0x1ce   :  { %4643 = vmatprep.subr.bf16.mxu0 %v13492_v28  ;;  %4807 = vmatprep.subr.bf16.mxu1 %v13495_v29  ;;  %v13579_v28 = vld [vmem:[#allocation2 + $0xdfc] ss:$48 sps:$4 sm:$0xff]   ;;  %v13574_v29 = vld [vmem:[#allocation2 + $0xdf0] ss:$48 sps:$4 sm:$0xff]  }
 0x1d1   :  { %4644 = vmatpush1.bf16.msra.mxu0 %v13490_v31  ;;  %4808 = vmatpush1.bf16.msra.mxu1 %v13493_v32  ;;  %v13577_v31 = vld [vmem:[#allocation2 + $0xdf8] ss:$48 sps:$4 sm:$0xff]   ;;  %v13582_v32 = vld [vmem:[#allocation2 + $0xe54] ss:$48 sps:$4 sm:$0xff]  }
 0x1d2   :  { %4645 = vmatprep.subr.bf16.mxu0 %v13498_v33  ;;  %4809 = vmatprep.subr.bf16.mxu1 %v13501_v34  ;;  %v13585_v33 = vld [vmem:[#allocation2 + $0xe5c] ss:$48 sps:$4 sm:$0xff]   ;;  %v13580_v34 = vld [vmem:[#allocation2 + $0xe50] ss:$48 sps:$4 sm:$0xff]  }
 0x1d5   :  { %4646 = vmatpush1.bf16.msra.mxu0 %v13496_v35  ;;  %4810 = vmatpush1.bf16.msra.mxu1 %v13499_v36  ;;  %v13583_v35 = vld [vmem:[#allocation2 + $0xe58] ss:$48 sps:$4 sm:$0xff]   ;;  %v13588_v36 = vld [vmem:[#allocation2 + $0xeb4] ss:$48 sps:$4 sm:$0xff]  }
 0x1d6   :  { %4647 = vmatprep.subr.bf16.mxu0 %v13504_v37  ;;  %4811 = vmatprep.subr.bf16.mxu1 %v13507_v38  ;;  %v13591_v37 = vld [vmem:[#allocation2 + $0xebc] ss:$48 sps:$4 sm:$0xff]   ;;  %v13586_v38 = vld [vmem:[#allocation2 + $0xeb0] ss:$48 sps:$4 sm:$0xff]  }
 0x1d9   :  { %4648 = vmatpush1.bf16.msra.mxu0 %v13502_v39  ;;  %4812 = vmatpush1.bf16.msra.mxu1 %v13505_v40  ;;  %v13589_v39 = vld [vmem:[#allocation2 + $0xeb8] ss:$48 sps:$4 sm:$0xff]   ;;  %v13594_v40 = vld [vmem:[#allocation2 + $0xf14] ss:$48 sps:$4 sm:$0xff]  }
 0x1da   :  { %4649 = vmatprep.subr.bf16.mxu0 %v13510_v41  ;;  %4813 = vmatprep.subr.bf16.mxu1 %v13513_v42  ;;  %v13597_v41 = vld [vmem:[#allocation2 + $0xf1c] ss:$48 sps:$4 sm:$0xff]   ;;  %v13592_v42 = vld [vmem:[#allocation2 + $0xf10] ss:$48 sps:$4 sm:$0xff]  }
 0x1dd   :  { %4650 = vmatpush1.bf16.msra.mxu0 %v13508_v43  ;;  %4814 = vmatpush1.bf16.msra.mxu1 %v13511_v44  ;;  %v13595_v43 = vld [vmem:[#allocation2 + $0xf18] ss:$48 sps:$4 sm:$0xff]   ;;  %v13600_v44 = vld [vmem:[#allocation2 + $0xf74] ss:$48 sps:$4 sm:$0xff]  }
 0x1de   :  { %4651 = vmatprep.subr.bf16.mxu0 %v13516_v45  ;;  %4815 = vmatprep.subr.bf16.mxu1 %v13519_v46  ;;  %v13603_v45 = vld [vmem:[#allocation2 + $0xf7c] ss:$48 sps:$4 sm:$0xff]   ;;  %v13598_v46 = vld [vmem:[#allocation2 + $0xf70] ss:$48 sps:$4 sm:$0xff]  }
 0x1e1   :  { %4652 = vmatpush1.bf16.msra.mxu0 %v13514_v47  ;;  %4816 = vmatpush1.bf16.msra.mxu1 %v13517_v49  ;;  %v13601_v47 = vld [vmem:[#allocation2 + $0xf78] ss:$48 sps:$4 sm:$0xff]   ;;  %v13606_v49 = vld [vmem:[#allocation2 + $0xfd4] ss:$48 sps:$4 sm:$0xff]  }
 0x1e2   :  { %4653 = vmatprep.subr.bf16.mxu0 %v13522_v50  ;;  %4817 = vmatprep.subr.bf16.mxu1 %v13525_v51  ;;  %v13609_v50 = vld [vmem:[#allocation2 + $0xfdc] ss:$48 sps:$4 sm:$0xff]   ;;  %v13604_v51 = vld [vmem:[#allocation2 + $0xfd0] ss:$48 sps:$4 sm:$0xff]  }
 0x1e5   :  { %4654 = vmatpush1.bf16.msra.mxu0 %v13520_v52  ;;  %4818 = vmatpush1.bf16.msra.mxu1 %v13523_v53  ;;  %v13607_v52 = vld [vmem:[#allocation2 + $0xfd8] ss:$48 sps:$4 sm:$0xff]   ;;  %v13612_v53 = vld [vmem:[#allocation2 + $0x1034] ss:$48 sps:$4 sm:$0xff]  }
 0x1e6   :  { %4655 = vmatprep.subr.bf16.mxu0 %v13528_v54  ;;  %4819 = vmatprep.subr.bf16.mxu1 %v13531_v55  ;;  %v13615_v54 = vld [vmem:[#allocation2 + $0x103c] ss:$48 sps:$4 sm:$0xff]   ;;  %v13610_v55 = vld [vmem:[#allocation2 + $0x1030] ss:$48 sps:$4 sm:$0xff]  }
 0x1e9   :  { %4656 = vmatpush1.bf16.msra.mxu0 %v13526_v56  ;;  %4820 = vmatpush1.bf16.msra.mxu1 %v13529_v57  ;;  %v13613_v56 = vld [vmem:[#allocation2 + $0x1038] ss:$48 sps:$4 sm:$0xff]   ;;  %v13618_v57 = vld [vmem:[#allocation2 + $0x1094] ss:$48 sps:$4 sm:$0xff]  }
 0x1ea   :  { %4657 = vmatprep.subr.bf16.mxu0 %v13534_v58  ;;  %4821 = vmatprep.subr.bf16.mxu1 %v13537_v59  ;;  %v13621_v58 = vld [vmem:[#allocation2 + $0x109c] ss:$48 sps:$4 sm:$0xff]   ;;  %v13616_v59 = vld [vmem:[#allocation2 + $0x1090] ss:$48 sps:$4 sm:$0xff]  }
 0x1ed   :  { %4658 = vmatpush1.bf16.msra.mxu0 %v13532_v60  ;;  %4822 = vmatpush1.bf16.msra.mxu1 %v13535_v61  ;;  %v13619_v60 = vld [vmem:[#allocation2 + $0x1098] ss:$48 sps:$4 sm:$0xff]   ;;  %v13624_v61 = vld [vmem:[#allocation2 + $0x10f4] ss:$48 sps:$4 sm:$0xff]  }
 0x1ee   :  { %4659 = vmatprep.subr.bf16.mxu0 %v13540_v62  ;;  %4823 = vmatprep.subr.bf16.mxu1 %v13543_v63  ;;  %v13627_v62 = vld [vmem:[#allocation2 + $0x10fc] ss:$48 sps:$4 sm:$0xff]   ;;  %v13622_v63 = vld [vmem:[#allocation2 + $0x10f0] ss:$48 sps:$4 sm:$0xff]  }
 0x1f1   :  { %4660 = vmatpush1.bf16.msra.mxu0 %v13538_v0  ;;  %4824 = vmatpush1.bf16.msra.mxu1 %v13541_v1  ;;  %v13625_v0 = vld [vmem:[#allocation2 + $0x10f8] ss:$48 sps:$4 sm:$0xff]   ;;  %v13630_v1 = vld [vmem:[#allocation2 + $0x1154] ss:$48 sps:$4 sm:$0xff]  }
 0x1f2   :  { %4670 = vmatprep.subr.bf16.mxu0 %v13546_v2  ;;  %4834 = vmatprep.subr.bf16.mxu1 %v13549_v3  ;;  %v13633_v2 = vld [vmem:[#allocation2 + $0x115c] ss:$48 sps:$4 sm:$0xff]   ;;  %v13628_v3 = vld [vmem:[#allocation2 + $0x1150] ss:$48 sps:$4 sm:$0xff]  }
 0x1f4   :  { %4662 = vmatmul.mubr.bf16.vlgmr.msra.gmra.mrb[4].mxu0 %v15616_v10  ;;  %4826 = vmatmul.mubr.bf16.vlgmr.msra.gmra.mrb[4].mxu1 %v15616_v10 }
 0x1f5   :  { %4671 = vmatpush1.bf16.msra.mxu0 %v13544_v4  ;;  %4835 = vmatpush1.bf16.msra.mxu1 %v13547_v6  ;;  %v13631_v4 = vld [vmem:[#allocation2 + $0x1158] ss:$48 sps:$4 sm:$0xff]   ;;  %v13636_v6 = vld [vmem:[#allocation2 + $0x11b4] ss:$48 sps:$4 sm:$0xff]  }
 0x1f6   :  { %4672 = vmatprep.subr.bf16.mxu0 %v13552_v7  ;;  %4836 = vmatprep.subr.bf16.mxu1 %v13555_v8  ;;  %v13639_v7 = vld [vmem:[#allocation2 + $0x11bc] ss:$48 sps:$4 sm:$0xff]   ;;  %v13634_v8 = vld [vmem:[#allocation2 + $0x11b0] ss:$48 sps:$4 sm:$0xff]  }
 0x1f7   :  { %4702 = vmatprep.mubr.bf16.mxu0 %v15625_v15  ;;  %4866 = vmatprep.mubr.bf16.mxu1 %v15625_v15 }
 0x1f9   :  { %4673 = vmatpush1.bf16.msra.mxu0 %v13550_v9  ;;  %4837 = vmatpush1.bf16.msra.mxu1 %v13553_v11  ;;  %v13637_v9 = vld [vmem:[#allocation2 + $0x11b8] ss:$48 sps:$4 sm:$0xff]   ;;  %v13642_v11 = vld [vmem:[#allocation2 + $0x1214] ss:$48 sps:$4 sm:$0xff]  }
 0x1fa   :  { %4674 = vmatprep.subr.bf16.mxu0 %v13558_v12  ;;  %4838 = vmatprep.subr.bf16.mxu1 %v13561_v14  ;;  %v13645_v12 = vld [vmem:[#allocation2 + $0x121c] ss:$48 sps:$4 sm:$0xff]   ;;  %v13640_v14 = vld [vmem:[#allocation2 + $0x1210] ss:$48 sps:$4 sm:$0xff]  }
 0x1fd   :  { %4675 = vmatpush1.bf16.msra.mxu0 %v13556_v16  ;;  %4839 = vmatpush1.bf16.msra.mxu1 %v13559_v17  ;;  %v13643_v16 = vld [vmem:[#allocation2 + $0x1218] ss:$48 sps:$4 sm:$0xff]   ;;  %v13648_v17 = vld [vmem:[#allocation2 + $0x1274] ss:$48 sps:$4 sm:$0xff]  }
 0x1fe   :  { %4676 = vmatprep.subr.bf16.mxu0 %v13564_v18  ;;  %4840 = vmatprep.subr.bf16.mxu1 %v13567_v20  ;;  %v13651_v18 = vld [vmem:[#allocation2 + $0x127c] ss:$48 sps:$4 sm:$0xff]   ;;  %v13646_v20 = vld [vmem:[#allocation2 + $0x1270] ss:$48 sps:$4 sm:$0xff]  }
 0x201   :  { %4677 = vmatpush1.bf16.msra.mxu0 %v13562_v21  ;;  %4841 = vmatpush1.bf16.msra.mxu1 %v13565_v22  ;;  %v13649_v21 = vld [vmem:[#allocation2 + $0x1278] ss:$48 sps:$4 sm:$0xff]   ;;  %v13654_v22 = vld [vmem:[#allocation2 + $0x12d4] ss:$48 sps:$4 sm:$0xff]  }
 0x202   :  { %4678 = vmatprep.subr.bf16.mxu0 %v13570_v23  ;;  %4842 = vmatprep.subr.bf16.mxu1 %v13573_v24  ;;  %v13657_v23 = vld [vmem:[#allocation2 + $0x12dc] ss:$48 sps:$4 sm:$0xff]   ;;  %v13652_v24 = vld [vmem:[#allocation2 + $0x12d0] ss:$48 sps:$4 sm:$0xff]  }
 0x205   :  { %4679 = vmatpush1.bf16.msra.mxu0 %v13568_v25  ;;  %4843 = vmatpush1.bf16.msra.mxu1 %v13571_v13  ;;  %v13655_v25 = vld [vmem:[#allocation2 + $0x12d8] ss:$48 sps:$4 sm:$0xff]   ;;  %v13660_v13 = vld [vmem:[#allocation2 + $0x1334] ss:$48 sps:$4 sm:$0xff]  }
 0x206   :  { %4680 = vmatprep.subr.bf16.mxu0 %v13576_v27  ;;  %4844 = vmatprep.subr.bf16.mxu1 %v13579_v28  ;;  %v13663_v27 = vld [vmem:[#allocation2 + $0x133c] ss:$48 sps:$4 sm:$0xff]   ;;  %v13658_v28 = vld [vmem:[#allocation2 + $0x1330] ss:$48 sps:$4 sm:$0xff]  }
 0x209   :  { %4681 = vmatpush1.bf16.msra.mxu0 %v13574_v29  ;;  %4845 = vmatpush1.bf16.msra.mxu1 %v13577_v31  ;;  %v13661_v29 = vld [vmem:[#allocation2 + $0x1338] ss:$48 sps:$4 sm:$0xff]   ;;  %v13666_v31 = vld [vmem:[#allocation2 + $0x1394] ss:$48 sps:$4 sm:$0xff]  }
 0x20a   :  { %4682 = vmatprep.subr.bf16.mxu0 %v13582_v32  ;;  %4846 = vmatprep.subr.bf16.mxu1 %v13585_v33  ;;  %v13669_v32 = vld [vmem:[#allocation2 + $0x139c] ss:$48 sps:$4 sm:$0xff]   ;;  %v13664_v33 = vld [vmem:[#allocation2 + $0x1390] ss:$48 sps:$4 sm:$0xff]  }
 0x20d   :  { %4683 = vmatpush1.bf16.msra.mxu0 %v13580_v34  ;;  %4847 = vmatpush1.bf16.msra.mxu1 %v13583_v35  ;;  %v13667_v34 = vld [vmem:[#allocation2 + $0x1398] ss:$48 sps:$4 sm:$0xff]   ;;  %v13672_v35 = vld [vmem:[#allocation2 + $0x13f4] ss:$48 sps:$4 sm:$0xff]  }
 0x20e   :  { %4684 = vmatprep.subr.bf16.mxu0 %v13588_v36  ;;  %4848 = vmatprep.subr.bf16.mxu1 %v13591_v37  ;;  %v13675_v36 = vld [vmem:[#allocation2 + $0x13fc] ss:$48 sps:$4 sm:$0xff]   ;;  %v13670_v37 = vld [vmem:[#allocation2 + $0x13f0] ss:$48 sps:$4 sm:$0xff]  }
 0x211   :  { %4685 = vmatpush1.bf16.msra.mxu0 %v13586_v38  ;;  %4849 = vmatpush1.bf16.msra.mxu1 %v13589_v39  ;;  %v13673_v38 = vld [vmem:[#allocation2 + $0x13f8] ss:$48 sps:$4 sm:$0xff]   ;;  %v13678_v39 = vld [vmem:[#allocation2 + $0x1454] ss:$48 sps:$4 sm:$0xff]  }
 0x212   :  { %4686 = vmatprep.subr.bf16.mxu0 %v13594_v40  ;;  %4850 = vmatprep.subr.bf16.mxu1 %v13597_v41  ;;  %v13681_v40 = vld [vmem:[#allocation2 + $0x145c] ss:$48 sps:$4 sm:$0xff]  }
 0x215   :  { %4687 = vmatpush1.bf16.msra.mxu0 %v13592_v42  ;;  %4851 = vmatpush1.bf16.msra.mxu1 %v13595_v43 }
 0x216   :  { %4688 = vmatprep.subr.bf16.mxu0 %v13600_v44  ;;  %4852 = vmatprep.subr.bf16.mxu1 %v13603_v45 }
 0x219   :  { %4689 = vmatpush1.bf16.msra.mxu0 %v13598_v46  ;;  %4853 = vmatpush1.bf16.msra.mxu1 %v13601_v47  ;;  %v13676_v47 = vld [vmem:[#allocation2 + $0x1450] ss:$48 sps:$4 sm:$0xff]  }
 0x21a   :  { %4690 = vmatprep.subr.bf16.mxu0 %v13606_v49  ;;  %4854 = vmatprep.subr.bf16.mxu1 %v13609_v50  ;;  %v13679_v49 = vld [vmem:[#allocation2 + $0x1458] ss:$48 sps:$4 sm:$0xff]  }
 0x21d   :  { %4691 = vmatpush1.bf16.msra.mxu0 %v13604_v51  ;;  %4855 = vmatpush1.bf16.msra.mxu1 %v13607_v52  ;;  %v13684_v52 = vld [vmem:[#allocation2 + $0x14b4] ss:$48 sps:$4 sm:$0xff]  }
 0x21e   :  { %4692 = vmatprep.subr.bf16.mxu0 %v13612_v53  ;;  %4856 = vmatprep.subr.bf16.mxu1 %v13615_v54  ;;  %v13687_v53 = vld [vmem:[#allocation2 + $0x14bc] ss:$48 sps:$4 sm:$0xff]   ;;  %v13682_v54 = vld [vmem:[#allocation2 + $0x14b0] ss:$48 sps:$4 sm:$0xff]  }
 0x221   :  { %4693 = vmatpush1.bf16.msra.mxu0 %v13610_v55  ;;  %4857 = vmatpush1.bf16.msra.mxu1 %v13613_v56  ;;  %v13685_v55 = vld [vmem:[#allocation2 + $0x14b8] ss:$48 sps:$4 sm:$0xff]   ;;  %v13690_v56 = vld [vmem:[#allocation2 + $0x24] ss:$48 sps:$4 sm:$0xff]  }
 0x222   :  { %4694 = vmatprep.subr.bf16.mxu0 %v13618_v57  ;;  %4858 = vmatprep.subr.bf16.mxu1 %v13621_v58  ;;  %v13693_v57 = vld [vmem:[#allocation2 + $0x2c] ss:$48 sps:$4 sm:$0xff]   ;;  %v13688_v58 = vld [vmem:[#allocation2 + $0x20] ss:$48 sps:$4 sm:$0xff]  }
 0x225   :  { %4695 = vmatpush1.bf16.msra.mxu0 %v13616_v59  ;;  %4859 = vmatpush1.bf16.msra.mxu1 %v13619_v60  ;;  %v13691_v59 = vld [vmem:[#allocation2 + $0x28] ss:$48 sps:$4 sm:$0xff]   ;;  %v13696_v60 = vld [vmem:[#allocation2 + $0x84] ss:$48 sps:$4 sm:$0xff]  }
 0x226   :  { %4696 = vmatprep.subr.bf16.mxu0 %v13624_v61  ;;  %4860 = vmatprep.subr.bf16.mxu1 %v13627_v62  ;;  %v13699_v61 = vld [vmem:[#allocation2 + $0x8c] ss:$48 sps:$4 sm:$0xff]   ;;  %v15208_v62 = vld [vmem:[%s15879_s0 + $0x18] ss:$0 sps:$4 sm:$0xff]  }
 0x229   :  { %4697 = vmatpush1.bf16.msra.mxu0 %v13622_v63  ;;  %4861 = vmatpush1.bf16.msra.mxu1 %v13625_v0  ;;  %v13694_v63 = vld [vmem:[#allocation2 + $0x80] ss:$48 sps:$4 sm:$0xff]   ;;  %v13697_v0 = vld [vmem:[#allocation2 + $0x88] ss:$48 sps:$4 sm:$0xff]  }
 0x22a   :  { %4698 = vmatprep.subr.bf16.mxu0 %v13630_v1  ;;  %4862 = vmatprep.subr.bf16.mxu1 %v13633_v2  ;;  %v13702_v1 = vld [vmem:[#allocation2 + $0xe4] ss:$48 sps:$4 sm:$0xff]   ;;  %v13705_v2 = vld [vmem:[#allocation2 + $0xec] ss:$48 sps:$4 sm:$0xff]  }
 0x22d   :  { %4699 = vmatpush1.bf16.msra.mxu0 %v13628_v3  ;;  %4863 = vmatpush1.bf16.msra.mxu1 %v13631_v4  ;;  %v13700_v3 = vld [vmem:[#allocation2 + $0xe0] ss:$48 sps:$4 sm:$0xff]   ;;  %v13703_v4 = vld [vmem:[#allocation2 + $0xe8] ss:$48 sps:$4 sm:$0xff]  }
 0x22e   :  { %4700 = vmatprep.subr.bf16.mxu0 %v13636_v6  ;;  %4864 = vmatprep.subr.bf16.mxu1 %v13639_v7  ;;  %v13708_v6 = vld [vmem:[#allocation2 + $0x144] ss:$48 sps:$4 sm:$0xff]   ;;  %v13711_v7 = vld [vmem:[#allocation2 + $0x14c] ss:$48 sps:$4 sm:$0xff]  }
 0x231   :  { %4701 = vmatpush1.bf16.msra.mxu0 %v13634_v8  ;;  %4865 = vmatpush1.bf16.msra.mxu1 %v13637_v9  ;;  %v13706_v8 = vld [vmem:[#allocation2 + $0x140] ss:$48 sps:$4 sm:$0xff]   ;;  %v13709_v9 = vld [vmem:[#allocation2 + $0x148] ss:$48 sps:$4 sm:$0xff]  }
 0x232   :  { %4711 = vmatprep.subr.bf16.mxu0 %v13642_v11  ;;  %4875 = vmatprep.subr.bf16.mxu1 %v13645_v12  ;;  %v13714_v11 = vld [vmem:[#allocation2 + $0x1a4] ss:$48 sps:$4 sm:$0xff]   ;;  %v13717_v12 = vld [vmem:[#allocation2 + $0x1ac] ss:$48 sps:$4 sm:$0xff]  }
 0x234   :  { %4703 = vmatmul.mubr.bf16.vlgmr.msra.gmra.mrb[4].mxu0 %v15633_v19  ;;  %4867 = vmatmul.mubr.bf16.vlgmr.msra.gmra.mrb[4].mxu1 %v15633_v19 }
 0x235   :  { %4712 = vmatpush1.bf16.msra.mxu0 %v13640_v14  ;;  %4876 = vmatpush1.bf16.msra.mxu1 %v13643_v16  ;;  %v13712_v14 = vld [vmem:[#allocation2 + $0x1a0] ss:$48 sps:$4 sm:$0xff]   ;;  %v13720_v16 = vld [vmem:[#allocation2 + $0x204] ss:$48 sps:$4 sm:$0xff]  }
 0x236   :  { %4713 = vmatprep.subr.bf16.mxu0 %v13648_v17  ;;  %4877 = vmatprep.subr.bf16.mxu1 %v13651_v18  ;;  %v13723_v17 = vld [vmem:[#allocation2 + $0x20c] ss:$48 sps:$4 sm:$0xff]   ;;  %v13718_v18 = vld [vmem:[#allocation2 + $0x200] ss:$48 sps:$4 sm:$0xff]  }
 0x237   :  { %4743 = vmatprep.mubr.bf16.mxu0 %v15437_v26  ;;  %4907 = vmatprep.mubr.bf16.mxu1 %v15437_v26 }
 0x239   :  { %4714 = vmatpush1.bf16.msra.mxu0 %v13646_v20  ;;  %4878 = vmatpush1.bf16.msra.mxu1 %v13649_v21  ;;  %v13721_v20 = vld [vmem:[#allocation2 + $0x208] ss:$48 sps:$4 sm:$0xff]   ;;  %v13726_v21 = vld [vmem:[#allocation2 + $0x264] ss:$48 sps:$4 sm:$0xff]  }
 0x23a   :  { %4715 = vmatprep.subr.bf16.mxu0 %v13654_v22  ;;  %4879 = vmatprep.subr.bf16.mxu1 %v13657_v23  ;;  %v13729_v22 = vld [vmem:[#allocation2 + $0x26c] ss:$48 sps:$4 sm:$0xff]   ;;  %v13724_v23 = vld [vmem:[#allocation2 + $0x260] ss:$48 sps:$4 sm:$0xff]  }
 0x23d   :  { %4716 = vmatpush1.bf16.msra.mxu0 %v13652_v24  ;;  %4880 = vmatpush1.bf16.msra.mxu1 %v13655_v25  ;;  %v13727_v24 = vld [vmem:[#allocation2 + $0x268] ss:$48 sps:$4 sm:$0xff]   ;;  %v13732_v25 = vld [vmem:[#allocation2 + $0x2c4] ss:$48 sps:$4 sm:$0xff]  }
 0x23e   :  { %4717 = vmatprep.subr.bf16.mxu0 %v13660_v13  ;;  %4881 = vmatprep.subr.bf16.mxu1 %v13663_v27  ;;  %v13735_v13 = vld [vmem:[#allocation2 + $0x2cc] ss:$48 sps:$4 sm:$0xff]   ;;  %v13730_v27 = vld [vmem:[#allocation2 + $0x2c0] ss:$48 sps:$4 sm:$0xff]  }
 0x241   :  { %4718 = vmatpush1.bf16.msra.mxu0 %v13658_v28  ;;  %4882 = vmatpush1.bf16.msra.mxu1 %v13661_v29  ;;  %v13733_v28 = vld [vmem:[#allocation2 + $0x2c8] ss:$48 sps:$4 sm:$0xff]   ;;  %v13738_v29 = vld [vmem:[#allocation2 + $0x324] ss:$48 sps:$4 sm:$0xff]  }
 0x242   :  { %4719 = vmatprep.subr.bf16.mxu0 %v13666_v31  ;;  %4883 = vmatprep.subr.bf16.mxu1 %v13669_v32  ;;  %v13741_v31 = vld [vmem:[#allocation2 + $0x32c] ss:$48 sps:$4 sm:$0xff]   ;;  %v13736_v32 = vld [vmem:[#allocation2 + $0x320] ss:$48 sps:$4 sm:$0xff]  }
 0x245   :  { %4720 = vmatpush1.bf16.msra.mxu0 %v13664_v33  ;;  %4884 = vmatpush1.bf16.msra.mxu1 %v13667_v34  ;;  %v13739_v33 = vld [vmem:[#allocation2 + $0x328] ss:$48 sps:$4 sm:$0xff]   ;;  %v13744_v34 = vld [vmem:[#allocation2 + $0x384] ss:$48 sps:$4 sm:$0xff]  }
 0x246   :  { %4721 = vmatprep.subr.bf16.mxu0 %v13672_v35  ;;  %4885 = vmatprep.subr.bf16.mxu1 %v13675_v36  ;;  %v13747_v35 = vld [vmem:[#allocation2 + $0x38c] ss:$48 sps:$4 sm:$0xff]   ;;  %v13742_v36 = vld [vmem:[#allocation2 + $0x380] ss:$48 sps:$4 sm:$0xff]  }
 0x247   :  { %v15656_v41 = vpop.f32.mrb[0].mxu0  ;;  %v15658_v42 = vpop.f32.mrb[0].mxu1 }
 0x248   :  { %v15660_v43 = vpop.f32.mrb[1].mxu0  ;;  %v15662_v44 = vpop.f32.mrb[1].mxu1 }
 0x249   :  { %v4421_v45 = vpop.f32.mrb[2].mxu0  ;;  %4722 = vmatpush1.bf16.msra.mxu0 %v13670_v37  ;;  %4886 = vmatpush1.bf16.msra.mxu1 %v13673_v38  ;;  %v4585_v46 = vpop.f32.mrb[2].mxu1  ;;  %v13745_v37 = vld [vmem:[#allocation2 + $0x388] ss:$48 sps:$4 sm:$0xff]   ;;  %v13750_v38 = vld [vmem:[#allocation2 + $0x3e4] ss:$48 sps:$4 sm:$0xff]  }
 0x24a   :  { %v4422_v50 = vpop.f32.mrb[3].mxu0  ;;  %4723 = vmatprep.subr.bf16.mxu0 %v13678_v39  ;;  %4887 = vmatprep.subr.bf16.mxu1 %v13681_v40  ;;  %v4586_v51 = vpop.f32.mrb[3].mxu1  ;;  %v13753_v39 = vld [vmem:[#allocation2 + $0x3ec] ss:$48 sps:$4 sm:$0xff]   ;;  %v13748_v40 = vld [vmem:[#allocation2 + $0x3e0] ss:$48 sps:$4 sm:$0xff]  }
 0x24b   :  { %v13751_v45 = vld [vmem:[#allocation2 + $0x3e8] ss:$48 sps:$4 sm:$0xff]   ;;  %v13756_v46 = vld [vmem:[#allocation2 + $0x444] ss:$48 sps:$4 sm:$0xff]  }
 0x24c   :  { %v13757_v50 = vld [vmem:[#allocation2 + $0x448] ss:$48 sps:$4 sm:$0xff]   ;;  %v13762_v51 = vld [vmem:[#allocation2 + $0x4a4] ss:$48 sps:$4 sm:$0xff]  }
 0x24d   :  { %4724 = vmatpush1.bf16.msra.mxu0 %v13676_v47  ;;  %4888 = vmatpush1.bf16.msra.mxu1 %v13679_v49  ;;  %v13759_v47 = vld [vmem:[#allocation2 + $0x44c] ss:$48 sps:$4 sm:$0xff]   ;;  %v13754_v49 = vld [vmem:[#allocation2 + $0x440] ss:$48 sps:$4 sm:$0xff]  }
 0x24e   :  { %4725 = vmatprep.subr.bf16.mxu0 %v13684_v52  ;;  %4889 = vmatprep.subr.bf16.mxu1 %v13687_v53  ;;  %v13765_v52 = vld [vmem:[#allocation2 + $0x4ac] ss:$48 sps:$4 sm:$0xff]   ;;  %v13760_v53 = vld [vmem:[#allocation2 + $0x4a0] ss:$48 sps:$4 sm:$0xff]  }
 0x251   :  { %4726 = vmatpush1.bf16.msra.mxu0 %v13682_v54  ;;  %4890 = vmatpush1.bf16.msra.mxu1 %v13685_v55  ;;  %v13763_v54 = vld [vmem:[#allocation2 + $0x4a8] ss:$48 sps:$4 sm:$0xff]   ;;  %v13768_v55 = vld [vmem:[#allocation2 + $0x504] ss:$48 sps:$4 sm:$0xff]  }
 0x252   :  { %4916 = vmatprep.subr.bf16.mxu0 %v13690_v56  ;;  %5080 = vmatprep.subr.bf16.mxu1 %v13693_v57  ;;  %v13771_v56 = vld [vmem:[#allocation2 + $0x50c] ss:$48 sps:$4 sm:$0xff]   ;;  %v13766_v57 = vld [vmem:[#allocation2 + $0x500] ss:$48 sps:$4 sm:$0xff]  }
 0x254   :  { %4744 = vmatmul.mubr.bf16.vlgmr.msra.gmra.mrb[4].mxu0 %v15208_v62  ;;  %4908 = vmatmul.mubr.bf16.vlgmr.msra.gmra.mrb[4].mxu1 %v15208_v62  ;;  %v13775_v62 = vld [vmem:[#allocation2 + $0x568] ss:$48 sps:$4 sm:$0xff]  }
 0x255   :  { %4917 = vmatpush1.bf16.msra.mxu0 %v13688_v58  ;;  %5081 = vmatpush1.bf16.msra.mxu1 %v13691_v59  ;;  %v13769_v58 = vld [vmem:[#allocation2 + $0x508] ss:$48 sps:$4 sm:$0xff]   ;;  %v13774_v59 = vld [vmem:[#allocation2 + $0x564] ss:$48 sps:$4 sm:$0xff]  }
 0x256   :  { %4918 = vmatprep.subr.bf16.mxu0 %v13696_v60  ;;  %5082 = vmatprep.subr.bf16.mxu1 %v13699_v61  ;;  %v13777_v60 = vld [vmem:[#allocation2 + $0x56c] ss:$48 sps:$4 sm:$0xff]   ;;  %v13772_v61 = vld [vmem:[#allocation2 + $0x560] ss:$48 sps:$4 sm:$0xff]  }
 0x257   :  { %4948 = vmatprep.mubr.bf16.mxu0 %v15595_v48  ;;  %5112 = vmatprep.mubr.bf16.mxu1 %v15595_v48  ;;  %v13715_v48 = vld [vmem:[#allocation2 + $0x1a8] ss:$48 sps:$4 sm:$0xff]  }
 0x259   :  { %4919 = vmatpush1.bf16.msra.mxu0 %v13694_v63  ;;  %5083 = vmatpush1.bf16.msra.mxu1 %v13697_v0  ;;  %v13780_v63 = vld [vmem:[#allocation2 + $0x5c4] ss:$48 sps:$4 sm:$0xff]   ;;  %v13783_v0 = vld [vmem:[#allocation2 + $0x5cc] ss:$48 sps:$4 sm:$0xff]  }
 0x25a   :  { %4920 = vmatprep.subr.bf16.mxu0 %v13702_v1  ;;  %5084 = vmatprep.subr.bf16.mxu1 %v13705_v2  ;;  %v13778_v1 = vld [vmem:[#allocation2 + $0x5c0] ss:$48 sps:$4 sm:$0xff]   ;;  %v13781_v2 = vld [vmem:[#allocation2 + $0x5c8] ss:$48 sps:$4 sm:$0xff]  }
 0x25d   :  { %4921 = vmatpush1.bf16.msra.mxu0 %v13700_v3  ;;  %5085 = vmatpush1.bf16.msra.mxu1 %v13703_v4  ;;  %v13786_v3 = vld [vmem:[#allocation2 + $0x624] ss:$48 sps:$4 sm:$0xff]   ;;  %v13789_v4 = vld [vmem:[#allocation2 + $0x62c] ss:$48 sps:$4 sm:$0xff]  }
 0x25e   :  { %4922 = vmatprep.subr.bf16.mxu0 %v13708_v6  ;;  %5086 = vmatprep.subr.bf16.mxu1 %v13711_v7  ;;  %v13784_v6 = vld [vmem:[#allocation2 + $0x620] ss:$48 sps:$4 sm:$0xff]   ;;  %v13787_v7 = vld [vmem:[#allocation2 + $0x628] ss:$48 sps:$4 sm:$0xff]  }
 0x261   :  { %4923 = vmatpush1.bf16.msra.mxu0 %v13706_v8  ;;  %5087 = vmatpush1.bf16.msra.mxu1 %v13709_v9  ;;  %v13792_v8 = vld [vmem:[#allocation2 + $0x684] ss:$48 sps:$4 sm:$0xff]   ;;  %v13795_v9 = vld [vmem:[#allocation2 + $0x68c] ss:$48 sps:$4 sm:$0xff]  }
 0x262   :  { %4924 = vmatprep.subr.bf16.mxu0 %v13714_v11  ;;  %5088 = vmatprep.subr.bf16.mxu1 %v13717_v12  ;;  %v13790_v11 = vld [vmem:[#allocation2 + $0x680] ss:$48 sps:$4 sm:$0xff]   ;;  %v13793_v12 = vld [vmem:[#allocation2 + $0x688] ss:$48 sps:$4 sm:$0xff]  }
 0x265   :  { %4925 = vmatpush1.bf16.msra.mxu0 %v13712_v14  ;;  %5089 = vmatpush1.bf16.msra.mxu1 %v13715_v48  ;;  %v13798_v14 = vld [vmem:[#allocation2 + $0x6e4] ss:$48 sps:$4 sm:$0xff]   ;;  %v13801_v48 = vld [vmem:[#allocation2 + $0x6ec] ss:$48 sps:$4 sm:$0xff]  }
 0x266   :  { %4926 = vmatprep.subr.bf16.mxu0 %v13720_v16  ;;  %5090 = vmatprep.subr.bf16.mxu1 %v13723_v17  ;;  %v13796_v16 = vld [vmem:[#allocation2 + $0x6e0] ss:$48 sps:$4 sm:$0xff]   ;;  %v13799_v17 = vld [vmem:[#allocation2 + $0x6e8] ss:$48 sps:$4 sm:$0xff]  }
 0x269   :  { %4927 = vmatpush1.bf16.msra.mxu0 %v13718_v18  ;;  %5091 = vmatpush1.bf16.msra.mxu1 %v13721_v20  ;;  %v13804_v18 = vld [vmem:[#allocation2 + $0x744] ss:$48 sps:$4 sm:$0xff]   ;;  %v13802_v20 = vld [vmem:[#allocation2 + $0x740] ss:$48 sps:$4 sm:$0xff]  }
 0x26a   :  { %4928 = vmatprep.subr.bf16.mxu0 %v13726_v21  ;;  %5092 = vmatprep.subr.bf16.mxu1 %v13729_v22  ;;  %v13805_v21 = vld [vmem:[#allocation2 + $0x748] ss:$48 sps:$4 sm:$0xff]   ;;  %v13810_v22 = vld [vmem:[#allocation2 + $0x7a4] ss:$48 sps:$4 sm:$0xff]  }
 0x26d   :  { %4929 = vmatpush1.bf16.msra.mxu0 %v13724_v23  ;;  %5093 = vmatpush1.bf16.msra.mxu1 %v13727_v24  ;;  %v13813_v23 = vld [vmem:[#allocation2 + $0x7ac] ss:$48 sps:$4 sm:$0xff]   ;;  %v13808_v24 = vld [vmem:[#allocation2 + $0x7a0] ss:$48 sps:$4 sm:$0xff]  }
 0x26e   :  { %4930 = vmatprep.subr.bf16.mxu0 %v13732_v25  ;;  %5094 = vmatprep.subr.bf16.mxu1 %v13735_v13  ;;  %v13816_v25 = vld [vmem:[#allocation2 + $0x804] ss:$48 sps:$4 sm:$0xff]   ;;  %v13819_v13 = vld [vmem:[#allocation2 + $0x80c] ss:$48 sps:$4 sm:$0xff]  }
 0x271   :  { %4931 = vmatpush1.bf16.msra.mxu0 %v13730_v27  ;;  %5095 = vmatpush1.bf16.msra.mxu1 %v13733_v28  ;;  %v13814_v27 = vld [vmem:[#allocation2 + $0x800] ss:$48 sps:$4 sm:$0xff]   ;;  %v13817_v28 = vld [vmem:[#allocation2 + $0x808] ss:$48 sps:$4 sm:$0xff]  }
 0x272   :  { %4932 = vmatprep.subr.bf16.mxu0 %v13738_v29  ;;  %5096 = vmatprep.subr.bf16.mxu1 %v13741_v31  ;;  %v13822_v29 = vld [vmem:[#allocation2 + $0x864] ss:$48 sps:$4 sm:$0xff]   ;;  %v13825_v31 = vld [vmem:[#allocation2 + $0x86c] ss:$48 sps:$4 sm:$0xff]  }
 0x275   :  { %4933 = vmatpush1.bf16.msra.mxu0 %v13736_v32  ;;  %5097 = vmatpush1.bf16.msra.mxu1 %v13739_v33  ;;  %v13820_v32 = vld [vmem:[#allocation2 + $0x860] ss:$48 sps:$4 sm:$0xff]   ;;  %v13823_v33 = vld [vmem:[#allocation2 + $0x868] ss:$48 sps:$4 sm:$0xff]  }
 0x276   :  { %4934 = vmatprep.subr.bf16.mxu0 %v13744_v34  ;;  %5098 = vmatprep.subr.bf16.mxu1 %v13747_v35  ;;  %v13828_v34 = vld [vmem:[#allocation2 + $0x8c4] ss:$48 sps:$4 sm:$0xff]   ;;  %v13831_v35 = vld [vmem:[#allocation2 + $0x8cc] ss:$48 sps:$4 sm:$0xff]  }
 0x279   :  { %4935 = vmatpush1.bf16.msra.mxu0 %v13742_v36  ;;  %5099 = vmatpush1.bf16.msra.mxu1 %v13745_v37  ;;  %v13826_v36 = vld [vmem:[#allocation2 + $0x8c0] ss:$48 sps:$4 sm:$0xff]   ;;  %v13829_v37 = vld [vmem:[#allocation2 + $0x8c8] ss:$48 sps:$4 sm:$0xff]  }
 0x27a   :  { %4936 = vmatprep.subr.bf16.mxu0 %v13750_v38  ;;  %5100 = vmatprep.subr.bf16.mxu1 %v13753_v39  ;;  %v13834_v38 = vld [vmem:[#allocation2 + $0x924] ss:$48 sps:$4 sm:$0xff]   ;;  %v13837_v39 = vld [vmem:[#allocation2 + $0x92c] ss:$48 sps:$4 sm:$0xff]  }
 0x27d   :  { %4937 = vmatpush1.bf16.msra.mxu0 %v13748_v40  ;;  %5101 = vmatpush1.bf16.msra.mxu1 %v13751_v45  ;;  %v13832_v40 = vld [vmem:[#allocation2 + $0x920] ss:$48 sps:$4 sm:$0xff]   ;;  %v13835_v45 = vld [vmem:[#allocation2 + $0x928] ss:$48 sps:$4 sm:$0xff]  }
 0x27e   :  { %4938 = vmatprep.subr.bf16.mxu0 %v13756_v46  ;;  %5102 = vmatprep.subr.bf16.mxu1 %v13759_v47  ;;  %v13840_v46 = vld [vmem:[#allocation2 + $0x984] ss:$48 sps:$4 sm:$0xff]   ;;  %v13843_v47 = vld [vmem:[#allocation2 + $0x98c] ss:$48 sps:$4 sm:$0xff]  }
 0x281   :  { %4939 = vmatpush1.bf16.msra.mxu0 %v13754_v49  ;;  %5103 = vmatpush1.bf16.msra.mxu1 %v13757_v50  ;;  %v13838_v49 = vld [vmem:[#allocation2 + $0x980] ss:$48 sps:$4 sm:$0xff]   ;;  %v13841_v50 = vld [vmem:[#allocation2 + $0x988] ss:$48 sps:$4 sm:$0xff]  }
 0x282   :  { %4940 = vmatprep.subr.bf16.mxu0 %v13762_v51  ;;  %5104 = vmatprep.subr.bf16.mxu1 %v13765_v52  ;;  %v13846_v51 = vld [vmem:[#allocation2 + $0x9e4] ss:$48 sps:$4 sm:$0xff]   ;;  %v13849_v52 = vld [vmem:[#allocation2 + $0x9ec] ss:$48 sps:$4 sm:$0xff]  }
 0x285   :  { %4941 = vmatpush1.bf16.msra.mxu0 %v13760_v53  ;;  %5105 = vmatpush1.bf16.msra.mxu1 %v13763_v54  ;;  %v13844_v53 = vld [vmem:[#allocation2 + $0x9e0] ss:$48 sps:$4 sm:$0xff]   ;;  %v13847_v54 = vld [vmem:[#allocation2 + $0x9e8] ss:$48 sps:$4 sm:$0xff]  }
 0x286   :  { %4942 = vmatprep.subr.bf16.mxu0 %v13768_v55  ;;  %5106 = vmatprep.subr.bf16.mxu1 %v13771_v56  ;;  %v13852_v55 = vld [vmem:[#allocation2 + $0xa44] ss:$48 sps:$4 sm:$0xff]   ;;  %v13855_v56 = vld [vmem:[#allocation2 + $0xa4c] ss:$48 sps:$4 sm:$0xff]  }
 0x289   :  { %4943 = vmatpush1.bf16.msra.mxu0 %v13766_v57  ;;  %5107 = vmatpush1.bf16.msra.mxu1 %v13769_v58  ;;  %v13850_v57 = vld [vmem:[#allocation2 + $0xa40] ss:$48 sps:$4 sm:$0xff]   ;;  %v13853_v58 = vld [vmem:[#allocation2 + $0xa48] ss:$48 sps:$4 sm:$0xff]  }
 0x28a   :  { %4944 = vmatprep.subr.bf16.mxu0 %v13774_v59  ;;  %5108 = vmatprep.subr.bf16.mxu1 %v13777_v60  ;;  %v13858_v59 = vld [vmem:[#allocation2 + $0xaa4] ss:$48 sps:$4 sm:$0xff]   ;;  %v13861_v60 = vld [vmem:[#allocation2 + $0xaac] ss:$48 sps:$4 sm:$0xff]  }
 0x28d   :  { %4945 = vmatpush1.bf16.msra.mxu0 %v13772_v61  ;;  %5109 = vmatpush1.bf16.msra.mxu1 %v13775_v62  ;;  %v13856_v61 = vld [vmem:[#allocation2 + $0xaa0] ss:$48 sps:$4 sm:$0xff]   ;;  %v13859_v62 = vld [vmem:[#allocation2 + $0xaa8] ss:$48 sps:$4 sm:$0xff]  }
 0x28e   :  { %4946 = vmatprep.subr.bf16.mxu0 %v13780_v63  ;;  %5110 = vmatprep.subr.bf16.mxu1 %v13783_v0  ;;  %v13864_v63 = vld [vmem:[#allocation2 + $0xb04] ss:$48 sps:$4 sm:$0xff]   ;;  %v13867_v0 = vld [vmem:[#allocation2 + $0xb0c] ss:$48 sps:$4 sm:$0xff]  }
 0x291   :  { %4947 = vmatpush1.bf16.msra.mxu0 %v13778_v1  ;;  %5111 = vmatpush1.bf16.msra.mxu1 %v13781_v2  ;;  %v13862_v1 = vld [vmem:[#allocation2 + $0xb00] ss:$48 sps:$4 sm:$0xff]   ;;  %v13865_v2 = vld [vmem:[#allocation2 + $0xb08] ss:$48 sps:$4 sm:$0xff]  }
 0x292   :  { %4957 = vmatprep.subr.bf16.mxu0 %v13786_v3  ;;  %5121 = vmatprep.subr.bf16.mxu1 %v13789_v4  ;;  %v13870_v3 = vld [vmem:[#allocation2 + $0xb64] ss:$48 sps:$4 sm:$0xff]   ;;  %v13873_v4 = vld [vmem:[#allocation2 + $0xb6c] ss:$48 sps:$4 sm:$0xff]  }
 0x294   :  { %4949 = vmatmul.mubr.bf16.vlgmr.msra.gmra.mrb[8].mxu0 %v15599_v5  ;;  %5113 = vmatmul.mubr.bf16.vlgmr.msra.gmra.mrb[8].mxu1 %v15599_v5  ;;  %v13807_v5 = vld [vmem:[#allocation2 + $0x74c] ss:$48 sps:$4 sm:$0xff]  }
 0x295   :  { %4958 = vmatpush1.bf16.msra.mxu0 %v13784_v6  ;;  %5122 = vmatpush1.bf16.msra.mxu1 %v13787_v7  ;;  %v13868_v6 = vld [vmem:[#allocation2 + $0xb60] ss:$48 sps:$4 sm:$0xff]   ;;  %v13871_v7 = vld [vmem:[#allocation2 + $0xb68] ss:$48 sps:$4 sm:$0xff]  }
 0x296   :  { %4959 = vmatprep.subr.bf16.mxu0 %v13792_v8  ;;  %5123 = vmatprep.subr.bf16.mxu1 %v13795_v9  ;;  %v13876_v8 = vld [vmem:[#allocation2 + $0xbc4] ss:$48 sps:$4 sm:$0xff]   ;;  %v13879_v9 = vld [vmem:[#allocation2 + $0xbcc] ss:$48 sps:$4 sm:$0xff]  }
 0x297   :  { %4989 = vmatprep.mubr.bf16.mxu0 %v15610_v30  ;;  %5153 = vmatprep.mubr.bf16.mxu1 %v15610_v30  ;;  %v13811_v30 = vld [vmem:[#allocation2 + $0x7a8] ss:$48 sps:$4 sm:$0xff]  }
 0x299   :  { %4960 = vmatpush1.bf16.msra.mxu0 %v13790_v11  ;;  %5124 = vmatpush1.bf16.msra.mxu1 %v13793_v12  ;;  %v13874_v11 = vld [vmem:[#allocation2 + $0xbc0] ss:$48 sps:$4 sm:$0xff]   ;;  %v13877_v12 = vld [vmem:[#allocation2 + $0xbc8] ss:$48 sps:$4 sm:$0xff]  }
 0x29a   :  { %4961 = vmatprep.subr.bf16.mxu0 %v13798_v14  ;;  %5125 = vmatprep.subr.bf16.mxu1 %v13801_v48  ;;  %v13882_v14 = vld [vmem:[#allocation2 + $0xc24] ss:$48 sps:$4 sm:$0xff]   ;;  %v13885_v48 = vld [vmem:[#allocation2 + $0xc2c] ss:$48 sps:$4 sm:$0xff]  }
 0x29d   :  { %4962 = vmatpush1.bf16.msra.mxu0 %v13796_v16  ;;  %5126 = vmatpush1.bf16.msra.mxu1 %v13799_v17  ;;  %v13880_v16 = vld [vmem:[#allocation2 + $0xc20] ss:$48 sps:$4 sm:$0xff]   ;;  %v13883_v17 = vld [vmem:[#allocation2 + $0xc28] ss:$48 sps:$4 sm:$0xff]  }
 0x29e   :  { %4963 = vmatprep.subr.bf16.mxu0 %v13804_v18  ;;  %5127 = vmatprep.subr.bf16.mxu1 %v13807_v5  ;;  %v13888_v18 = vld [vmem:[#allocation2 + $0xc84] ss:$48 sps:$4 sm:$0xff]   ;;  %v13891_v5 = vld [vmem:[#allocation2 + $0xc8c] ss:$48 sps:$4 sm:$0xff]  }
 0x2a1   :  { %4964 = vmatpush1.bf16.msra.mxu0 %v13802_v20  ;;  %5128 = vmatpush1.bf16.msra.mxu1 %v13805_v21  ;;  %v13886_v20 = vld [vmem:[#allocation2 + $0xc80] ss:$48 sps:$4 sm:$0xff]   ;;  %v13889_v21 = vld [vmem:[#allocation2 + $0xc88] ss:$48 sps:$4 sm:$0xff]  }
 0x2a2   :  { %4965 = vmatprep.subr.bf16.mxu0 %v13810_v22  ;;  %5129 = vmatprep.subr.bf16.mxu1 %v13813_v23  ;;  %v13894_v22 = vld [vmem:[#allocation2 + $0xce4] ss:$48 sps:$4 sm:$0xff]   ;;  %v13897_v23 = vld [vmem:[#allocation2 + $0xcec] ss:$48 sps:$4 sm:$0xff]  }
 0x2a5   :  { %4966 = vmatpush1.bf16.msra.mxu0 %v13808_v24  ;;  %5130 = vmatpush1.bf16.msra.mxu1 %v13811_v30  ;;  %v13892_v24 = vld [vmem:[#allocation2 + $0xce0] ss:$48 sps:$4 sm:$0xff]   ;;  %v13895_v30 = vld [vmem:[#allocation2 + $0xce8] ss:$48 sps:$4 sm:$0xff]  }
 0x2a6   :  { %4967 = vmatprep.subr.bf16.mxu0 %v13816_v25  ;;  %5131 = vmatprep.subr.bf16.mxu1 %v13819_v13  ;;  %v13900_v25 = vld [vmem:[#allocation2 + $0xd44] ss:$48 sps:$4 sm:$0xff]   ;;  %v13903_v13 = vld [vmem:[#allocation2 + $0xd4c] ss:$48 sps:$4 sm:$0xff]  }
 0x2a9   :  { %4968 = vmatpush1.bf16.msra.mxu0 %v13814_v27  ;;  %5132 = vmatpush1.bf16.msra.mxu1 %v13817_v28  ;;  %v13898_v27 = vld [vmem:[#allocation2 + $0xd40] ss:$48 sps:$4 sm:$0xff]   ;;  %v13906_v28 = vld [vmem:[#allocation2 + $0xda4] ss:$48 sps:$4 sm:$0xff]  }
 0x2aa   :  { %4969 = vmatprep.subr.bf16.mxu0 %v13822_v29  ;;  %5133 = vmatprep.subr.bf16.mxu1 %v13825_v31  ;;  %v13909_v29 = vld [vmem:[#allocation2 + $0xdac] ss:$48 sps:$4 sm:$0xff]   ;;  %v13904_v31 = vld [vmem:[#allocation2 + $0xda0] ss:$48 sps:$4 sm:$0xff]  }
 0x2ad   :  { %4970 = vmatpush1.bf16.msra.mxu0 %v13820_v32  ;;  %5134 = vmatpush1.bf16.msra.mxu1 %v13823_v33  ;;  %v13907_v32 = vld [vmem:[#allocation2 + $0xda8] ss:$48 sps:$4 sm:$0xff]   ;;  %v13915_v33 = vld [vmem:[#allocation2 + $0xe0c] ss:$48 sps:$4 sm:$0xff]  }
 0x2ae   :  { %4971 = vmatprep.subr.bf16.mxu0 %v13828_v34  ;;  %5135 = vmatprep.subr.bf16.mxu1 %v13831_v35  ;;  %v13910_v34 = vld [vmem:[#allocation2 + $0xe00] ss:$48 sps:$4 sm:$0xff]   ;;  %v13913_v35 = vld [vmem:[#allocation2 + $0xe08] ss:$48 sps:$4 sm:$0xff]  }
 0x2b1   :  { %4972 = vmatpush1.bf16.msra.mxu0 %v13826_v36  ;;  %5136 = vmatpush1.bf16.msra.mxu1 %v13829_v37  ;;  %v13918_v36 = vld [vmem:[#allocation2 + $0xe64] ss:$48 sps:$4 sm:$0xff]   ;;  %v13921_v37 = vld [vmem:[#allocation2 + $0xe6c] ss:$48 sps:$4 sm:$0xff]  }
 0x2b2   :  { %4973 = vmatprep.subr.bf16.mxu0 %v13834_v38  ;;  %5137 = vmatprep.subr.bf16.mxu1 %v13837_v39  ;;  %v13916_v38 = vld [vmem:[#allocation2 + $0xe60] ss:$48 sps:$4 sm:$0xff]   ;;  %v13919_v39 = vld [vmem:[#allocation2 + $0xe68] ss:$48 sps:$4 sm:$0xff]  }
 0x2b5   :  { %4974 = vmatpush1.bf16.msra.mxu0 %v13832_v40  ;;  %5138 = vmatpush1.bf16.msra.mxu1 %v13835_v45  ;;  %v13924_v40 = vld [vmem:[#allocation2 + $0xec4] ss:$48 sps:$4 sm:$0xff]   ;;  %v13927_v45 = vld [vmem:[#allocation2 + $0xecc] ss:$48 sps:$4 sm:$0xff]  }
 0x2b6   :  { %4975 = vmatprep.subr.bf16.mxu0 %v13840_v46  ;;  %5139 = vmatprep.subr.bf16.mxu1 %v13843_v47  ;;  %v13922_v46 = vld [vmem:[#allocation2 + $0xec0] ss:$48 sps:$4 sm:$0xff]   ;;  %v13925_v47 = vld [vmem:[#allocation2 + $0xec8] ss:$48 sps:$4 sm:$0xff]  }
 0x2b9   :  { %4976 = vmatpush1.bf16.msra.mxu0 %v13838_v49  ;;  %5140 = vmatpush1.bf16.msra.mxu1 %v13841_v50  ;;  %v13930_v49 = vld [vmem:[#allocation2 + $0xf24] ss:$48 sps:$4 sm:$0xff]   ;;  %v13933_v50 = vld [vmem:[#allocation2 + $0xf2c] ss:$48 sps:$4 sm:$0xff]  }
 0x2ba   :  { %4977 = vmatprep.subr.bf16.mxu0 %v13846_v51  ;;  %5141 = vmatprep.subr.bf16.mxu1 %v13849_v52  ;;  %v13928_v51 = vld [vmem:[#allocation2 + $0xf20] ss:$48 sps:$4 sm:$0xff]   ;;  %v13931_v52 = vld [vmem:[#allocation2 + $0xf28] ss:$48 sps:$4 sm:$0xff]  }
 0x2bd   :  { %4978 = vmatpush1.bf16.msra.mxu0 %v13844_v53  ;;  %5142 = vmatpush1.bf16.msra.mxu1 %v13847_v54  ;;  %v13936_v53 = vld [vmem:[#allocation2 + $0xf84] ss:$48 sps:$4 sm:$0xff]   ;;  %v13939_v54 = vld [vmem:[#allocation2 + $0xf8c] ss:$48 sps:$4 sm:$0xff]  }
 0x2be   :  { %4979 = vmatprep.subr.bf16.mxu0 %v13852_v55  ;;  %5143 = vmatprep.subr.bf16.mxu1 %v13855_v56  ;;  %v13934_v55 = vld [vmem:[#allocation2 + $0xf80] ss:$48 sps:$4 sm:$0xff]   ;;  %v13937_v56 = vld [vmem:[#allocation2 + $0xf88] ss:$48 sps:$4 sm:$0xff]  }
 0x2c1   :  { %4980 = vmatpush1.bf16.msra.mxu0 %v13850_v57  ;;  %5144 = vmatpush1.bf16.msra.mxu1 %v13853_v58  ;;  %v13942_v57 = vld [vmem:[#allocation2 + $0xfe4] ss:$48 sps:$4 sm:$0xff]   ;;  %v13945_v58 = vld [vmem:[#allocation2 + $0xfec] ss:$48 sps:$4 sm:$0xff]  }
 0x2c2   :  { %4981 = vmatprep.subr.bf16.mxu0 %v13858_v59  ;;  %5145 = vmatprep.subr.bf16.mxu1 %v13861_v60  ;;  %v13940_v59 = vld [vmem:[#allocation2 + $0xfe0] ss:$48 sps:$4 sm:$0xff]   ;;  %v13943_v60 = vld [vmem:[#allocation2 + $0xfe8] ss:$48 sps:$4 sm:$0xff]  }
 0x2c5   :  { %4982 = vmatpush1.bf16.msra.mxu0 %v13856_v61  ;;  %5146 = vmatpush1.bf16.msra.mxu1 %v13859_v62  ;;  %v13948_v61 = vld [vmem:[#allocation2 + $0x1044] ss:$48 sps:$4 sm:$0xff]   ;;  %v13951_v62 = vld [vmem:[#allocation2 + $0x104c] ss:$48 sps:$4 sm:$0xff]  }
 0x2c6   :  { %4983 = vmatprep.subr.bf16.mxu0 %v13864_v63  ;;  %5147 = vmatprep.subr.bf16.mxu1 %v13867_v0  ;;  %v13946_v63 = vld [vmem:[#allocation2 + $0x1040] ss:$48 sps:$4 sm:$0xff]   ;;  %v13949_v0 = vld [vmem:[#allocation2 + $0x1048] ss:$48 sps:$4 sm:$0xff]  }
 0x2c9   :  { %4984 = vmatpush1.bf16.msra.mxu0 %v13862_v1  ;;  %5148 = vmatpush1.bf16.msra.mxu1 %v13865_v2  ;;  %v13954_v1 = vld [vmem:[#allocation2 + $0x10a4] ss:$48 sps:$4 sm:$0xff]   ;;  %v13957_v2 = vld [vmem:[#allocation2 + $0x10ac] ss:$48 sps:$4 sm:$0xff]  }
 0x2ca   :  { %4985 = vmatprep.subr.bf16.mxu0 %v13870_v3  ;;  %5149 = vmatprep.subr.bf16.mxu1 %v13873_v4  ;;  %v13952_v3 = vld [vmem:[#allocation2 + $0x10a0] ss:$48 sps:$4 sm:$0xff]   ;;  %v13955_v4 = vld [vmem:[#allocation2 + $0x10a8] ss:$48 sps:$4 sm:$0xff]  }
 0x2cd   :  { %4986 = vmatpush1.bf16.msra.mxu0 %v13868_v6  ;;  %5150 = vmatpush1.bf16.msra.mxu1 %v13871_v7  ;;  %v13960_v6 = vld [vmem:[#allocation2 + $0x1104] ss:$48 sps:$4 sm:$0xff]   ;;  %v13963_v7 = vld [vmem:[#allocation2 + $0x110c] ss:$48 sps:$4 sm:$0xff]  }
 0x2ce   :  { %4987 = vmatprep.subr.bf16.mxu0 %v13876_v8  ;;  %5151 = vmatprep.subr.bf16.mxu1 %v13879_v9  ;;  %v13958_v8 = vld [vmem:[#allocation2 + $0x1100] ss:$48 sps:$4 sm:$0xff]   ;;  %v13961_v9 = vld [vmem:[#allocation2 + $0x1108] ss:$48 sps:$4 sm:$0xff]  }
 0x2d1   :  { %4988 = vmatpush1.bf16.msra.mxu0 %v13874_v11  ;;  %5152 = vmatpush1.bf16.msra.mxu1 %v13877_v12  ;;  %v13966_v11 = vld [vmem:[#allocation2 + $0x1164] ss:$48 sps:$4 sm:$0xff]   ;;  %v13969_v12 = vld [vmem:[#allocation2 + $0x116c] ss:$48 sps:$4 sm:$0xff]  }
 0x2d2   :  { %4998 = vmatprep.subr.bf16.mxu0 %v13882_v14  ;;  %5162 = vmatprep.subr.bf16.mxu1 %v13885_v48  ;;  %v13964_v14 = vld [vmem:[#allocation2 + $0x1160] ss:$48 sps:$4 sm:$0xff]   ;;  %v13967_v48 = vld [vmem:[#allocation2 + $0x1168] ss:$48 sps:$4 sm:$0xff]  }
 0x2d4   :  { %4990 = vmatmul.mubr.bf16.vlgmr.msra.gmra.mrb[8].mxu0 %v15616_v10  ;;  %5154 = vmatmul.mubr.bf16.vlgmr.msra.gmra.mrb[8].mxu1 %v15616_v10  ;;  %v13901_v10 = vld [vmem:[#allocation2 + $0xd48] ss:$48 sps:$4 sm:$0xff]  }
 0x2d5   :  { %4999 = vmatpush1.bf16.msra.mxu0 %v13880_v16  ;;  %5163 = vmatpush1.bf16.msra.mxu1 %v13883_v17  ;;  %v13972_v16 = vld [vmem:[#allocation2 + $0x11c4] ss:$48 sps:$4 sm:$0xff]   ;;  %v13975_v17 = vld [vmem:[#allocation2 + $0x11cc] ss:$48 sps:$4 sm:$0xff]  }
 0x2d6   :  { %5000 = vmatprep.subr.bf16.mxu0 %v13888_v18  ;;  %5164 = vmatprep.subr.bf16.mxu1 %v13891_v5  ;;  %v13970_v18 = vld [vmem:[#allocation2 + $0x11c0] ss:$48 sps:$4 sm:$0xff]   ;;  %v13973_v5 = vld [vmem:[#allocation2 + $0x11c8] ss:$48 sps:$4 sm:$0xff]  }
 0x2d7   :  { %5030 = vmatprep.mubr.bf16.mxu0 %v15625_v15  ;;  %5194 = vmatprep.mubr.bf16.mxu1 %v15625_v15  ;;  %v13912_v15 = vld [vmem:[#allocation2 + $0xe04] ss:$48 sps:$4 sm:$0xff]  }
 0x2d9   :  { %5001 = vmatpush1.bf16.msra.mxu0 %v13886_v20  ;;  %5165 = vmatpush1.bf16.msra.mxu1 %v13889_v21  ;;  %v13978_v20 = vld [vmem:[#allocation2 + $0x1224] ss:$48 sps:$4 sm:$0xff]   ;;  %v13981_v21 = vld [vmem:[#allocation2 + $0x122c] ss:$48 sps:$4 sm:$0xff]  }
 0x2da   :  { %5002 = vmatprep.subr.bf16.mxu0 %v13894_v22  ;;  %5166 = vmatprep.subr.bf16.mxu1 %v13897_v23  ;;  %v13976_v22 = vld [vmem:[#allocation2 + $0x1220] ss:$48 sps:$4 sm:$0xff]   ;;  %v13979_v23 = vld [vmem:[#allocation2 + $0x1228] ss:$48 sps:$4 sm:$0xff]  }
 0x2dd   :  { %5003 = vmatpush1.bf16.msra.mxu0 %v13892_v24  ;;  %5167 = vmatpush1.bf16.msra.mxu1 %v13895_v30  ;;  %v13984_v24 = vld [vmem:[#allocation2 + $0x1284] ss:$48 sps:$4 sm:$0xff]   ;;  %v13987_v30 = vld [vmem:[#allocation2 + $0x128c] ss:$48 sps:$4 sm:$0xff]  }
 0x2de   :  { %5004 = vmatprep.subr.bf16.mxu0 %v13900_v25  ;;  %5168 = vmatprep.subr.bf16.mxu1 %v13903_v13  ;;  %v13982_v25 = vld [vmem:[#allocation2 + $0x1280] ss:$48 sps:$4 sm:$0xff]   ;;  %v13985_v13 = vld [vmem:[#allocation2 + $0x1288] ss:$48 sps:$4 sm:$0xff]  }
 0x2e1   :  { %5005 = vmatpush1.bf16.msra.mxu0 %v13898_v27  ;;  %5169 = vmatpush1.bf16.msra.mxu1 %v13901_v10  ;;  %v13990_v27 = vld [vmem:[#allocation2 + $0x12e4] ss:$48 sps:$4 sm:$0xff]   ;;  %v13993_v10 = vld [vmem:[#allocation2 + $0x12ec] ss:$48 sps:$4 sm:$0xff]  }
 0x2e2   :  { %5006 = vmatprep.subr.bf16.mxu0 %v13906_v28  ;;  %5170 = vmatprep.subr.bf16.mxu1 %v13909_v29  ;;  %v13988_v28 = vld [vmem:[#allocation2 + $0x12e0] ss:$48 sps:$4 sm:$0xff]   ;;  %v13991_v29 = vld [vmem:[#allocation2 + $0x12e8] ss:$48 sps:$4 sm:$0xff]  }
 0x2e5   :  { %5007 = vmatpush1.bf16.msra.mxu0 %v13904_v31  ;;  %5171 = vmatpush1.bf16.msra.mxu1 %v13907_v32  ;;  %v13996_v31 = vld [vmem:[#allocation2 + $0x1344] ss:$48 sps:$4 sm:$0xff]   ;;  %v13999_v32 = vld [vmem:[#allocation2 + $0x134c] ss:$48 sps:$4 sm:$0xff]  }
 0x2e6   :  { %5008 = vmatprep.subr.bf16.mxu0 %v13912_v15  ;;  %5172 = vmatprep.subr.bf16.mxu1 %v13915_v33  ;;  %v815_v15 = vlaneseq  ;;  %v13997_v33 = vld [vmem:[#allocation2 + $0x1348] ss:$48 sps:$4 sm:$0xff]  }
 0x2e9   :  { %5009 = vmatpush1.bf16.msra.mxu0 %v13910_v34  ;;  %5173 = vmatpush1.bf16.msra.mxu1 %v13913_v35  ;;  %v14002_v34 = vld [vmem:[#allocation2 + $0x13a4] ss:$48 sps:$4 sm:$0xff]   ;;  %v14005_v35 = vld [vmem:[#allocation2 + $0x13ac] ss:$48 sps:$4 sm:$0xff]  }
 0x2ea   :  { %5010 = vmatprep.subr.bf16.mxu0 %v13918_v36  ;;  %5174 = vmatprep.subr.bf16.mxu1 %v13921_v37  ;;  %v15681_v36 = vshrl.u32 %v815_v15, 7  ;;  %v14000_v37 = vld [vmem:[#allocation2 + $0x13a0] ss:$48 sps:$4 sm:$0xff]  }
 0x2eb   :  { %v14065_v15 = vld [vmem:[#allocation7 + $0x12c] ss:$24 sps:$4 sm:$0xff]  }
 0x2ed   :  { %5011 = vmatpush1.bf16.msra.mxu0 %v13916_v38  ;;  %5175 = vmatpush1.bf16.msra.mxu1 %v13919_v39  ;;  %v14003_v38 = vld [vmem:[#allocation2 + $0x13a8] ss:$48 sps:$4 sm:$0xff]   ;;  %v14008_v39 = vld [vmem:[#allocation2 + $0x1404] ss:$48 sps:$4 sm:$0xff]  }
 0x2ee   :  { %5012 = vmatprep.subr.bf16.mxu0 %v13924_v40  ;;  %5176 = vmatprep.subr.bf16.mxu1 %v13927_v45  ;;  %v14011_v40 = vld [vmem:[#allocation2 + $0x140c] ss:$48 sps:$4 sm:$0xff]   ;;  %v15686_v45 = vsub.s32 1, %v15681_v36 }
 0x2f1   :  { %5013 = vmatpush1.bf16.msra.mxu0 %v13922_v46  ;;  %5177 = vmatpush1.bf16.msra.mxu1 %v13925_v47  ;;  %v14006_v46 = vld [vmem:[#allocation2 + $0x1400] ss:$48 sps:$4 sm:$0xff]   ;;  %v14009_v47 = vld [vmem:[#allocation2 + $0x1408] ss:$48 sps:$4 sm:$0xff]  }
 0x2f2   :  { %5014 = vmatprep.subr.bf16.mxu0 %v13930_v49  ;;  %5178 = vmatprep.subr.bf16.mxu1 %v13933_v50  ;;  %v14014_v49 = vld [vmem:[#allocation2 + $0x1464] ss:$48 sps:$4 sm:$0xff]   ;;  %v14017_v50 = vld [vmem:[#allocation2 + $0x146c] ss:$48 sps:$4 sm:$0xff]  }
 0x2f5   :  { %5015 = vmatpush1.bf16.msra.mxu0 %v13928_v51  ;;  %5179 = vmatpush1.bf16.msra.mxu1 %v13931_v52 }
 0x2f6   :  { %5016 = vmatprep.subr.bf16.mxu0 %v13936_v53  ;;  %5180 = vmatprep.subr.bf16.mxu1 %v13939_v54  ;;  %v14012_v54 = vld [vmem:[#allocation2 + $0x1460] ss:$48 sps:$4 sm:$0xff]  }
 0x2f9   :  { %5017 = vmatpush1.bf16.msra.mxu0 %v13934_v55  ;;  %5181 = vmatpush1.bf16.msra.mxu1 %v13937_v56  ;;  %v14015_v55 = vld [vmem:[#allocation2 + $0x1468] ss:$48 sps:$4 sm:$0xff]  }
 0x2fa   :  { %5018 = vmatprep.subr.bf16.mxu0 %v13942_v57  ;;  %5182 = vmatprep.subr.bf16.mxu1 %v13945_v58 }
 0x2fd   :  { %5019 = vmatpush1.bf16.msra.mxu0 %v13940_v59  ;;  %5183 = vmatpush1.bf16.msra.mxu1 %v13943_v60 }
 0x2fe   :  { %5020 = vmatprep.subr.bf16.mxu0 %v13948_v61  ;;  %5184 = vmatprep.subr.bf16.mxu1 %v13951_v62  ;;  %v14020_v62 = vld [vmem:[#allocation2 + $0x14c4] ss:$48 sps:$4 sm:$0xff]  }
 0x301   :  { %5021 = vmatpush1.bf16.msra.mxu0 %v13946_v63  ;;  %5185 = vmatpush1.bf16.msra.mxu1 %v13949_v0  ;;  %v14023_v63 = vld [vmem:[#allocation2 + $0x14cc] ss:$48 sps:$4 sm:$0xff]  }
 0x302   :  { %5022 = vmatprep.subr.bf16.mxu0 %v13954_v1  ;;  %5186 = vmatprep.subr.bf16.mxu1 %v13957_v2  ;;  %v14018_v1 = vld [vmem:[#allocation2 + $0x14c0] ss:$48 sps:$4 sm:$0xff]   ;;  %v14021_v2 = vld [vmem:[#allocation2 + $0x14c8] ss:$48 sps:$4 sm:$0xff]  }
 0x305   :  { %5023 = vmatpush1.bf16.msra.mxu0 %v13952_v3  ;;  %5187 = vmatpush1.bf16.msra.mxu1 %v13955_v4  ;;  %v14026_v3 = vld [vmem:[#allocation7 + $0x4] ss:$24 sps:$4 sm:$0xff]  }
 0x306   :  { %5024 = vmatprep.subr.bf16.mxu0 %v13960_v6  ;;  %5188 = vmatprep.subr.bf16.mxu1 %v13963_v7  ;;  %v14029_v4 = vld [vmem:[#allocation7 + $0xc] ss:$24 sps:$4 sm:$0xff]   ;;  %v14024_v7 = vld [vmem:[#allocation7] ss:$24 sps:$4 sm:$0xff]  }
 0x309   :  { %5025 = vmatpush1.bf16.msra.mxu0 %v13958_v8  ;;  %5189 = vmatpush1.bf16.msra.mxu1 %v13961_v9  ;;  %v14027_v8 = vld [vmem:[#allocation7 + $0x8] ss:$24 sps:$4 sm:$0xff]   ;;  %v14032_v9 = vld [vmem:[#allocation7 + $0x34] ss:$24 sps:$4 sm:$0xff]  }
 0x30a   :  { %5026 = vmatprep.subr.bf16.mxu0 %v13966_v11  ;;  %5190 = vmatprep.subr.bf16.mxu1 %v13969_v12  ;;  %v14035_v11 = vld [vmem:[#allocation7 + $0x3c] ss:$24 sps:$4 sm:$0xff]  }
 0x30d   :  { %5027 = vmatpush1.bf16.msra.mxu0 %v13964_v14  ;;  %5191 = vmatpush1.bf16.msra.mxu1 %v13967_v48  ;;  %v14030_v14 = vld [vmem:[#allocation7 + $0x30] ss:$24 sps:$4 sm:$0xff]  }
 0x30e   :  { %5028 = vmatprep.subr.bf16.mxu0 %v13972_v16  ;;  %5192 = vmatprep.subr.bf16.mxu1 %v13975_v17  ;;  %v14033_v48 = vld [vmem:[#allocation7 + $0x38] ss:$24 sps:$4 sm:$0xff]   ;;  %v14038_v16 = vld [vmem:[#allocation7 + $0x64] ss:$24 sps:$4 sm:$0xff]  }
 0x30f   :  { %v14041_v17 = vld [vmem:[#allocation7 + $0x6c] ss:$24 sps:$4 sm:$0xff]  }
 0x311   :  { %5029 = vmatpush1.bf16.msra.mxu0 %v13970_v18  ;;  %5193 = vmatpush1.bf16.msra.mxu1 %v13973_v5  ;;  %v14036_v18 = vld [vmem:[#allocation7 + $0x60] ss:$24 sps:$4 sm:$0xff]  }
 0x312   :  { %5039 = vmatprep.subr.bf16.mxu0 %v13978_v20  ;;  %5203 = vmatprep.subr.bf16.mxu1 %v13981_v21  ;;  %v14039_v5 = vld [vmem:[#allocation7 + $0x68] ss:$24 sps:$4 sm:$0xff]   ;;  %v14044_v20 = vld [vmem:[#allocation7 + $0x94] ss:$24 sps:$4 sm:$0xff]  }
 0x313   :  { %v14042_v21 = vld [vmem:[#allocation7 + $0x90] ss:$24 sps:$4 sm:$0xff]  }
 0x314   :  { %5031 = vmatmul.mubr.bf16.vlgmr.msra.gmra.mrb[8].mxu0 %v15633_v19  ;;  %5195 = vmatmul.mubr.bf16.vlgmr.msra.gmra.mrb[8].mxu1 %v15633_v19  ;;  %v13994_v19 = vld [vmem:[#allocation2 + $0x1340] ss:$48 sps:$4 sm:$0xff]  }
 0x315   :  { %5040 = vmatpush1.bf16.msra.mxu0 %v13976_v22  ;;  %5204 = vmatpush1.bf16.msra.mxu1 %v13979_v23  ;;  %v14047_v22 = vld [vmem:[#allocation7 + $0x9c] ss:$24 sps:$4 sm:$0xff]   ;;  %v14045_v23 = vld [vmem:[#allocation7 + $0x98] ss:$24 sps:$4 sm:$0xff]  }
 0x316   :  { %5041 = vmatprep.subr.bf16.mxu0 %v13984_v24  ;;  %5205 = vmatprep.subr.bf16.mxu1 %v13987_v30  ;;  %v14050_v24 = vld [vmem:[#allocation7 + $0xc4] ss:$24 sps:$4 sm:$0xff]   ;;  %v14048_v30 = vld [vmem:[#allocation7 + $0xc0] ss:$24 sps:$4 sm:$0xff]  }
 0x317   :  { %5071 = vmatprep.mubr.bf16.mxu0 %v15437_v26  ;;  %5235 = vmatprep.mubr.bf16.mxu1 %v15437_v26  ;;  %v15683_v26 = vld [vmem:[#allocation5] sm:$0xff] }
 0x318   :  { %v822_v51 = vrot.slane %v15683_v26, %v15686_v45 }
 0x319   :  { %5042 = vmatpush1.bf16.msra.mxu0 %v13982_v25  ;;  %5206 = vmatpush1.bf16.msra.mxu1 %v13985_v13  ;;  %v14053_v25 = vld [vmem:[#allocation7 + $0xcc] ss:$24 sps:$4 sm:$0xff]   ;;  %v14051_v13 = vld [vmem:[#allocation7 + $0xc8] ss:$24 sps:$4 sm:$0xff]  }
 0x31a   :  { %5043 = vmatprep.subr.bf16.mxu0 %v13990_v27  ;;  %5207 = vmatprep.subr.bf16.mxu1 %v13993_v10  ;;  %v12822_v0 = vadd.f32 %v15660_v43, %v822_v51  ;;  %v15209_v43 = vld [vmem:[%s15879_s0 + $0x18] ss:$0 sps:$4 sm:$0xff]   ;;  %v14054_v10 = vld [vmem:[#allocation7 + $0xf0] ss:$24 sps:$4 sm:$0xff]   ;;  %s15438_s0 = smov [#allocation16]  }
 0x31b   :  { %v14056_v27 = vld [vmem:[#allocation7 + $0xf4] ss:$24 sps:$4 sm:$0xff]   ;;  %v14081_v51 = vld [vmem:[#allocation7 + $0x1b8] ss:$24 sps:$4 sm:$0xff]   ;;  %s11284_s5 = sshll.u32 %s15438_s0, 4  ;;  %s11285_s5 = int_to_ptr.vmem [resolvable:$true] %s11284_s5 }
 0x31c   :  { %v5245_v6 = vmax.f32 %v12822_v0, 0.0  ;;  %v14098_v0 = vld [vmem:[#allocation7 + $0x244] ss:$24 sps:$4 sm:$0xff]   ;;  %s15387_s23 = scalar_lea.vmem %s11285_s5, 128  ;;  %p15392_p9 = scmp.lt.s32.totalorder %s11285_s5, %s11285_s5 }
 0x31d   :  { %5044 = vmatpush1.bf16.msra.mxu0 %v13988_v28  ;;  %5208 = vmatpush1.bf16.msra.mxu1 %v13991_v29  ;;  %v14059_v28 = vld [vmem:[#allocation7 + $0xfc] ss:$24 sps:$4 sm:$0xff]   ;;  %v14057_v29 = vld [vmem:[#allocation7 + $0xf8] ss:$24 sps:$4 sm:$0xff]   ;;  %p15388_p8 = scmp.ne.s32.totalorder %s11285_s5, %s15387_s23  ;;  %p15393_p10 = scmp.lt.s32.totalorder %s15387_s23, %s15387_s23 }
 0x31e   :  { %5045 = vmatprep.subr.bf16.mxu0 %v13996_v31  ;;  %5209 = vmatprep.subr.bf16.mxu1 %v13999_v32  ;;  %v15699_v12 = vpack.c.bf16 %v5245_v6, %v5245_v6  ;;  %v14062_v31 = vld [vmem:[#allocation7 + $0x124] ss:$24 sps:$4 sm:$0xff]   ;;  %v14060_v32 = vld [vmem:[#allocation7 + $0x120] ss:$24 sps:$4 sm:$0xff]   ;;  %v14104_v6 = vld [vmem:[#allocation7 + $0x274] ss:$24 sps:$4 sm:$0xff]  }
 0x31f   :  { %p15394_p11 = por %p15393_p10, %p15392_p9 }
 0x321   :  { %5046 = vmatpush1.bf16.msra.mxu0 %v13994_v19  ;;  %5210 = vmatpush1.bf16.msra.mxu1 %v13997_v33  ;;  %v14063_v19 = vld [vmem:[#allocation7 + $0x128] ss:$24 sps:$4 sm:$0xff]   ;;  %v14068_v33 = vld [vmem:[#allocation7 + $0x154] ss:$24 sps:$4 sm:$0xff]   ;;  %p15395_p12 = pnand %p15394_p11, %p15388_p8 }
 0x322   :  { %5047 = vmatprep.subr.bf16.mxu0 %v14002_v34  ;;  %5211 = vmatprep.subr.bf16.mxu1 %v14005_v35  ;;  %v14066_v34 = vld [vmem:[#allocation7 + $0x150] ss:$24 sps:$4 sm:$0xff]   ;;  %v14071_v35 = vld [vmem:[#allocation7 + $0x15c] ss:$24 sps:$4 sm:$0xff]  }
 0x325   :  { %5048 = vmatpush1.bf16.msra.mxu0 %v14000_v37  ;;  %5212 = vmatpush1.bf16.msra.mxu1 %v14003_v38  ;;  %v14069_v37 = vld [vmem:[#allocation7 + $0x158] ss:$24 sps:$4 sm:$0xff]   ;;  %v14074_v38 = vld [vmem:[#allocation7 + $0x184] ss:$24 sps:$4 sm:$0xff]  }
 0x326   :  { %5049 = vmatprep.subr.bf16.mxu0 %v14008_v39  ;;  %5213 = vmatprep.subr.bf16.mxu1 %v14011_v40  ;;  %v14072_v39 = vld [vmem:[#allocation7 + $0x180] ss:$24 sps:$4 sm:$0xff]   ;;  %v14077_v40 = vld [vmem:[#allocation7 + $0x18c] ss:$24 sps:$4 sm:$0xff]  }
 0x327   :  { %v15690_v52 = vpop.f32.mrb[4].mxu0  ;;  %v15692_v53 = vpop.f32.mrb[4].mxu1 }
 0x328   :  { %v15694_v56 = vpop.f32.mrb[5].mxu0  ;;  %v15696_v57 = vpop.f32.mrb[5].mxu1 }
 0x329   :  { %v4749_v58 = vpop.f32.mrb[6].mxu0  ;;  %5050 = vmatpush1.bf16.msra.mxu0 %v14006_v46  ;;  %5214 = vmatpush1.bf16.msra.mxu1 %v14009_v47  ;;  %v4913_v59 = vpop.f32.mrb[6].mxu1  ;;  %v14075_v46 = vld [vmem:[#allocation7 + $0x188] ss:$24 sps:$4 sm:$0xff]   ;;  %v14080_v47 = vld [vmem:[#allocation7 + $0x1b4] ss:$24 sps:$4 sm:$0xff]  }
 0x32a   :  { %v4750_v60 = vpop.f32.mrb[7].mxu0  ;;  %5051 = vmatprep.subr.bf16.mxu0 %v14014_v49  ;;  %5215 = vmatprep.subr.bf16.mxu1 %v14017_v50  ;;  %v4914_v61 = vpop.f32.mrb[7].mxu1  ;;  %v14078_v49 = vld [vmem:[#allocation7 + $0x1b0] ss:$24 sps:$4 sm:$0xff]   ;;  %v14083_v50 = vld [vmem:[#allocation7 + $0x1bc] ss:$24 sps:$4 sm:$0xff]  }
 0x32b   :  { %v14089_v58 = vld [vmem:[#allocation7 + $0x1ec] ss:$24 sps:$4 sm:$0xff]   ;;  %v14087_v59 = vld [vmem:[#allocation7 + $0x1e8] ss:$24 sps:$4 sm:$0xff]  }
 0x32c   :  { %v14092_v60 = vld [vmem:[#allocation7 + $0x214] ss:$24 sps:$4 sm:$0xff]   ;;  %v14090_v61 = vld [vmem:[#allocation7 + $0x210] ss:$24 sps:$4 sm:$0xff]  }
 0x32d   :  { %5052 = vmatpush1.bf16.msra.mxu0 %v14012_v54  ;;  %5216 = vmatpush1.bf16.msra.mxu1 %v14015_v55  ;;  %v14086_v54 = vld [vmem:[#allocation7 + $0x1e4] ss:$24 sps:$4 sm:$0xff]   ;;  %v14084_v55 = vld [vmem:[#allocation7 + $0x1e0] ss:$24 sps:$4 sm:$0xff]  }
 0x32e   :  { %5053 = vmatprep.subr.bf16.mxu0 %v14020_v62  ;;  %5217 = vmatprep.subr.bf16.mxu1 %v14023_v63  ;;  %v14095_v62 = vld [vmem:[#allocation7 + $0x21c] ss:$24 sps:$4 sm:$0xff]   ;;  %v14093_v63 = vld [vmem:[#allocation7 + $0x218] ss:$24 sps:$4 sm:$0xff]  }
 0x331   :  { %5054 = vmatpush1.bf16.msra.mxu0 %v14018_v1  ;;  %5218 = vmatpush1.bf16.msra.mxu1 %v14021_v2  ;;  %v14096_v1 = vld [vmem:[#allocation7 + $0x240] ss:$24 sps:$4 sm:$0xff]   ;;  %v14101_v2 = vld [vmem:[#allocation7 + $0x24c] ss:$24 sps:$4 sm:$0xff]  }
 0x332   :  { %8756 = vmatprep.subr.bf16.mxu0 %v14026_v3  ;;  %9002 = vmatprep.subr.bf16.mxu1 %v14029_v4  ;;  %v15707_v3 = vsub.s32 0, %v15681_v36  ;;  %v14099_v4 = vld [vmem:[#allocation7 + $0x248] ss:$24 sps:$4 sm:$0xff]  }
 0x334   :  { %5072 = vmatmul.mubr.bf16.vlgmr.msra.gmra.mrb[8].mxu0 %v15209_v43  ;;  %5236 = vmatmul.mubr.bf16.vlgmr.msra.gmra.mrb[8].mxu1 %v15209_v43  ;;  %v14105_v43 = vld [vmem:[#allocation7 + $0x278] ss:$24 sps:$4 sm:$0xff]  }
 0x335   :  { %8757 = vmatpush1.bf16.msra.mxu0 %v14024_v7  ;;  %8788 = vmatprep.mubr.bf16.mxu0 %v15699_v12  ;;  %v14102_v7 = vld [vmem:[#allocation7 + $0x270] ss:$24 sps:$4 sm:$0xff]  }
 0x336   :  { %9003 = vmatpush1.bf16.msra.mxu1 %v14027_v8  ;;  %9034 = vmatprep.mubr.bf16.mxu1 %v15699_v12  ;;  %v14107_v8 = vld [vmem:[#allocation7 + $0x27c] ss:$24 sps:$4 sm:$0xff]  }
 0x337   :  { %8758 = vmatprep.subr.bf16.mxu0 %v14032_v9  ;;  %9004 = vmatprep.subr.bf16.mxu1 %v14035_v11  ;;  %v15710_v9 = vsub.s32 3, %v15681_v36  ;;  %v818_v11 = vrot.slane %v15683_v26, %v15707_v3 }
 0x339   :  { %8759 = vmatpush1.bf16.msra.mxu0 %v14030_v14  ;;  %v14110_v14 = vld [vmem:[#allocation7 + $0x2a4] ss:$24 sps:$4 sm:$0xff]  }
 0x33a   :  { %9005 = vmatpush1.bf16.msra.mxu1 %v14033_v48  ;;  %8760 = vmatprep.subr.bf16.mxu0 %v14038_v16  ;;  %v14108_v48 = vld [vmem:[#allocation7 + $0x2a0] ss:$24 sps:$4 sm:$0xff]   ;;  %v14113_v16 = vld [vmem:[#allocation7 + $0x2ac] ss:$24 sps:$4 sm:$0xff]  }
 0x33b   :  { %9006 = vmatprep.subr.bf16.mxu1 %v14041_v17  ;;  %v830_v17 = vrot.slane %v15683_v26, %v15710_v9  ;;  %v14120_v26 = vld [vmem:[#allocation7 + $0x300] ss:$24 sps:$4 sm:$0xff]  }
 0x33d   :  { %8761 = vmatpush1.bf16.msra.mxu0 %v14036_v18  ;;  %v12821_v18 = vadd.f32 %v15656_v41, %v818_v11  ;;  %v14174_v11 = vld [vmem:[#allocation7 + $0x4b0] ss:$24 sps:$4 sm:$0xff]  }
 0x33e   :  { %9007 = vmatpush1.bf16.msra.mxu1 %v14039_v5  ;;  %8762 = vmatprep.subr.bf16.mxu0 %v14044_v20  ;;  %v14111_v5 = vld [vmem:[#allocation7 + $0x2a8] ss:$24 sps:$4 sm:$0xff]   ;;  %v14116_v20 = vld [vmem:[#allocation7 + $0x2d4] ss:$24 sps:$4 sm:$0xff]  }
 0x33f   :  { %9008 = vmatprep.subr.bf16.mxu1 %v14047_v22  ;;  %v14119_v22 = vld [vmem:[#allocation7 + $0x2dc] ss:$24 sps:$4 sm:$0xff]  }
 0x341   :  { %8763 = vmatpush1.bf16.msra.mxu0 %v14042_v21  ;;  %v14114_v21 = vld [vmem:[#allocation7 + $0x2d0] ss:$24 sps:$4 sm:$0xff]  }
 0x342   :  { %9009 = vmatpush1.bf16.msra.mxu1 %v14045_v23  ;;  %8764 = vmatprep.subr.bf16.mxu0 %v14050_v24  ;;  %v12824_v23 = vadd.f32 %v15662_v44, %v830_v17  ;;  %v5244_v24 = vmax.f32 %v12821_v18, 0.0  ;;  %v14126_v44 = vld [vmem:[#allocation7 + $0x330] ss:$24 sps:$4 sm:$0xff]   ;;  %v14185_v17 = vld [vmem:[#allocation7 + $0x4ec] ss:$24 sps:$4 sm:$0xff]  }
 0x343   :  { %9010 = vmatprep.subr.bf16.mxu1 %v14053_v25  ;;  %v14122_v25 = vld [vmem:[#allocation7 + $0x304] ss:$24 sps:$4 sm:$0xff]   ;;  %v14183_v18 = vld [vmem:[#allocation7 + $0x4e8] ss:$24 sps:$4 sm:$0xff]  }
 0x344   :  { %v5247_v41 = vmax.f32 %v12824_v23, 0.0  ;;  %v14194_v23 = vld [vmem:[#allocation7 + $0x544] ss:$24 sps:$4 sm:$0xff]  }
 0x345   :  { %8765 = vmatpush1.bf16.msra.mxu0 %v14048_v30  ;;  %v14117_v30 = vld [vmem:[#allocation7 + $0x2d8] ss:$24 sps:$4 sm:$0xff]  }
 0x346   :  { %9011 = vmatpush1.bf16.msra.mxu1 %v14051_v13  ;;  %8766 = vmatprep.subr.bf16.mxu0 %v14056_v27  ;;  %v14125_v13 = vld [vmem:[#allocation7 + $0x30c] ss:$24 sps:$4 sm:$0xff]   ;;  %v14123_v27 = vld [vmem:[#allocation7 + $0x308] ss:$24 sps:$4 sm:$0xff]  }
 0x347   :  { %9012 = vmatprep.subr.bf16.mxu1 %v14059_v28  ;;  %v15718_v28 = vpack.c.bf16 %v5244_v24, %v5244_v24  ;;  %v14192_v24 = vld [vmem:[#allocation7 + $0x540] ss:$24 sps:$4 sm:$0xff]  }
 0x349   :  { %8767 = vmatpush1.bf16.msra.mxu0 %v14054_v10  ;;  %v14128_v10 = vld [vmem:[#allocation7 + $0x334] ss:$24 sps:$4 sm:$0xff]  }
 0x34a   :  { %9013 = vmatpush1.bf16.msra.mxu1 %v14057_v29  ;;  %8768 = vmatprep.subr.bf16.mxu0 %v14062_v31  ;;  %v15720_v29 = vpack.c.bf16 %v5247_v41, %v5247_v41  ;;  %v14129_v31 = vld [vmem:[#allocation7 + $0x338] ss:$24 sps:$4 sm:$0xff]   ;;  %v14200_v41 = vld [vmem:[#allocation7 + $0x574] ss:$24 sps:$4 sm:$0xff]  }
 0x34b   :  { %9014 = vmatprep.subr.bf16.mxu1 %v14065_v15  ;;  %v14134_v15 = vld [vmem:[#allocation7 + $0x364] ss:$24 sps:$4 sm:$0xff]  }
 0x34d   :  { %8769 = vmatpush1.bf16.msra.mxu0 %v14060_v32  ;;  %v14131_v32 = vld [vmem:[#allocation7 + $0x33c] ss:$24 sps:$4 sm:$0xff]  }
 0x34e   :  { %9015 = vmatpush1.bf16.msra.mxu1 %v14063_v19  ;;  %8770 = vmatprep.subr.bf16.mxu0 %v14068_v33  ;;  %v14137_v19 = vld [vmem:[#allocation7 + $0x36c] ss:$24 sps:$4 sm:$0xff]   ;;  %v14132_v33 = vld [vmem:[#allocation7 + $0x360] ss:$24 sps:$4 sm:$0xff]  }
 0x34f   :  { %9016 = vmatprep.subr.bf16.mxu1 %v14071_v35  ;;  %v14140_v35 = vld [vmem:[#allocation7 + $0x394] ss:$24 sps:$4 sm:$0xff]  }
 0x351   :  { %8771 = vmatpush1.bf16.msra.mxu0 %v14066_v34  ;;  %v14135_v34 = vld [vmem:[#allocation7 + $0x368] ss:$24 sps:$4 sm:$0xff]  }
 0x352   :  { %9017 = vmatpush1.bf16.msra.mxu1 %v14069_v37  ;;  %8772 = vmatprep.subr.bf16.mxu0 %v14074_v38  ;;  %v14138_v37 = vld [vmem:[#allocation7 + $0x390] ss:$24 sps:$4 sm:$0xff]   ;;  %v14143_v38 = vld [vmem:[#allocation7 + $0x39c] ss:$24 sps:$4 sm:$0xff]  }
 0x353   :  { %9018 = vmatprep.subr.bf16.mxu1 %v14077_v40  ;;  %v14146_v40 = vld [vmem:[#allocation7 + $0x3c4] ss:$24 sps:$4 sm:$0xff]  }
 0x355   :  { %8773 = vmatpush1.bf16.msra.mxu0 %v14072_v39  ;;  %v14141_v39 = vld [vmem:[#allocation7 + $0x398] ss:$24 sps:$4 sm:$0xff]  }
 0x356   :  { %9019 = vmatpush1.bf16.msra.mxu1 %v14075_v46  ;;  %8774 = vmatprep.subr.bf16.mxu0 %v14080_v47  ;;  %v14144_v46 = vld [vmem:[#allocation7 + $0x3c0] ss:$24 sps:$4 sm:$0xff]   ;;  %v14149_v47 = vld [vmem:[#allocation7 + $0x3cc] ss:$24 sps:$4 sm:$0xff]  }
 0x357   :  { %9020 = vmatprep.subr.bf16.mxu1 %v14083_v50  ;;  %v14152_v50 = vld [vmem:[#allocation7 + $0x3f4] ss:$24 sps:$4 sm:$0xff]  }
 0x359   :  { %8775 = vmatpush1.bf16.msra.mxu0 %v14078_v49  ;;  %v14147_v49 = vld [vmem:[#allocation7 + $0x3c8] ss:$24 sps:$4 sm:$0xff]  }
 0x35a   :  { %9021 = vmatpush1.bf16.msra.mxu1 %v14081_v51  ;;  %8776 = vmatprep.subr.bf16.mxu0 %v14086_v54  ;;  %v14150_v51 = vld [vmem:[#allocation7 + $0x3f0] ss:$24 sps:$4 sm:$0xff]   ;;  %v14155_v54 = vld [vmem:[#allocation7 + $0x3fc] ss:$24 sps:$4 sm:$0xff]  }
 0x35b   :  { %9022 = vmatprep.subr.bf16.mxu1 %v14089_v58  ;;  %v14158_v58 = vld [vmem:[#allocation7 + $0x424] ss:$24 sps:$4 sm:$0xff]  }
 0x35d   :  { %8777 = vmatpush1.bf16.msra.mxu0 %v14084_v55  ;;  %v14153_v55 = vld [vmem:[#allocation7 + $0x3f8] ss:$24 sps:$4 sm:$0xff]  }
 0x35e   :  { %9023 = vmatpush1.bf16.msra.mxu1 %v14087_v59  ;;  %8778 = vmatprep.subr.bf16.mxu0 %v14092_v60  ;;  %v14161_v59 = vld [vmem:[#allocation7 + $0x42c] ss:$24 sps:$4 sm:$0xff]   ;;  %v14156_v60 = vld [vmem:[#allocation7 + $0x420] ss:$24 sps:$4 sm:$0xff]  }
 0x35f   :  { %9024 = vmatprep.subr.bf16.mxu1 %v14095_v62  ;;  %v14164_v62 = vld [vmem:[#allocation7 + $0x454] ss:$24 sps:$4 sm:$0xff]  }
 0x361   :  { %8779 = vmatpush1.bf16.msra.mxu0 %v14090_v61  ;;  %v14159_v61 = vld [vmem:[#allocation7 + $0x428] ss:$24 sps:$4 sm:$0xff]  }
 0x362   :  { %9025 = vmatpush1.bf16.msra.mxu1 %v14093_v63  ;;  %8780 = vmatprep.subr.bf16.mxu0 %v14098_v0  ;;  %v14167_v63 = vld [vmem:[#allocation7 + $0x45c] ss:$24 sps:$4 sm:$0xff]   ;;  %v14162_v0 = vld [vmem:[#allocation7 + $0x450] ss:$24 sps:$4 sm:$0xff]  }
 0x363   :  { %9026 = vmatprep.subr.bf16.mxu1 %v14101_v2  ;;  %v14170_v2 = vld [vmem:[#allocation7 + $0x484] ss:$24 sps:$4 sm:$0xff]  }
 0x365   :  { %8781 = vmatpush1.bf16.msra.mxu0 %v14096_v1  ;;  %v14165_v1 = vld [vmem:[#allocation7 + $0x458] ss:$24 sps:$4 sm:$0xff]  }
 0x366   :  { %9027 = vmatpush1.bf16.msra.mxu1 %v14099_v4  ;;  %8782 = vmatprep.subr.bf16.mxu0 %v14104_v6  ;;  %v14168_v4 = vld [vmem:[#allocation7 + $0x480] ss:$24 sps:$4 sm:$0xff]   ;;  %v14173_v6 = vld [vmem:[#allocation7 + $0x48c] ss:$24 sps:$4 sm:$0xff]  }
 0x367   :  { %9028 = vmatprep.subr.bf16.mxu1 %v14107_v8  ;;  %v14176_v8 = vld [vmem:[#allocation7 + $0x4b4] ss:$24 sps:$4 sm:$0xff]  }
 0x369   :  { %8783 = vmatpush1.bf16.msra.mxu0 %v14102_v7  ;;  %v14171_v7 = vld [vmem:[#allocation7 + $0x488] ss:$24 sps:$4 sm:$0xff]  }
 0x36a   :  { %9029 = vmatpush1.bf16.msra.mxu1 %v14105_v43  ;;  %8784 = vmatprep.subr.bf16.mxu0 %v14110_v14  ;;  %v14179_v43 = vld [vmem:[#allocation7 + $0x4bc] ss:$24 sps:$4 sm:$0xff]   ;;  %v14177_v14 = vld [vmem:[#allocation7 + $0x4b8] ss:$24 sps:$4 sm:$0xff]  }
 0x36b   :  { %9030 = vmatprep.subr.bf16.mxu1 %v14113_v16  ;;  %v14180_v16 = vld [vmem:[#allocation7 + $0x4e0] ss:$24 sps:$4 sm:$0xff]  }
 0x36d   :  { %8785 = vmatpush1.bf16.msra.mxu0 %v14108_v48  ;;  %v14182_v48 = vld [vmem:[#allocation7 + $0x4e4] ss:$24 sps:$4 sm:$0xff]  }
 0x36e   :  { %9031 = vmatpush1.bf16.msra.mxu1 %v14111_v5  ;;  %8786 = vmatprep.subr.bf16.mxu0 %v14116_v20  ;;  %v14188_v5 = vld [vmem:[#allocation7 + $0x514] ss:$24 sps:$4 sm:$0xff]   ;;  %v14186_v20 = vld [vmem:[#allocation7 + $0x510] ss:$24 sps:$4 sm:$0xff]  }
 0x36f   :  { %9032 = vmatprep.subr.bf16.mxu1 %v14119_v22  ;;  %v14189_v22 = vld [vmem:[#allocation7 + $0x518] ss:$24 sps:$4 sm:$0xff]  }
 0x371   :  { %8787 = vmatpush1.bf16.msra.mxu0 %v14114_v21  ;;  %v14191_v21 = vld [vmem:[#allocation7 + $0x51c] ss:$24 sps:$4 sm:$0xff]  }
 0x372   :  { %9033 = vmatpush1.bf16.msra.mxu1 %v14117_v30  ;;  %8797 = vmatprep.subr.bf16.mxu0 %v14122_v25  ;;  %v14197_v30 = vld [vmem:[#allocation7 + $0x54c] ss:$24 sps:$4 sm:$0xff]   ;;  %v15727_v25 = vsub.s32 2, %v15681_v36 }
 0x373   :  { %9043 = vmatprep.subr.bf16.mxu1 %v14125_v13  ;;  %v837_v13 = vsub.s32 5, %v15681_v36 }
 0x374   :  { %8789 = vmatmul.mubr.bf16.vlgmr.msra.gmra.mrb[12].mxu0 %v15718_v28 }
 0x375   :  { %9035 = vmatmul.mubr.bf16.vlgmr.msra.gmra.mrb[12].mxu1 %v15718_v28  ;;  %8798 = vmatpush1.bf16.msra.mxu0 %v14120_v26  ;;  %v14195_v26 = vld [vmem:[#allocation7 + $0x548] ss:$24 sps:$4 sm:$0xff]  }
 0x376   :  { %8829 = vmatprep.mubr.bf16.mxu0 %v15720_v29  ;;  %9044 = vmatpush1.bf16.msra.mxu1 %v14123_v27  ;;  %v14198_v27 = vld [vmem:[#allocation7 + $0x570] ss:$24 sps:$4 sm:$0xff]  }
 0x377   :  { %9075 = vmatprep.mubr.bf16.mxu1 %v15720_v29  ;;  %8799 = vmatprep.subr.bf16.mxu0 %v14128_v10  ;;  %v14203_v10 = vld [vmem:[#allocation7 + $0x57c] ss:$24 sps:$4 sm:$0xff]  }
 0x378   :  { %9045 = vmatprep.subr.bf16.mxu1 %v14131_v32 }
 0x379   :  { %8800 = vmatpush1.bf16.msra.mxu0 %v14126_v44  ;;  %v15730_v44 = vld [vmem:[#allocation5] sm:$0xff] }
 0x37a   :  { %9046 = vmatpush1.bf16.msra.mxu1 %v14129_v31  ;;  %8801 = vmatprep.subr.bf16.mxu0 %v14134_v15  ;;  %v826_v31 = vrot.slane %v15730_v44, %v15727_v25  ;;  %v838_v32 = vrot.slane %v15730_v44, %v837_v13  ;;  %v14201_v15 = vld [vmem:[#allocation7 + $0x578] ss:$24 sps:$4 sm:$0xff]  }
 0x37b   :  { %9047 = vmatprep.subr.bf16.mxu1 %v14137_v19  ;;  %v14206_v19 = vld [vmem:[#allocation7 + $0x5a4] ss:$24 sps:$4 sm:$0xff]  }
 0x37d   :  { %8802 = vmatpush1.bf16.msra.mxu0 %v14132_v33  ;;  %v14204_v33 = vld [vmem:[#allocation7 + $0x5a0] ss:$24 sps:$4 sm:$0xff]  }
 0x37e   :  { %9048 = vmatpush1.bf16.msra.mxu1 %v14135_v34  ;;  %8803 = vmatprep.subr.bf16.mxu0 %v14140_v35  ;;  %v14209_v34 = vld [vmem:[#allocation7 + $0x5ac] ss:$24 sps:$4 sm:$0xff]   ;;  %v12823_v35 = vadd.f32 %v15658_v42, %v826_v31  ;;  %v14219_v42 = vld [vmem:[#allocation7 + $0x608] ss:$24 sps:$4 sm:$0xff]  }
 0x37f   :  { %9049 = vmatprep.subr.bf16.mxu1 %v14143_v38  ;;  %v14207_v38 = vld [vmem:[#allocation7 + $0x5a8] ss:$24 sps:$4 sm:$0xff]  }
 0x380   :  { %v14264_v31 = vld [vmem:[#allocation7 + $0x780] ss:$24 sps:$4 sm:$0xff]  }
 0x381   :  { %8804 = vmatpush1.bf16.msra.mxu0 %v14138_v37  ;;  %v12826_v37 = vadd.f32 %v15694_v56, %v838_v32  ;;  %v14224_v56 = vld [vmem:[#allocation7 + $0x634] ss:$24 sps:$4 sm:$0xff]   ;;  %v14267_v32 = vld [vmem:[#allocation7 + $0x788] ss:$24 sps:$4 sm:$0xff]  }
 0x382   :  { %9050 = vmatpush1.bf16.msra.mxu1 %v14141_v39  ;;  %8805 = vmatprep.subr.bf16.mxu0 %v14146_v40  ;;  %v14212_v39 = vld [vmem:[#allocation7 + $0x5d4] ss:$24 sps:$4 sm:$0xff]   ;;  %v14210_v40 = vld [vmem:[#allocation7 + $0x5d0] ss:$24 sps:$4 sm:$0xff]  }
 0x383   :  { %9051 = vmatprep.subr.bf16.mxu1 %v14149_v47  ;;  %v5246_v47 = vmax.f32 %v12823_v35, 0.0  ;;  %v14278_v35 = vld [vmem:[#allocation7 + $0x7e4] ss:$24 sps:$4 sm:$0xff]  }
 0x385   :  { %8806 = vmatpush1.bf16.msra.mxu0 %v14144_v46  ;;  %v14215_v46 = vld [vmem:[#allocation7 + $0x5dc] ss:$24 sps:$4 sm:$0xff]  }
 0x386   :  { %9052 = vmatpush1.bf16.msra.mxu1 %v14147_v49  ;;  %8807 = vmatprep.subr.bf16.mxu0 %v14152_v50  ;;  %v5249_v49 = vmax.f32 %v12826_v37, 0.0  ;;  %v14213_v50 = vld [vmem:[#allocation7 + $0x5d8] ss:$24 sps:$4 sm:$0xff]   ;;  %v14281_v37 = vld [vmem:[#allocation7 + $0x7ec] ss:$24 sps:$4 sm:$0xff]  }
 0x387   :  { %9053 = vmatprep.subr.bf16.mxu1 %v14155_v54  ;;  %v14216_v54 = vld [vmem:[#allocation7 + $0x600] ss:$24 sps:$4 sm:$0xff]  }
 0x389   :  { %8808 = vmatpush1.bf16.msra.mxu0 %v14150_v51  ;;  %v14218_v51 = vld [vmem:[#allocation7 + $0x604] ss:$24 sps:$4 sm:$0xff]  }
 0x38a   :  { %9054 = vmatpush1.bf16.msra.mxu1 %v14153_v55  ;;  %8809 = vmatprep.subr.bf16.mxu0 %v14158_v58  ;;  %v14221_v55 = vld [vmem:[#allocation7 + $0x60c] ss:$24 sps:$4 sm:$0xff]   ;;  %v15739_v58 = vpack.c.bf16 %v5246_v47, %v5246_v47  ;;  %v14282_v47 = vld [vmem:[#allocation7 + $0x810] ss:$24 sps:$4 sm:$0xff]  }
 0x38b   :  { %9055 = vmatprep.subr.bf16.mxu1 %v14161_v59  ;;  %v15741_v59 = vpack.c.bf16 %v5249_v49, %v5249_v49  ;;  %v14285_v49 = vld [vmem:[#allocation7 + $0x818] ss:$24 sps:$4 sm:$0xff]  }
 0x38d   :  { %8810 = vmatpush1.bf16.msra.mxu0 %v14156_v60  ;;  %v14222_v60 = vld [vmem:[#allocation7 + $0x630] ss:$24 sps:$4 sm:$0xff]  }
 0x38e   :  { %9056 = vmatpush1.bf16.msra.mxu1 %v14159_v61  ;;  %8811 = vmatprep.subr.bf16.mxu0 %v14164_v62  ;;  %v14225_v61 = vld [vmem:[#allocation7 + $0x638] ss:$24 sps:$4 sm:$0xff]   ;;  %v14227_v62 = vld [vmem:[#allocation7 + $0x63c] ss:$24 sps:$4 sm:$0xff]  }
 0x38f   :  { %9057 = vmatprep.subr.bf16.mxu1 %v14167_v63  ;;  %v14230_v63 = vld [vmem:[#allocation7 + $0x664] ss:$24 sps:$4 sm:$0xff]  }
 0x391   :  { %8812 = vmatpush1.bf16.msra.mxu0 %v14162_v0  ;;  %v14233_v0 = vld [vmem:[#allocation7 + $0x66c] ss:$24 sps:$4 sm:$0xff]  }
 0x392   :  { %9058 = vmatpush1.bf16.msra.mxu1 %v14165_v1  ;;  %8813 = vmatprep.subr.bf16.mxu0 %v14170_v2  ;;  %v14228_v1 = vld [vmem:[#allocation7 + $0x660] ss:$24 sps:$4 sm:$0xff]  }
 0x393   :  { %9059 = vmatprep.subr.bf16.mxu1 %v14173_v6  ;;  %v14231_v2 = vld [vmem:[#allocation7 + $0x668] ss:$24 sps:$4 sm:$0xff]  }
 0x394   :  { %v14234_v6 = vld [vmem:[#allocation7 + $0x690] ss:$24 sps:$4 sm:$0xff]  }
 0x395   :  { %8814 = vmatpush1.bf16.msra.mxu0 %v14168_v4  ;;  %v14236_v4 = vld [vmem:[#allocation7 + $0x694] ss:$24 sps:$4 sm:$0xff]  }
 0x396   :  { %9060 = vmatpush1.bf16.msra.mxu1 %v14171_v7  ;;  %8815 = vmatprep.subr.bf16.mxu0 %v14176_v8  ;;  %v14239_v7 = vld [vmem:[#allocation7 + $0x69c] ss:$24 sps:$4 sm:$0xff]   ;;  %v14237_v8 = vld [vmem:[#allocation7 + $0x698] ss:$24 sps:$4 sm:$0xff]  }
 0x397   :  { %9061 = vmatprep.subr.bf16.mxu1 %v14179_v43  ;;  %v14240_v43 = vld [vmem:[#allocation7 + $0x6c0] ss:$24 sps:$4 sm:$0xff]  }
 0x399   :  { %8816 = vmatpush1.bf16.msra.mxu0 %v14174_v11  ;;  %v14242_v11 = vld [vmem:[#allocation7 + $0x6c4] ss:$24 sps:$4 sm:$0xff]  }
 0x39a   :  { %9062 = vmatpush1.bf16.msra.mxu1 %v14177_v14  ;;  %8817 = vmatprep.subr.bf16.mxu0 %v14182_v48  ;;  %v14245_v14 = vld [vmem:[#allocation7 + $0x6cc] ss:$24 sps:$4 sm:$0xff]   ;;  %v14243_v48 = vld [vmem:[#allocation7 + $0x6c8] ss:$24 sps:$4 sm:$0xff]  }
 0x39b   :  { %9063 = vmatprep.subr.bf16.mxu1 %v14185_v17  ;;  %v14246_v17 = vld [vmem:[#allocation7 + $0x6f0] ss:$24 sps:$4 sm:$0xff]  }
 0x39d   :  { %8818 = vmatpush1.bf16.msra.mxu0 %v14180_v16  ;;  %v14248_v16 = vld [vmem:[#allocation7 + $0x6f4] ss:$24 sps:$4 sm:$0xff]  }
 0x39e   :  { %9064 = vmatpush1.bf16.msra.mxu1 %v14183_v18  ;;  %8819 = vmatprep.subr.bf16.mxu0 %v14188_v5  ;;  %v14251_v18 = vld [vmem:[#allocation7 + $0x6fc] ss:$24 sps:$4 sm:$0xff]   ;;  %v14249_v5 = vld [vmem:[#allocation7 + $0x6f8] ss:$24 sps:$4 sm:$0xff]  }
 0x39f   :  { %9065 = vmatprep.subr.bf16.mxu1 %v14191_v21  ;;  %v14257_v21 = vld [vmem:[#allocation7 + $0x72c] ss:$24 sps:$4 sm:$0xff]  }
 0x3a1   :  { %8820 = vmatpush1.bf16.msra.mxu0 %v14186_v20  ;;  %v14254_v20 = vld [vmem:[#allocation7 + $0x724] ss:$24 sps:$4 sm:$0xff]  }
 0x3a2   :  { %9066 = vmatpush1.bf16.msra.mxu1 %v14189_v22  ;;  %8821 = vmatprep.subr.bf16.mxu0 %v14194_v23  ;;  %v14252_v22 = vld [vmem:[#allocation7 + $0x720] ss:$24 sps:$4 sm:$0xff]  }
 0x3a3   :  { %9067 = vmatprep.subr.bf16.mxu1 %v14197_v30  ;;  %v14255_v23 = vld [vmem:[#allocation7 + $0x728] ss:$24 sps:$4 sm:$0xff]   ;;  %v14263_v30 = vld [vmem:[#allocation7 + $0x75c] ss:$24 sps:$4 sm:$0xff]  }
 0x3a5   :  { %8822 = vmatpush1.bf16.msra.mxu0 %v14192_v24  ;;  %v14260_v24 = vld [vmem:[#allocation7 + $0x754] ss:$24 sps:$4 sm:$0xff]  }
 0x3a6   :  { %9068 = vmatpush1.bf16.msra.mxu1 %v14195_v26  ;;  %8823 = vmatprep.subr.bf16.mxu0 %v14200_v41  ;;  %v14258_v26 = vld [vmem:[#allocation7 + $0x750] ss:$24 sps:$4 sm:$0xff]  }
 0x3a7   :  { %9069 = vmatprep.subr.bf16.mxu1 %v14203_v10  ;;  %v14261_v41 = vld [vmem:[#allocation7 + $0x758] ss:$24 sps:$4 sm:$0xff]   ;;  %v14269_v10 = vld [vmem:[#allocation7 + $0x78c] ss:$24 sps:$4 sm:$0xff]  }
 0x3a9   :  { %8824 = vmatpush1.bf16.msra.mxu0 %v14198_v27  ;;  %v14266_v27 = vld [vmem:[#allocation7 + $0x784] ss:$24 sps:$4 sm:$0xff]  }
 0x3aa   :  { %9070 = vmatpush1.bf16.msra.mxu1 %v14201_v15  ;;  %8825 = vmatprep.subr.bf16.mxu0 %v14206_v19  ;;  %v14272_v15 = vld [vmem:[#allocation7 + $0x7b4] ss:$24 sps:$4 sm:$0xff]  }
 0x3ab   :  { %9071 = vmatprep.subr.bf16.mxu1 %v14209_v34  ;;  %v14275_v19 = vld [vmem:[#allocation7 + $0x7bc] ss:$24 sps:$4 sm:$0xff]   ;;  %v14273_v34 = vld [vmem:[#allocation7 + $0x7b8] ss:$24 sps:$4 sm:$0xff]  }
 0x3ad   :  { %8826 = vmatpush1.bf16.msra.mxu0 %v14204_v33  ;;  %v14270_v33 = vld [vmem:[#allocation7 + $0x7b0] ss:$24 sps:$4 sm:$0xff]  }
 0x3ae   :  { %9072 = vmatpush1.bf16.msra.mxu1 %v14207_v38  ;;  %8827 = vmatprep.subr.bf16.mxu0 %v14212_v39  ;;  %v14276_v38 = vld [vmem:[#allocation7 + $0x7e0] ss:$24 sps:$4 sm:$0xff]  }
 0x3af   :  { %9073 = vmatprep.subr.bf16.mxu1 %v14215_v46  ;;  %v14279_v39 = vld [vmem:[#allocation7 + $0x7e8] ss:$24 sps:$4 sm:$0xff]   ;;  %v14287_v46 = vld [vmem:[#allocation7 + $0x81c] ss:$24 sps:$4 sm:$0xff]  }
 0x3b1   :  { %8828 = vmatpush1.bf16.msra.mxu0 %v14210_v40  ;;  %v14284_v40 = vld [vmem:[#allocation7 + $0x814] ss:$24 sps:$4 sm:$0xff]  }
 0x3b2   :  { %9074 = vmatpush1.bf16.msra.mxu1 %v14213_v50  ;;  %8838 = vmatprep.subr.bf16.mxu0 %v14218_v51  ;;  %v14290_v50 = vld [vmem:[#allocation7 + $0x844] ss:$24 sps:$4 sm:$0xff]  }
 0x3b3   :  { %9084 = vmatprep.subr.bf16.mxu1 %v14221_v55  ;;  %v14293_v51 = vld [vmem:[#allocation7 + $0x84c] ss:$24 sps:$4 sm:$0xff]   ;;  %v833_v55 = vsub.s32 4, %v15681_v36 }
 0x3b4   :  { %8830 = vmatmul.mubr.bf16.vlgmr.msra.gmra.mrb[12].mxu0 %v15739_v58 }
 0x3b5   :  { %9076 = vmatmul.mubr.bf16.vlgmr.msra.gmra.mrb[12].mxu1 %v15739_v58  ;;  %8839 = vmatpush1.bf16.msra.mxu0 %v14216_v54  ;;  %v14288_v54 = vld [vmem:[#allocation7 + $0x840] ss:$24 sps:$4 sm:$0xff]  }
 0x3b6   :  { %8870 = vmatprep.mubr.bf16.mxu0 %v15741_v59  ;;  %9085 = vmatpush1.bf16.msra.mxu1 %v14219_v42  ;;  %v14291_v42 = vld [vmem:[#allocation7 + $0x848] ss:$24 sps:$4 sm:$0xff]  }
 0x3b7   :  { %9116 = vmatprep.mubr.bf16.mxu1 %v15741_v59  ;;  %8840 = vmatprep.subr.bf16.mxu0 %v14224_v56  ;;  %v14296_v56 = vld [vmem:[#allocation7 + $0x874] ss:$24 sps:$4 sm:$0xff]  }
 0x3b8   :  { %9086 = vmatprep.subr.bf16.mxu1 %v14227_v62  ;;  %v14294_v62 = vld [vmem:[#allocation7 + $0x870] ss:$24 sps:$4 sm:$0xff]  }
 0x3b9   :  { %8841 = vmatpush1.bf16.msra.mxu0 %v14222_v60  ;;  %v14299_v60 = vld [vmem:[#allocation7 + $0x87c] ss:$24 sps:$4 sm:$0xff]  }
 0x3ba   :  { %9087 = vmatpush1.bf16.msra.mxu1 %v14225_v61  ;;  %8842 = vmatprep.subr.bf16.mxu0 %v14230_v63  ;;  %v845_v61 = vsub.s32 7, %v15681_v36  ;;  %v834_v63 = vrot.slane %v15730_v44, %v833_v55 }
 0x3bb   :  { %9088 = vmatprep.subr.bf16.mxu1 %v14233_v0  ;;  %v14297_v0 = vld [vmem:[#allocation7 + $0x878] ss:$24 sps:$4 sm:$0xff]  }
 0x3bd   :  { %8843 = vmatpush1.bf16.msra.mxu0 %v14228_v1  ;;  %v14302_v1 = vld [vmem:[#allocation7 + $0x8a4] ss:$24 sps:$4 sm:$0xff]  }
 0x3be   :  { %9089 = vmatpush1.bf16.msra.mxu1 %v14231_v2  ;;  %8844 = vmatprep.subr.bf16.mxu0 %v14236_v4  ;;  %v14305_v2 = vld [vmem:[#allocation7 + $0x8ac] ss:$24 sps:$4 sm:$0xff]   ;;  %v846_v4 = vrot.slane %v15730_v44, %v845_v61 }
 0x3bf   :  { %9090 = vmatprep.subr.bf16.mxu1 %v14239_v7  ;;  %v12825_v7 = vadd.f32 %v15690_v52, %v834_v63  ;;  %v14312_v52 = vld [vmem:[#allocation7 + $0x900] ss:$24 sps:$4 sm:$0xff]  }
 0x3c1   :  { %8845 = vmatpush1.bf16.msra.mxu0 %v14234_v6  ;;  %v14300_v6 = vld [vmem:[#allocation7 + $0x8a0] ss:$24 sps:$4 sm:$0xff]  }
 0x3c2   :  { %9091 = vmatpush1.bf16.msra.mxu1 %v14237_v8  ;;  %8846 = vmatprep.subr.bf16.mxu0 %v14242_v11  ;;  %v14303_v8 = vld [vmem:[#allocation7 + $0x8a8] ss:$24 sps:$4 sm:$0xff]   ;;  %v14308_v11 = vld [vmem:[#allocation7 + $0x8d4] ss:$24 sps:$4 sm:$0xff]  }
 0x3c3   :  { %9092 = vmatprep.subr.bf16.mxu1 %v14245_v14  ;;  %v12828_v14 = vadd.f32 %v15696_v57, %v846_v4  ;;  %v14348_v4 = vld [vmem:[#allocation7 + $0xa20] ss:$24 sps:$4 sm:$0xff]  }
 0x3c5   :  { %8847 = vmatpush1.bf16.msra.mxu0 %v14240_v43  ;;  %v14311_v43 = vld [vmem:[#allocation7 + $0x8dc] ss:$24 sps:$4 sm:$0xff]  }
 0x3c6   :  { %9093 = vmatpush1.bf16.msra.mxu1 %v14243_v48  ;;  %8848 = vmatprep.subr.bf16.mxu0 %v14248_v16  ;;  %v14306_v48 = vld [vmem:[#allocation7 + $0x8d0] ss:$24 sps:$4 sm:$0xff]   ;;  %v5248_v16 = vmax.f32 %v12825_v7, 0.0 }
 0x3c7   :  { %9094 = vmatprep.subr.bf16.mxu1 %v14251_v18  ;;  %v14314_v18 = vld [vmem:[#allocation7 + $0x904] ss:$24 sps:$4 sm:$0xff]   ;;  %v14351_v7 = vld [vmem:[#allocation7 + $0xa28] ss:$24 sps:$4 sm:$0xff]  }
 0x3c9   :  { %8849 = vmatpush1.bf16.msra.mxu0 %v14246_v17  ;;  %v14309_v17 = vld [vmem:[#allocation7 + $0x8d8] ss:$24 sps:$4 sm:$0xff]  }
 0x3ca   :  { %9095 = vmatpush1.bf16.msra.mxu1 %v14249_v5  ;;  %8850 = vmatprep.subr.bf16.mxu0 %v14254_v20  ;;  %v14317_v5 = vld [vmem:[#allocation7 + $0x90c] ss:$24 sps:$4 sm:$0xff]   ;;  %v5251_v20 = vmax.f32 %v12828_v14, 0.0  ;;  %v14354_v14 = vld [vmem:[#allocation7 + $0xa50] ss:$24 sps:$4 sm:$0xff]  }
 0x3cb   :  { %9096 = vmatprep.subr.bf16.mxu1 %v14257_v21  ;;  %v15755_v21 = vpack.c.bf16 %v5248_v16, %v5248_v16  ;;  %v14362_v16 = vld [vmem:[#allocation7 + $0xa84] ss:$24 sps:$4 sm:$0xff]  }
 0x3cc   :  { %v15757_v57 = vpack.c.bf16 %v5251_v20, %v5251_v20  ;;  %v14368_v20 = vld [vmem:[#allocation7 + $0xab4] ss:$24 sps:$4 sm:$0xff]  }
 0x3cd   :  { %8851 = vmatpush1.bf16.msra.mxu0 %v14252_v22  ;;  %v14315_v22 = vld [vmem:[#allocation7 + $0x908] ss:$24 sps:$4 sm:$0xff]  }
 0x3ce   :  { %9097 = vmatpush1.bf16.msra.mxu1 %v14255_v23  ;;  %8852 = vmatprep.subr.bf16.mxu0 %v14260_v24  ;;  %v14320_v23 = vld [vmem:[#allocation7 + $0x934] ss:$24 sps:$4 sm:$0xff]  }
 0x3cf   :  { %9098 = vmatprep.subr.bf16.mxu1 %v14263_v30  ;;  %v14323_v24 = vld [vmem:[#allocation7 + $0x93c] ss:$24 sps:$4 sm:$0xff]   ;;  %v14318_v30 = vld [vmem:[#allocation7 + $0x930] ss:$24 sps:$4 sm:$0xff]  }
 0x3d1   :  { %8853 = vmatpush1.bf16.msra.mxu0 %v14258_v26  ;;  %v14321_v26 = vld [vmem:[#allocation7 + $0x938] ss:$24 sps:$4 sm:$0xff]  }
 0x3d2   :  { %9099 = vmatpush1.bf16.msra.mxu1 %v14261_v41  ;;  %8854 = vmatprep.subr.bf16.mxu0 %v14266_v27  ;;  %v14326_v41 = vld [vmem:[#allocation7 + $0x964] ss:$24 sps:$4 sm:$0xff]  }
 0x3d3   :  { %9100 = vmatprep.subr.bf16.mxu1 %v14269_v10  ;;  %v14329_v27 = vld [vmem:[#allocation7 + $0x96c] ss:$24 sps:$4 sm:$0xff]   ;;  %v14324_v10 = vld [vmem:[#allocation7 + $0x960] ss:$24 sps:$4 sm:$0xff]  }
 0x3d5   :  { %8855 = vmatpush1.bf16.msra.mxu0 %v14264_v31  ;;  %v14327_v31 = vld [vmem:[#allocation7 + $0x968] ss:$24 sps:$4 sm:$0xff]  }
 0x3d6   :  { %9101 = vmatpush1.bf16.msra.mxu1 %v14267_v32  ;;  %8856 = vmatprep.subr.bf16.mxu0 %v14272_v15  ;;  %v14332_v32 = vld [vmem:[#allocation7 + $0x994] ss:$24 sps:$4 sm:$0xff]  }
 0x3d7   :  { %9102 = vmatprep.subr.bf16.mxu1 %v14275_v19  ;;  %v14335_v15 = vld [vmem:[#allocation7 + $0x99c] ss:$24 sps:$4 sm:$0xff]   ;;  %v14330_v19 = vld [vmem:[#allocation7 + $0x990] ss:$24 sps:$4 sm:$0xff]  }
 0x3d9   :  { %8857 = vmatpush1.bf16.msra.mxu0 %v14270_v33  ;;  %v14333_v33 = vld [vmem:[#allocation7 + $0x998] ss:$24 sps:$4 sm:$0xff]  }
 0x3da   :  { %9103 = vmatpush1.bf16.msra.mxu1 %v14273_v34  ;;  %8858 = vmatprep.subr.bf16.mxu0 %v14278_v35  ;;  %v14338_v34 = vld [vmem:[#allocation7 + $0x9c4] ss:$24 sps:$4 sm:$0xff]  }
 0x3db   :  { %9104 = vmatprep.subr.bf16.mxu1 %v14281_v37  ;;  %v14341_v35 = vld [vmem:[#allocation7 + $0x9cc] ss:$24 sps:$4 sm:$0xff]   ;;  %v14336_v37 = vld [vmem:[#allocation7 + $0x9c0] ss:$24 sps:$4 sm:$0xff]  }
 0x3dd   :  { %8859 = vmatpush1.bf16.msra.mxu0 %v14276_v38  ;;  %v14339_v38 = vld [vmem:[#allocation7 + $0x9c8] ss:$24 sps:$4 sm:$0xff]  }
 0x3de   :  { %9105 = vmatpush1.bf16.msra.mxu1 %v14279_v39  ;;  %8860 = vmatprep.subr.bf16.mxu0 %v14284_v40  ;;  %v14344_v39 = vld [vmem:[#allocation7 + $0x9f4] ss:$24 sps:$4 sm:$0xff]   ;;  %v15763_v40 = vld [vmem:[#allocation5 + $0x8] sm:$0xf] }
 0x3df   :  { %9106 = vmatprep.subr.bf16.mxu1 %v14287_v46  ;;  %v14347_v46 = vld [vmem:[#allocation7 + $0x9fc] ss:$24 sps:$4 sm:$0xff]  }
 0x3e1   :  { %8861 = vmatpush1.bf16.msra.mxu0 %v14282_v47  ;;  %v858_v47 = vrot.slane %v15763_v40, %v15727_v25 }
 0x3e2   :  { %9107 = vmatpush1.bf16.msra.mxu1 %v14285_v49  ;;  %8862 = vmatprep.subr.bf16.mxu0 %v14290_v50  ;;  %v14342_v49 = vld [vmem:[#allocation7 + $0x9f0] ss:$24 sps:$4 sm:$0xff]   ;;  %v862_v50 = vrot.slane %v15763_v40, %v15710_v9 }
 0x3e3   :  { %9108 = vmatprep.subr.bf16.mxu1 %v14293_v51  ;;  %v14345_v51 = vld [vmem:[#allocation7 + $0x9f8] ss:$24 sps:$4 sm:$0xff]  }
 0x3e5   :  { %8863 = vmatpush1.bf16.msra.mxu0 %v14288_v54  ;;  %v14350_v54 = vld [vmem:[#allocation7 + $0xa24] ss:$24 sps:$4 sm:$0xff]  }
 0x3e6   :  { %9109 = vmatpush1.bf16.msra.mxu1 %v14291_v42  ;;  %8864 = vmatprep.subr.bf16.mxu0 %v14296_v56 }
 0x3e7   :  { %9110 = vmatprep.subr.bf16.mxu1 %v14299_v60  ;;  %v14353_v60 = vld [vmem:[#allocation7 + $0xa2c] ss:$24 sps:$4 sm:$0xff]  }
 0x3e9   :  { %8865 = vmatpush1.bf16.msra.mxu0 %v14294_v62 }
 0x3ea   :  { %9111 = vmatpush1.bf16.msra.mxu1 %v14297_v0  ;;  %8866 = vmatprep.subr.bf16.mxu0 %v14302_v1 }
 0x3eb   :  { %9112 = vmatprep.subr.bf16.mxu1 %v14305_v2 }
 0x3ed   :  { %8867 = vmatpush1.bf16.msra.mxu0 %v14300_v6 }
 0x3ee   :  { %9113 = vmatpush1.bf16.msra.mxu1 %v14303_v8  ;;  %8868 = vmatprep.subr.bf16.mxu0 %v14308_v11  ;;  %v14356_v11 = vld [vmem:[#allocation7 + $0xa54] ss:$24 sps:$4 sm:$0xff]  }
 0x3ef   :  { %9114 = vmatprep.subr.bf16.mxu1 %v14311_v43  ;;  %v14359_v43 = vld [vmem:[#allocation7 + $0xa5c] ss:$24 sps:$4 sm:$0xff]  }
 0x3f1   :  { %8869 = vmatpush1.bf16.msra.mxu0 %v14306_v48  ;;  %v14357_v48 = vld [vmem:[#allocation7 + $0xa58] ss:$24 sps:$4 sm:$0xff]  }
 0x3f2   :  { %9115 = vmatpush1.bf16.msra.mxu1 %v14309_v17  ;;  %8879 = vmatprep.subr.bf16.mxu0 %v14314_v18  ;;  %v14365_v17 = vld [vmem:[#allocation7 + $0xa8c] ss:$24 sps:$4 sm:$0xff]   ;;  %v14360_v18 = vld [vmem:[#allocation7 + $0xa80] ss:$24 sps:$4 sm:$0xff]  }
 0x3f3   :  { %9125 = vmatprep.subr.bf16.mxu1 %v14317_v5  ;;  %v14363_v5 = vld [vmem:[#allocation7 + $0xa88] ss:$24 sps:$4 sm:$0xff]  }
 0x3f4   :  { %8871 = vmatmul.mubr.bf16.vlgmr.msra.gmra.mrb[12].mxu0 %v15755_v21 }
 0x3f5   :  { %9117 = vmatmul.mubr.bf16.vlgmr.msra.gmra.mrb[12].mxu1 %v15755_v21  ;;  %8880 = vmatpush1.bf16.msra.mxu0 %v14312_v52  ;;  %v14371_v52 = vld [vmem:[#allocation7 + $0xabc] ss:$24 sps:$4 sm:$0xff]  }
 0x3f6   :  { %8911 = vmatprep.mubr.bf16.mxu0 %v15757_v57  ;;  %9126 = vmatpush1.bf16.msra.mxu1 %v14315_v22  ;;  %v14366_v22 = vld [vmem:[#allocation7 + $0xab0] ss:$24 sps:$4 sm:$0xff]  }
 0x3f7   :  { %9157 = vmatprep.mubr.bf16.mxu1 %v15757_v57  ;;  %8881 = vmatprep.subr.bf16.mxu0 %v14320_v23  ;;  %v14369_v23 = vld [vmem:[#allocation7 + $0xab8] ss:$24 sps:$4 sm:$0xff]  }
 0x3f8   :  { %9127 = vmatprep.subr.bf16.mxu1 %v14323_v24  ;;  %v14374_v24 = vld [vmem:[#allocation7 + $0xae4] ss:$24 sps:$4 sm:$0xff]  }
 0x3f9   :  { %8882 = vmatpush1.bf16.msra.mxu0 %v14318_v30  ;;  %v14377_v30 = vld [vmem:[#allocation7 + $0xaec] ss:$24 sps:$4 sm:$0xff]  }
 0x3fa   :  { %9128 = vmatpush1.bf16.msra.mxu1 %v14321_v26  ;;  %8883 = vmatprep.subr.bf16.mxu0 %v14326_v41  ;;  %v14372_v26 = vld [vmem:[#allocation7 + $0xae0] ss:$24 sps:$4 sm:$0xff]  }
 0x3fb   :  { %9129 = vmatprep.subr.bf16.mxu1 %v14329_v27  ;;  %v14375_v41 = vld [vmem:[#allocation7 + $0xae8] ss:$24 sps:$4 sm:$0xff]   ;;  %v14380_v27 = vld [vmem:[#allocation7 + $0xb14] ss:$24 sps:$4 sm:$0xff]  }
 0x3fd   :  { %8884 = vmatpush1.bf16.msra.mxu0 %v14324_v10  ;;  %v14383_v10 = vld [vmem:[#allocation7 + $0xb1c] ss:$24 sps:$4 sm:$0xff]  }
 0x3fe   :  { %9130 = vmatpush1.bf16.msra.mxu1 %v14327_v31  ;;  %8885 = vmatprep.subr.bf16.mxu0 %v14332_v32  ;;  %v14378_v31 = vld [vmem:[#allocation7 + $0xb10] ss:$24 sps:$4 sm:$0xff]  }
 0x3ff   :  { %9131 = vmatprep.subr.bf16.mxu1 %v14335_v15  ;;  %v14381_v32 = vld [vmem:[#allocation7 + $0xb18] ss:$24 sps:$4 sm:$0xff]   ;;  %v14386_v15 = vld [vmem:[#allocation7 + $0xb44] ss:$24 sps:$4 sm:$0xff]  }
 0x401   :  { %8886 = vmatpush1.bf16.msra.mxu0 %v14330_v19  ;;  %v14389_v19 = vld [vmem:[#allocation7 + $0xb4c] ss:$24 sps:$4 sm:$0xff]  }
 0x402   :  { %9132 = vmatpush1.bf16.msra.mxu1 %v14333_v33  ;;  %8887 = vmatprep.subr.bf16.mxu0 %v14338_v34  ;;  %v14384_v33 = vld [vmem:[#allocation7 + $0xb40] ss:$24 sps:$4 sm:$0xff]   ;;  %v841_v34 = vsub.s32 6, %v15681_v36 }
 0x403   :  { %9133 = vmatprep.subr.bf16.mxu1 %v14341_v35  ;;  %v14387_v35 = vld [vmem:[#allocation7 + $0xb48] ss:$24 sps:$4 sm:$0xff]  }
 0x404   :  { %v15035_v36 = vld [vmem:[#allocation10 + $0x28] ss:$16 sps:$4 sm:$0xff]  }
 0x405   :  { %8888 = vmatpush1.bf16.msra.mxu0 %v14336_v37  ;;  %v14392_v37 = vld [vmem:[#allocation7 + $0xb74] ss:$24 sps:$4 sm:$0xff]  }
 0x406   :  { %9134 = vmatpush1.bf16.msra.mxu1 %v14339_v38  ;;  %8889 = vmatprep.subr.bf16.mxu0 %v14344_v39  ;;  %v14395_v38 = vld [vmem:[#allocation7 + $0xb7c] ss:$24 sps:$4 sm:$0xff]   ;;  %v14390_v39 = vld [vmem:[#allocation7 + $0xb70] ss:$24 sps:$4 sm:$0xff]  }
 0x407   :  { %v15769_v42 = vpop.f32.mrb[8].mxu0  ;;  %9135 = vmatprep.subr.bf16.mxu1 %v14347_v46  ;;  %v5237_v56 = vpop.f32.mrb[8].mxu1  ;;  %v842_v46 = vrot.slane %v15730_v44, %v841_v34  ;;  %v14446_v34 = vld [vmem:[#allocation7 + $0xd24] ss:$24 sps:$4 sm:$0xff]  }
 0x408   :  { %v15771_v61 = vpop.f32.mrb[9].mxu0  ;;  %v15773_v62 = vadd.f32 %v5237_v56, %v858_v47  ;;  %v5239_v63 = vpop.f32.mrb[9].mxu1  ;;  %v14393_v47 = vld [vmem:[#allocation7 + $0xb78] ss:$24 sps:$4 sm:$0xff]  }
 0x409   :  { %v5077_v0 = vpop.f32.mrb[10].mxu0  ;;  %8890 = vmatpush1.bf16.msra.mxu0 %v14342_v49  ;;  %v15775_v1 = vadd.f32 %v5239_v63, %v862_v50  ;;  %v5241_v2 = vpop.f32.mrb[10].mxu1  ;;  %v14398_v49 = vld [vmem:[#allocation7 + $0xba4] ss:$24 sps:$4 sm:$0xff]   ;;  %v12827_v56 = vadd.f32 %v15692_v53, %v842_v46  ;;  %v14404_v63 = vld [vmem:[#allocation7 + $0xbd4] ss:$24 sps:$4 sm:$0xff]  }
 0x40a   :  { %9136 = vmatpush1.bf16.msra.mxu1 %v14345_v51  ;;  %v5078_v6 = vpop.f32.mrb[11].mxu0  ;;  %8891 = vmatprep.subr.bf16.mxu0 %v14350_v54  ;;  %v5242_v8 = vpop.f32.mrb[11].mxu1  ;;  %v14401_v50 = vld [vmem:[#allocation7 + $0xbac] ss:$24 sps:$4 sm:$0xff]   ;;  %v854_v51 = vrot.slane %v15763_v40, %v15686_v45  ;;  %v14396_v54 = vld [vmem:[#allocation7 + $0xba0] ss:$24 sps:$4 sm:$0xff]  }
 0x40b   :  { %9137 = vmatprep.subr.bf16.mxu1 %v14353_v60  ;;  %v14399_v60 = vld [vmem:[#allocation7 + $0xba8] ss:$24 sps:$4 sm:$0xff]   ;;  %v14407_v0 = vld [vmem:[#allocation7 + $0xbdc] ss:$24 sps:$4 sm:$0xff]   ;;  %v14405_v6 = vld [vmem:[#allocation7 + $0xbd8] ss:$24 sps:$4 sm:$0xff]  }
 0x40c   :  { %v12830_v44 = vadd.f32 %v15771_v61, %v854_v51  ;;  %v14402_v2 = vld [vmem:[#allocation7 + $0xbd0] ss:$24 sps:$4 sm:$0xff]   ;;  %v14413_v8 = vld [vmem:[#allocation7 + $0xc0c] ss:$24 sps:$4 sm:$0xff]   ;;  %v14408_v53 = vld [vmem:[#allocation7 + $0xc00] ss:$24 sps:$4 sm:$0xff]  }
 0x40d   :  { %8892 = vmatpush1.bf16.msra.mxu0 %v14348_v4  ;;  %v5250_v4 = vmax.f32 %v12827_v56, 0.0  ;;  %v14455_v46 = vld [vmem:[#allocation7 + $0xd5c] ss:$24 sps:$4 sm:$0xff]   ;;  %v14461_v51 = vld [vmem:[#allocation7 + $0xd8c] ss:$24 sps:$4 sm:$0xff]  }
 0x40e   :  { %9138 = vmatpush1.bf16.msra.mxu1 %v14351_v7  ;;  %8893 = vmatprep.subr.bf16.mxu0 %v14356_v11  ;;  %v14410_v7 = vld [vmem:[#allocation7 + $0xc04] ss:$24 sps:$4 sm:$0xff]   ;;  %v5253_v11 = vmax.f32 %v12830_v44, 0.0  ;;  %v14459_v56 = vld [vmem:[#allocation7 + $0xd88] ss:$24 sps:$4 sm:$0xff]  }
 0x40f   :  { %9139 = vmatprep.subr.bf16.mxu1 %v14359_v43  ;;  %v15783_v43 = vpack.c.bf16 %v5250_v4, %v5250_v4  ;;  %v14465_v44 = vld [vmem:[#allocation7 + $0xdb8] ss:$24 sps:$4 sm:$0xff]   ;;  %v14473_v4 = vld [vmem:[#allocation7 + $0xdec] ss:$24 sps:$4 sm:$0xff]  }
 0x410   :  { %v15785_v61 = vpack.c.bf16 %v5253_v11, %v5253_v11  ;;  %v14479_v11 = vld [vmem:[#allocation7 + $0xe1c] ss:$24 sps:$4 sm:$0xff]  }
 0x411   :  { %8894 = vmatpush1.bf16.msra.mxu0 %v14354_v14  ;;  %v14411_v14 = vld [vmem:[#allocation7 + $0xc08] ss:$24 sps:$4 sm:$0xff]  }
 0x412   :  { %9140 = vmatpush1.bf16.msra.mxu1 %v14357_v48  ;;  %8895 = vmatprep.subr.bf16.mxu0 %v14362_v16  ;;  %v14416_v48 = vld [vmem:[#allocation7 + $0xc34] ss:$24 sps:$4 sm:$0xff]  }
 0x413   :  { %9141 = vmatprep.subr.bf16.mxu1 %v14365_v17  ;;  %v14419_v16 = vld [vmem:[#allocation7 + $0xc3c] ss:$24 sps:$4 sm:$0xff]   ;;  %v14414_v17 = vld [vmem:[#allocation7 + $0xc30] ss:$24 sps:$4 sm:$0xff]  }
 0x415   :  { %8896 = vmatpush1.bf16.msra.mxu0 %v14360_v18  ;;  %v14417_v18 = vld [vmem:[#allocation7 + $0xc38] ss:$24 sps:$4 sm:$0xff]  }
 0x416   :  { %9142 = vmatpush1.bf16.msra.mxu1 %v14363_v5  ;;  %8897 = vmatprep.subr.bf16.mxu0 %v14368_v20  ;;  %v14422_v5 = vld [vmem:[#allocation7 + $0xc64] ss:$24 sps:$4 sm:$0xff]  }
 0x417   :  { %9143 = vmatprep.subr.bf16.mxu1 %v14371_v52  ;;  %v14425_v20 = vld [vmem:[#allocation7 + $0xc6c] ss:$24 sps:$4 sm:$0xff]   ;;  %v14420_v52 = vld [vmem:[#allocation7 + $0xc60] ss:$24 sps:$4 sm:$0xff]  }
 0x419   :  { %8898 = vmatpush1.bf16.msra.mxu0 %v14366_v22  ;;  %v14423_v22 = vld [vmem:[#allocation7 + $0xc68] ss:$24 sps:$4 sm:$0xff]  }
 0x41a   :  { %9144 = vmatpush1.bf16.msra.mxu1 %v14369_v23  ;;  %8899 = vmatprep.subr.bf16.mxu0 %v14374_v24  ;;  %v14428_v23 = vld [vmem:[#allocation7 + $0xc94] ss:$24 sps:$4 sm:$0xff]  }
 0x41b   :  { %9145 = vmatprep.subr.bf16.mxu1 %v14377_v30  ;;  %v14431_v24 = vld [vmem:[#allocation7 + $0xc9c] ss:$24 sps:$4 sm:$0xff]   ;;  %v14426_v30 = vld [vmem:[#allocation7 + $0xc90] ss:$24 sps:$4 sm:$0xff]  }
 0x41d   :  { %8900 = vmatpush1.bf16.msra.mxu0 %v14372_v26  ;;  %v14429_v26 = vld [vmem:[#allocation7 + $0xc98] ss:$24 sps:$4 sm:$0xff]  }
 0x41e   :  { %9146 = vmatpush1.bf16.msra.mxu1 %v14375_v41  ;;  %8901 = vmatprep.subr.bf16.mxu0 %v14380_v27  ;;  %v14434_v41 = vld [vmem:[#allocation7 + $0xcc4] ss:$24 sps:$4 sm:$0xff]  }
 0x41f   :  { %9147 = vmatprep.subr.bf16.mxu1 %v14383_v10  ;;  %v14437_v27 = vld [vmem:[#allocation7 + $0xccc] ss:$24 sps:$4 sm:$0xff]   ;;  %v14432_v10 = vld [vmem:[#allocation7 + $0xcc0] ss:$24 sps:$4 sm:$0xff]  }
 0x421   :  { %8902 = vmatpush1.bf16.msra.mxu0 %v14378_v31  ;;  %v14435_v31 = vld [vmem:[#allocation7 + $0xcc8] ss:$24 sps:$4 sm:$0xff]  }
 0x422   :  { %9148 = vmatpush1.bf16.msra.mxu1 %v14381_v32  ;;  %8903 = vmatprep.subr.bf16.mxu0 %v14386_v15  ;;  %v14440_v32 = vld [vmem:[#allocation7 + $0xcf4] ss:$24 sps:$4 sm:$0xff]  }
 0x423   :  { %9149 = vmatprep.subr.bf16.mxu1 %v14389_v19  ;;  %v14443_v15 = vld [vmem:[#allocation7 + $0xcfc] ss:$24 sps:$4 sm:$0xff]   ;;  %v14438_v19 = vld [vmem:[#allocation7 + $0xcf0] ss:$24 sps:$4 sm:$0xff]  }
 0x425   :  { %8904 = vmatpush1.bf16.msra.mxu0 %v14384_v33  ;;  %v14441_v33 = vld [vmem:[#allocation7 + $0xcf8] ss:$24 sps:$4 sm:$0xff]  }
 0x426   :  { %9150 = vmatpush1.bf16.msra.mxu1 %v14387_v35  ;;  %8905 = vmatprep.subr.bf16.mxu0 %v14392_v37  ;;  %v14449_v35 = vld [vmem:[#allocation7 + $0xd2c] ss:$24 sps:$4 sm:$0xff]   ;;  %v14444_v37 = vld [vmem:[#allocation7 + $0xd20] ss:$24 sps:$4 sm:$0xff]  }
 0x427   :  { %9151 = vmatprep.subr.bf16.mxu1 %v14395_v38  ;;  %v14447_v38 = vld [vmem:[#allocation7 + $0xd28] ss:$24 sps:$4 sm:$0xff]  }
 0x429   :  { %8906 = vmatpush1.bf16.msra.mxu0 %v14390_v39  ;;  %v14452_v39 = vld [vmem:[#allocation7 + $0xd54] ss:$24 sps:$4 sm:$0xff]  }
 0x42a   :  { %9152 = vmatpush1.bf16.msra.mxu1 %v14393_v47  ;;  %8907 = vmatprep.subr.bf16.mxu0 %v14398_v49  ;;  %v14450_v47 = vld [vmem:[#allocation7 + $0xd50] ss:$24 sps:$4 sm:$0xff]  }
 0x42b   :  { %9153 = vmatprep.subr.bf16.mxu1 %v14401_v50  ;;  %v14453_v49 = vld [vmem:[#allocation7 + $0xd58] ss:$24 sps:$4 sm:$0xff]   ;;  %v14458_v50 = vld [vmem:[#allocation7 + $0xd84] ss:$24 sps:$4 sm:$0xff]  }
 0x42d   :  { %8908 = vmatpush1.bf16.msra.mxu0 %v14396_v54  ;;  %v14456_v54 = vld [vmem:[#allocation7 + $0xd80] ss:$24 sps:$4 sm:$0xff]  }
 0x42e   :  { %9154 = vmatpush1.bf16.msra.mxu1 %v14399_v60  ;;  %8909 = vmatprep.subr.bf16.mxu0 %v14404_v63  ;;  %v14464_v60 = vld [vmem:[#allocation7 + $0xdb4] ss:$24 sps:$4 sm:$0xff]  }
 0x42f   :  { %9155 = vmatprep.subr.bf16.mxu1 %v14407_v0  ;;  %v14467_v63 = vld [vmem:[#allocation7 + $0xdbc] ss:$24 sps:$4 sm:$0xff]   ;;  %v14462_v0 = vld [vmem:[#allocation7 + $0xdb0] ss:$24 sps:$4 sm:$0xff]  }
 0x431   :  { %8910 = vmatpush1.bf16.msra.mxu0 %v14402_v2  ;;  %v14470_v2 = vld [vmem:[#allocation7 + $0xde4] ss:$24 sps:$4 sm:$0xff]  }
 0x432   :  { %9156 = vmatpush1.bf16.msra.mxu1 %v14405_v6  ;;  %8920 = vmatprep.subr.bf16.mxu0 %v14410_v7  ;;  %v14468_v6 = vld [vmem:[#allocation7 + $0xde0] ss:$24 sps:$4 sm:$0xff]  }
 0x433   :  { %9166 = vmatprep.subr.bf16.mxu1 %v14413_v8  ;;  %v14471_v7 = vld [vmem:[#allocation7 + $0xde8] ss:$24 sps:$4 sm:$0xff]   ;;  %v14476_v8 = vld [vmem:[#allocation7 + $0xe14] ss:$24 sps:$4 sm:$0xff]  }
 0x434   :  { %8912 = vmatmul.mubr.bf16.vlgmr.msra.gmra.mrb[12].mxu0 %v15783_v43 }
 0x435   :  { %9158 = vmatmul.mubr.bf16.vlgmr.msra.gmra.mrb[12].mxu1 %v15783_v43  ;;  %8921 = vmatpush1.bf16.msra.mxu0 %v14408_v53  ;;  %v14474_v53 = vld [vmem:[#allocation7 + $0xe10] ss:$24 sps:$4 sm:$0xff]  }
 0x436   :  { %8952 = vmatprep.mubr.bf16.mxu0 %v15785_v61  ;;  %9167 = vmatpush1.bf16.msra.mxu1 %v14411_v14  ;;  %v14477_v14 = vld [vmem:[#allocation7 + $0xe18] ss:$24 sps:$4 sm:$0xff]  }
 0x437   :  { %9198 = vmatprep.mubr.bf16.mxu1 %v15785_v61  ;;  %8922 = vmatprep.subr.bf16.mxu0 %v14416_v48  ;;  %v14482_v48 = vld [vmem:[#allocation7 + $0xe44] ss:$24 sps:$4 sm:$0xff]  }
 0x438   :  { %9168 = vmatprep.subr.bf16.mxu1 %v14419_v16  ;;  %v14485_v16 = vld [vmem:[#allocation7 + $0xe4c] ss:$24 sps:$4 sm:$0xff]  }
 0x439   :  { %8923 = vmatpush1.bf16.msra.mxu0 %v14414_v17  ;;  %v14480_v17 = vld [vmem:[#allocation7 + $0xe40] ss:$24 sps:$4 sm:$0xff]  }
 0x43a   :  { %9169 = vmatpush1.bf16.msra.mxu1 %v14417_v18  ;;  %8924 = vmatprep.subr.bf16.mxu0 %v14422_v5  ;;  %v14483_v18 = vld [vmem:[#allocation7 + $0xe48] ss:$24 sps:$4 sm:$0xff]   ;;  %v14488_v5 = vld [vmem:[#allocation7 + $0xe74] ss:$24 sps:$4 sm:$0xff]  }
 0x43b   :  { %9170 = vmatprep.subr.bf16.mxu1 %v14425_v20  ;;  %v14491_v20 = vld [vmem:[#allocation7 + $0xe7c] ss:$24 sps:$4 sm:$0xff]  }
 0x43d   :  { %8925 = vmatpush1.bf16.msra.mxu0 %v14420_v52  ;;  %v14486_v52 = vld [vmem:[#allocation7 + $0xe70] ss:$24 sps:$4 sm:$0xff]  }
 0x43e   :  { %9171 = vmatpush1.bf16.msra.mxu1 %v14423_v22  ;;  %8926 = vmatprep.subr.bf16.mxu0 %v14428_v23  ;;  %v850_v22 = vrot.slane %v15763_v40, %v15707_v3  ;;  %v14489_v23 = vld [vmem:[#allocation7 + $0xe78] ss:$24 sps:$4 sm:$0xff]  }
 0x43f   :  { %9172 = vmatprep.subr.bf16.mxu1 %v14431_v24  ;;  %v14494_v24 = vld [vmem:[#allocation7 + $0xea4] ss:$24 sps:$4 sm:$0xff]   ;;  %v14501_v40 = vld [vmem:[#allocation7 + $0xed8] ss:$24 sps:$4 sm:$0xff]  }
 0x441   :  { %8927 = vmatpush1.bf16.msra.mxu0 %v14426_v30  ;;  %v14497_v30 = vld [vmem:[#allocation7 + $0xeac] ss:$24 sps:$4 sm:$0xff]  }
 0x442   :  { %9173 = vmatpush1.bf16.msra.mxu1 %v14429_v26  ;;  %8928 = vmatprep.subr.bf16.mxu0 %v14434_v41  ;;  %v14492_v26 = vld [vmem:[#allocation7 + $0xea0] ss:$24 sps:$4 sm:$0xff]   ;;  %v12829_v41 = vadd.f32 %v15769_v42, %v850_v22  ;;  %v14554_v22 = vld [vmem:[#allocation7 + $0x1084] ss:$24 sps:$4 sm:$0xff]  }
 0x443   :  { %9174 = vmatprep.subr.bf16.mxu1 %v14437_v27  ;;  %v14495_v27 = vld [vmem:[#allocation7 + $0xea8] ss:$24 sps:$4 sm:$0xff]  }
 0x445   :  { %8929 = vmatpush1.bf16.msra.mxu0 %v14432_v10  ;;  %v14500_v10 = vld [vmem:[#allocation7 + $0xed4] ss:$24 sps:$4 sm:$0xff]  }
 0x446   :  { %9175 = vmatpush1.bf16.msra.mxu1 %v14435_v31  ;;  %8930 = vmatprep.subr.bf16.mxu0 %v14440_v32  ;;  %v14503_v31 = vld [vmem:[#allocation7 + $0xedc] ss:$24 sps:$4 sm:$0xff]   ;;  %v14498_v32 = vld [vmem:[#allocation7 + $0xed0] ss:$24 sps:$4 sm:$0xff]  }
 0x447   :  { %9176 = vmatprep.subr.bf16.mxu1 %v14443_v15  ;;  %v5252_v15 = vmax.f32 %v12829_v41, 0.0  ;;  %v14563_v41 = vld [vmem:[#allocation7 + $0x10bc] ss:$24 sps:$4 sm:$0xff]  }
 0x449   :  { %8931 = vmatpush1.bf16.msra.mxu0 %v14438_v19  ;;  %v14506_v19 = vld [vmem:[#allocation7 + $0xf04] ss:$24 sps:$4 sm:$0xff]   ;;  %v15795_v42 = vpack.c.bf16 %v5252_v15, %v5252_v15  ;;  %v14564_v15 = vld [vmem:[#allocation7 + $0x10e0] ss:$24 sps:$4 sm:$0xff]  }
 0x44a   :  { %9177 = vmatpush1.bf16.msra.mxu1 %v14441_v33  ;;  %8932 = vmatprep.subr.bf16.mxu0 %v14446_v34  ;;  %v14509_v33 = vld [vmem:[#allocation7 + $0xf0c] ss:$24 sps:$4 sm:$0xff]   ;;  %v5255_v34 = vmax.f32 %v15775_v1, 0.0  ;;  %v14513_v1 = vld [vmem:[#allocation7 + $0xf38] ss:$24 sps:$4 sm:$0xff]  }
 0x44b   :  { %9178 = vmatprep.subr.bf16.mxu1 %v14449_v35  ;;  %v14504_v35 = vld [vmem:[#allocation7 + $0xf00] ss:$24 sps:$4 sm:$0xff]  }
 0x44d   :  { %8933 = vmatpush1.bf16.msra.mxu0 %v14444_v37  ;;  %v14507_v37 = vld [vmem:[#allocation7 + $0xf08] ss:$24 sps:$4 sm:$0xff]  }
 0x44e   :  { %9179 = vmatpush1.bf16.msra.mxu1 %v14447_v38  ;;  %8934 = vmatprep.subr.bf16.mxu0 %v14452_v39  ;;  %v14512_v38 = vld [vmem:[#allocation7 + $0xf34] ss:$24 sps:$4 sm:$0xff]   ;;  %v15797_v39 = vpack.c.bf16 %v5255_v34, %v5255_v34  ;;  %v14570_v34 = vld [vmem:[#allocation7 + $0x1110] ss:$24 sps:$4 sm:$0xff]  }
 0x44f   :  { %9180 = vmatprep.subr.bf16.mxu1 %v14455_v46  ;;  %v14515_v46 = vld [vmem:[#allocation7 + $0xf3c] ss:$24 sps:$4 sm:$0xff]  }
 0x451   :  { %8935 = vmatpush1.bf16.msra.mxu0 %v14450_v47  ;;  %v14510_v47 = vld [vmem:[#allocation7 + $0xf30] ss:$24 sps:$4 sm:$0xff]  }
 0x452   :  { %9181 = vmatpush1.bf16.msra.mxu1 %v14453_v49  ;;  %8936 = vmatprep.subr.bf16.mxu0 %v14458_v50  ;;  %v14518_v49 = vld [vmem:[#allocation7 + $0xf64] ss:$24 sps:$4 sm:$0xff]  }
 0x453   :  { %9182 = vmatprep.subr.bf16.mxu1 %v14461_v51  ;;  %v14521_v50 = vld [vmem:[#allocation7 + $0xf6c] ss:$24 sps:$4 sm:$0xff]   ;;  %v14516_v51 = vld [vmem:[#allocation7 + $0xf60] ss:$24 sps:$4 sm:$0xff]  }
 0x455   :  { %8937 = vmatpush1.bf16.msra.mxu0 %v14456_v54  ;;  %v14519_v54 = vld [vmem:[#allocation7 + $0xf68] ss:$24 sps:$4 sm:$0xff]  }
 0x456   :  { %9183 = vmatpush1.bf16.msra.mxu1 %v14459_v56  ;;  %8938 = vmatprep.subr.bf16.mxu0 %v14464_v60  ;;  %v14524_v56 = vld [vmem:[#allocation7 + $0xf94] ss:$24 sps:$4 sm:$0xff]  }
 0x457   :  { %9184 = vmatprep.subr.bf16.mxu1 %v14467_v63  ;;  %v14527_v60 = vld [vmem:[#allocation7 + $0xf9c] ss:$24 sps:$4 sm:$0xff]   ;;  %v14522_v63 = vld [vmem:[#allocation7 + $0xf90] ss:$24 sps:$4 sm:$0xff]  }
 0x459   :  { %8939 = vmatpush1.bf16.msra.mxu0 %v14462_v0  ;;  %v14525_v0 = vld [vmem:[#allocation7 + $0xf98] ss:$24 sps:$4 sm:$0xff]  }
 0x45a   :  { %9185 = vmatpush1.bf16.msra.mxu1 %v14465_v44  ;;  %8940 = vmatprep.subr.bf16.mxu0 %v14470_v2  ;;  %v14530_v44 = vld [vmem:[#allocation7 + $0xfc4] ss:$24 sps:$4 sm:$0xff]  }
 0x45b   :  { %9186 = vmatprep.subr.bf16.mxu1 %v14473_v4  ;;  %v14533_v2 = vld [vmem:[#allocation7 + $0xfcc] ss:$24 sps:$4 sm:$0xff]   ;;  %v14528_v4 = vld [vmem:[#allocation7 + $0xfc0] ss:$24 sps:$4 sm:$0xff]  }
 0x45d   :  { %8941 = vmatpush1.bf16.msra.mxu0 %v14468_v6  ;;  %v14531_v6 = vld [vmem:[#allocation7 + $0xfc8] ss:$24 sps:$4 sm:$0xff]  }
 0x45e   :  { %9187 = vmatpush1.bf16.msra.mxu1 %v14471_v7  ;;  %8942 = vmatprep.subr.bf16.mxu0 %v14476_v8  ;;  %v14536_v7 = vld [vmem:[#allocation7 + $0xff4] ss:$24 sps:$4 sm:$0xff]  }
 0x45f   :  { %9188 = vmatprep.subr.bf16.mxu1 %v14479_v11  ;;  %v14539_v8 = vld [vmem:[#allocation7 + $0xffc] ss:$24 sps:$4 sm:$0xff]   ;;  %v14534_v11 = vld [vmem:[#allocation7 + $0xff0] ss:$24 sps:$4 sm:$0xff]  }
 0x461   :  { %8943 = vmatpush1.bf16.msra.mxu0 %v14474_v53  ;;  %v14537_v53 = vld [vmem:[#allocation7 + $0xff8] ss:$24 sps:$4 sm:$0xff]  }
 0x462   :  { %9189 = vmatpush1.bf16.msra.mxu1 %v14477_v14  ;;  %8944 = vmatprep.subr.bf16.mxu0 %v14482_v48  ;;  %v14542_v14 = vld [vmem:[#allocation7 + $0x1024] ss:$24 sps:$4 sm:$0xff]  }
 0x463   :  { %9190 = vmatprep.subr.bf16.mxu1 %v14485_v16  ;;  %v14545_v48 = vld [vmem:[#allocation7 + $0x102c] ss:$24 sps:$4 sm:$0xff]   ;;  %v14540_v16 = vld [vmem:[#allocation7 + $0x1020] ss:$24 sps:$4 sm:$0xff]  }
 0x465   :  { %8945 = vmatpush1.bf16.msra.mxu0 %v14480_v17  ;;  %v14543_v17 = vld [vmem:[#allocation7 + $0x1028] ss:$24 sps:$4 sm:$0xff]  }
 0x466   :  { %9191 = vmatpush1.bf16.msra.mxu1 %v14483_v18  ;;  %8946 = vmatprep.subr.bf16.mxu0 %v14488_v5  ;;  %v14548_v18 = vld [vmem:[#allocation7 + $0x1054] ss:$24 sps:$4 sm:$0xff]  }
 0x467   :  { %9192 = vmatprep.subr.bf16.mxu1 %v14491_v20  ;;  %v14551_v5 = vld [vmem:[#allocation7 + $0x105c] ss:$24 sps:$4 sm:$0xff]   ;;  %v14546_v20 = vld [vmem:[#allocation7 + $0x1050] ss:$24 sps:$4 sm:$0xff]  }
 0x469   :  { %8947 = vmatpush1.bf16.msra.mxu0 %v14486_v52  ;;  %v14549_v52 = vld [vmem:[#allocation7 + $0x1058] ss:$24 sps:$4 sm:$0xff]  }
 0x46a   :  { %9193 = vmatpush1.bf16.msra.mxu1 %v14489_v23  ;;  %8948 = vmatprep.subr.bf16.mxu0 %v14494_v24  ;;  %v14557_v23 = vld [vmem:[#allocation7 + $0x108c] ss:$24 sps:$4 sm:$0xff]   ;;  %v14552_v24 = vld [vmem:[#allocation7 + $0x1080] ss:$24 sps:$4 sm:$0xff]  }
 0x46b   :  { %9194 = vmatprep.subr.bf16.mxu1 %v14497_v30  ;;  %v14555_v30 = vld [vmem:[#allocation7 + $0x1088] ss:$24 sps:$4 sm:$0xff]  }
 0x46d   :  { %8949 = vmatpush1.bf16.msra.mxu0 %v14492_v26  ;;  %v14560_v26 = vld [vmem:[#allocation7 + $0x10b4] ss:$24 sps:$4 sm:$0xff]  }
 0x46e   :  { %9195 = vmatpush1.bf16.msra.mxu1 %v14495_v27  ;;  %8950 = vmatprep.subr.bf16.mxu0 %v14500_v10  ;;  %v14558_v27 = vld [vmem:[#allocation7 + $0x10b0] ss:$24 sps:$4 sm:$0xff]  }
 0x46f   :  { %9196 = vmatprep.subr.bf16.mxu1 %v14503_v31  ;;  %v14561_v10 = vld [vmem:[#allocation7 + $0x10b8] ss:$24 sps:$4 sm:$0xff]   ;;  %v14566_v31 = vld [vmem:[#allocation7 + $0x10e4] ss:$24 sps:$4 sm:$0xff]  }
 0x471   :  { %8951 = vmatpush1.bf16.msra.mxu0 %v14498_v32  ;;  %v14569_v32 = vld [vmem:[#allocation7 + $0x10ec] ss:$24 sps:$4 sm:$0xff]  }
 0x472   :  { %9197 = vmatpush1.bf16.msra.mxu1 %v14501_v40  ;;  %8961 = vmatprep.subr.bf16.mxu0 %v14506_v19  ;;  %v14567_v40 = vld [vmem:[#allocation7 + $0x10e8] ss:$24 sps:$4 sm:$0xff]   ;;  %v14572_v19 = vld [vmem:[#allocation7 + $0x1114] ss:$24 sps:$4 sm:$0xff]  }
 0x473   :  { %9207 = vmatprep.subr.bf16.mxu1 %v14509_v33  ;;  %v14575_v33 = vld [vmem:[#allocation7 + $0x111c] ss:$24 sps:$4 sm:$0xff]  }
 0x474   :  { %8953 = vmatmul.mubr.bf16.vlgmr.msra.gmra.mrb[12].mxu0 %v15795_v42 }
 0x475   :  { %9199 = vmatmul.mubr.bf16.vlgmr.msra.gmra.mrb[12].mxu1 %v15795_v42  ;;  %8962 = vmatpush1.bf16.msra.mxu0 %v14504_v35  ;;  %v14573_v35 = vld [vmem:[#allocation7 + $0x1118] ss:$24 sps:$4 sm:$0xff]  }
 0x476   :  { %8993 = vmatprep.mubr.bf16.mxu0 %v15797_v39  ;;  %9208 = vmatpush1.bf16.msra.mxu1 %v14507_v37  ;;  %v14578_v37 = vld [vmem:[#allocation7 + $0x1144] ss:$24 sps:$4 sm:$0xff]  }
 0x477   :  { %9239 = vmatprep.mubr.bf16.mxu1 %v15797_v39  ;;  %8963 = vmatprep.subr.bf16.mxu0 %v14512_v38  ;;  %v14581_v38 = vld [vmem:[#allocation7 + $0x114c] ss:$24 sps:$4 sm:$0xff]  }
 0x478   :  { %9209 = vmatprep.subr.bf16.mxu1 %v14515_v46  ;;  %v14576_v46 = vld [vmem:[#allocation7 + $0x1140] ss:$24 sps:$4 sm:$0xff]  }
 0x479   :  { %8964 = vmatpush1.bf16.msra.mxu0 %v14510_v47  ;;  %v14579_v47 = vld [vmem:[#allocation7 + $0x1148] ss:$24 sps:$4 sm:$0xff]  }
 0x47a   :  { %9210 = vmatpush1.bf16.msra.mxu1 %v14513_v1  ;;  %8965 = vmatprep.subr.bf16.mxu0 %v14518_v49  ;;  %v14584_v1 = vld [vmem:[#allocation7 + $0x1174] ss:$24 sps:$4 sm:$0xff]  }
 0x47b   :  { %9211 = vmatprep.subr.bf16.mxu1 %v14521_v50  ;;  %v14587_v49 = vld [vmem:[#allocation7 + $0x117c] ss:$24 sps:$4 sm:$0xff]   ;;  %v14582_v50 = vld [vmem:[#allocation7 + $0x1170] ss:$24 sps:$4 sm:$0xff]  }
 0x47d   :  { %8966 = vmatpush1.bf16.msra.mxu0 %v14516_v51  ;;  %v14585_v51 = vld [vmem:[#allocation7 + $0x1178] ss:$24 sps:$4 sm:$0xff]  }
 0x47e   :  { %9212 = vmatpush1.bf16.msra.mxu1 %v14519_v54  ;;  %8967 = vmatprep.subr.bf16.mxu0 %v14524_v56  ;;  %v14590_v54 = vld [vmem:[#allocation7 + $0x11a4] ss:$24 sps:$4 sm:$0xff]  }
 0x47f   :  { %9213 = vmatprep.subr.bf16.mxu1 %v14527_v60  ;;  %v14593_v56 = vld [vmem:[#allocation7 + $0x11ac] ss:$24 sps:$4 sm:$0xff]   ;;  %v14588_v60 = vld [vmem:[#allocation7 + $0x11a0] ss:$24 sps:$4 sm:$0xff]  }
 0x481   :  { %8968 = vmatpush1.bf16.msra.mxu0 %v14522_v63  ;;  %v14591_v63 = vld [vmem:[#allocation7 + $0x11a8] ss:$24 sps:$4 sm:$0xff]  }
 0x482   :  { %9214 = vmatpush1.bf16.msra.mxu1 %v14525_v0  ;;  %8969 = vmatprep.subr.bf16.mxu0 %v14530_v44  ;;  %v14596_v0 = vld [vmem:[#allocation7 + $0x11d4] ss:$24 sps:$4 sm:$0xff]  }
 0x483   :  { %9215 = vmatprep.subr.bf16.mxu1 %v14533_v2  ;;  %v14599_v44 = vld [vmem:[#allocation7 + $0x11dc] ss:$24 sps:$4 sm:$0xff]   ;;  %v14594_v2 = vld [vmem:[#allocation7 + $0x11d0] ss:$24 sps:$4 sm:$0xff]  }
 0x485   :  { %8970 = vmatpush1.bf16.msra.mxu0 %v14528_v4  ;;  %v5254_v4 = vmax.f32 %v15773_v62, 0.0  ;;  %v14608_v62 = vld [vmem:[#allocation7 + $0x74] ss:$24 sps:$4 sm:$0xff]  }
 0x486   :  { %9216 = vmatpush1.bf16.msra.mxu1 %v14531_v6  ;;  %8971 = vmatprep.subr.bf16.mxu0 %v14536_v7  ;;  %v14597_v6 = vld [vmem:[#allocation7 + $0x11d8] ss:$24 sps:$4 sm:$0xff]   ;;  %v14602_v7 = vld [vmem:[#allocation7 + $0x14] ss:$24 sps:$4 sm:$0xff]  }
 0x487   :  { %9217 = vmatprep.subr.bf16.mxu1 %v14539_v8  ;;  %v14600_v8 = vld [vmem:[#allocation7 + $0x10] ss:$24 sps:$4 sm:$0xff]  }
 0x489   :  { %8972 = vmatpush1.bf16.msra.mxu0 %v14534_v11  ;;  %v15804_v11 = vpack.c.bf16 %v5254_v4, %v5254_v4  ;;  %v14759_v4 = vld [vmem:[#allocation10 + $0xe0] ss:$16 sps:$4 sm:$0xff]  }
 0x48a   :  { %9218 = vmatpush1.bf16.msra.mxu1 %v14537_v53  ;;  %8973 = vmatprep.subr.bf16.mxu0 %v14542_v14  ;;  %v14605_v53 = vld [vmem:[#allocation7 + $0x44] ss:$24 sps:$4 sm:$0xff]   ;;  %v14603_v14 = vld [vmem:[#allocation7 + $0x40] ss:$24 sps:$4 sm:$0xff]  }
 0x48b   :  { %9219 = vmatprep.subr.bf16.mxu1 %v14545_v48  ;;  %v14606_v48 = vld [vmem:[#allocation7 + $0x70] ss:$24 sps:$4 sm:$0xff]  }
 0x48d   :  { %8974 = vmatpush1.bf16.msra.mxu0 %v14540_v16  ;;  %v14611_v16 = vld [vmem:[#allocation7 + $0xa4] ss:$24 sps:$4 sm:$0xff]  }
 0x48e   :  { %9220 = vmatpush1.bf16.msra.mxu1 %v14543_v17  ;;  %8975 = vmatprep.subr.bf16.mxu0 %v14548_v18  ;;  %v14609_v17 = vld [vmem:[#allocation7 + $0xa0] ss:$24 sps:$4 sm:$0xff]   ;;  %v14614_v18 = vld [vmem:[#allocation7 + $0xd4] ss:$24 sps:$4 sm:$0xff]  }
 0x48f   :  { %9221 = vmatprep.subr.bf16.mxu1 %v14551_v5  ;;  %v14612_v5 = vld [vmem:[#allocation7 + $0xd0] ss:$24 sps:$4 sm:$0xff]  }
 0x491   :  { %8976 = vmatpush1.bf16.msra.mxu0 %v14546_v20  ;;  %v14617_v20 = vld [vmem:[#allocation7 + $0x104] ss:$24 sps:$4 sm:$0xff]  }
 0x492   :  { %9222 = vmatpush1.bf16.msra.mxu1 %v14549_v52  ;;  %8977 = vmatprep.subr.bf16.mxu0 %v14554_v22  ;;  %v14615_v52 = vld [vmem:[#allocation7 + $0x100] ss:$24 sps:$4 sm:$0xff]   ;;  %v14620_v22 = vld [vmem:[#allocation7 + $0x134] ss:$24 sps:$4 sm:$0xff]  }
 0x493   :  { %9223 = vmatprep.subr.bf16.mxu1 %v14557_v23  ;;  %v14623_v23 = vld [vmem:[#allocation7 + $0x164] ss:$24 sps:$4 sm:$0xff]  }
 0x495   :  { %8978 = vmatpush1.bf16.msra.mxu0 %v14552_v24  ;;  %v14621_v24 = vld [vmem:[#allocation7 + $0x160] ss:$24 sps:$4 sm:$0xff]  }
 0x496   :  { %9224 = vmatpush1.bf16.msra.mxu1 %v14555_v30  ;;  %8979 = vmatprep.subr.bf16.mxu0 %v14560_v26  ;;  %v14717_v30 = vld [vmem:[#allocation10] ss:$16 sps:$4 sm:$0xff]   ;;  %v14719_v26 = vld [vmem:[#allocation10 + $0x4] ss:$16 sps:$4 sm:$0xff]  }
 0x497   :  { %9225 = vmatprep.subr.bf16.mxu1 %v14563_v41  ;;  %v14626_v41 = vld [vmem:[#allocation7 + $0x194] ss:$24 sps:$4 sm:$0xff]  }
 0x499   :  { %8980 = vmatpush1.bf16.msra.mxu0 %v14558_v27  ;;  %v14624_v27 = vld [vmem:[#allocation7 + $0x190] ss:$24 sps:$4 sm:$0xff]  }
 0x49a   :  { %9226 = vmatpush1.bf16.msra.mxu1 %v14561_v10  ;;  %8981 = vmatprep.subr.bf16.mxu0 %v14566_v31  ;;  %v14723_v10 = vld [vmem:[#allocation10 + $0x20] ss:$16 sps:$4 sm:$0xff]   ;;  %v14725_v31 = vld [vmem:[#allocation10 + $0x24] ss:$16 sps:$4 sm:$0xff]  }
 0x49b   :  { %9227 = vmatprep.subr.bf16.mxu1 %v14569_v32  ;;  %v14629_v32 = vld [vmem:[#allocation7 + $0x1c4] ss:$24 sps:$4 sm:$0xff]  }
 0x49d   :  { %8982 = vmatpush1.bf16.msra.mxu0 %v14564_v15  ;;  %v14627_v15 = vld [vmem:[#allocation7 + $0x1c0] ss:$24 sps:$4 sm:$0xff]  }
 0x49e   :  { %9228 = vmatpush1.bf16.msra.mxu1 %v14567_v40  ;;  %8983 = vmatprep.subr.bf16.mxu0 %v14572_v19  ;;  %v14729_v40 = vld [vmem:[#allocation10 + $0x40] ss:$16 sps:$4 sm:$0xff]   ;;  %v14731_v19 = vld [vmem:[#allocation10 + $0x44] ss:$16 sps:$4 sm:$0xff]  }
 0x49f   :  { %9229 = vmatprep.subr.bf16.mxu1 %v14575_v33  ;;  %v14632_v33 = vld [vmem:[#allocation7 + $0x1f4] ss:$24 sps:$4 sm:$0xff]  }
 0x4a1   :  { %8984 = vmatpush1.bf16.msra.mxu0 %v14570_v34  ;;  %v14630_v34 = vld [vmem:[#allocation7 + $0x1f0] ss:$24 sps:$4 sm:$0xff]  }
 0x4a2   :  { %9230 = vmatpush1.bf16.msra.mxu1 %v14573_v35  ;;  %8985 = vmatprep.subr.bf16.mxu0 %v14578_v37  ;;  %v14735_v35 = vld [vmem:[#allocation10 + $0x60] ss:$16 sps:$4 sm:$0xff]   ;;  %v14737_v37 = vld [vmem:[#allocation10 + $0x64] ss:$16 sps:$4 sm:$0xff]  }
 0x4a3   :  { %9231 = vmatprep.subr.bf16.mxu1 %v14581_v38  ;;  %v14635_v38 = vld [vmem:[#allocation7 + $0x224] ss:$24 sps:$4 sm:$0xff]  }
 0x4a5   :  { %8986 = vmatpush1.bf16.msra.mxu0 %v14576_v46  ;;  %v14633_v46 = vld [vmem:[#allocation7 + $0x220] ss:$24 sps:$4 sm:$0xff]  }
 0x4a6   :  { %9232 = vmatpush1.bf16.msra.mxu1 %v14579_v47  ;;  %8987 = vmatprep.subr.bf16.mxu0 %v14584_v1  ;;  %v14741_v47 = vld [vmem:[#allocation10 + $0x80] ss:$16 sps:$4 sm:$0xff]   ;;  %v14743_v1 = vld [vmem:[#allocation10 + $0x84] ss:$16 sps:$4 sm:$0xff]  }
 0x4a7   :  { %9233 = vmatprep.subr.bf16.mxu1 %v14587_v49  ;;  %v14638_v49 = vld [vmem:[#allocation7 + $0x254] ss:$24 sps:$4 sm:$0xff]  }
 0x4a9   :  { %8988 = vmatpush1.bf16.msra.mxu0 %v14582_v50  ;;  %v14636_v50 = vld [vmem:[#allocation7 + $0x250] ss:$24 sps:$4 sm:$0xff]  }
 0x4aa   :  { %9234 = vmatpush1.bf16.msra.mxu1 %v14585_v51  ;;  %8989 = vmatprep.subr.bf16.mxu0 %v14590_v54  ;;  %v14747_v51 = vld [vmem:[#allocation10 + $0xa0] ss:$16 sps:$4 sm:$0xff]   ;;  %v14749_v54 = vld [vmem:[#allocation10 + $0xa4] ss:$16 sps:$4 sm:$0xff]  }
 0x4ab   :  { %9235 = vmatprep.subr.bf16.mxu1 %v14593_v56  ;;  %v14641_v56 = vld [vmem:[#allocation7 + $0x284] ss:$24 sps:$4 sm:$0xff]  }
 0x4ad   :  { %8990 = vmatpush1.bf16.msra.mxu0 %v14588_v60  ;;  %v14639_v60 = vld [vmem:[#allocation7 + $0x280] ss:$24 sps:$4 sm:$0xff]  }
 0x4ae   :  { %9236 = vmatpush1.bf16.msra.mxu1 %v14591_v63  ;;  %8991 = vmatprep.subr.bf16.mxu0 %v14596_v0  ;;  %v14753_v63 = vld [vmem:[#allocation10 + $0xc0] ss:$16 sps:$4 sm:$0xff]   ;;  %v14755_v0 = vld [vmem:[#allocation10 + $0xc4] ss:$16 sps:$4 sm:$0xff]  }
 0x4af   :  { %9237 = vmatprep.subr.bf16.mxu1 %v14599_v44  ;;  %v14644_v44 = vld [vmem:[#allocation7 + $0x2b4] ss:$24 sps:$4 sm:$0xff]  }
 0x4b1   :  { %8992 = vmatpush1.bf16.msra.mxu0 %v14594_v2  ;;  %v14642_v2 = vld [vmem:[#allocation7 + $0x2b0] ss:$24 sps:$4 sm:$0xff]  }
 0x4b2   :  { %9238 = vmatpush1.bf16.msra.mxu1 %v14597_v6  ;;  %9248 = vmatprep.subr.bf16.mxu0 %v14602_v7  ;;  %v14761_v6 = vld [vmem:[#allocation10 + $0xe4] ss:$16 sps:$4 sm:$0xff]  }
 0x4b3   :  { %10680 = vmatprep.subr.bf16.mxu1 %v14719_v26  ;;  %v14647_v7 = vld [vmem:[#allocation7 + $0x2e4] ss:$24 sps:$4 sm:$0xff]  }
 0x4b4   :  { %8994 = vmatmul.mubr.bf16.vlgmr.msra.gmra.mrb[12].mxu0 %v15804_v11  ;;  %v14789_v26 = vld [vmem:[#allocation10 + $0x180] ss:$16 sps:$4 sm:$0xff]  }
 0x4b5   :  { %9240 = vmatmul.mubr.bf16.vlgmr.msra.gmra.mrb[12].mxu1 %v15804_v11  ;;  %9249 = vmatpush1.bf16.msra.mxu0 %v14600_v8  ;;  %v14645_v8 = vld [vmem:[#allocation7 + $0x2e0] ss:$24 sps:$4 sm:$0xff]  }
 0x4b6   :  { %9280 = vmatprep.mubr.bf16.mxu0 %v15699_v12  ;;  %9250 = vmatprep.subr.bf16.mxu0 %v14605_v53  ;;  %v14618_v12 = vld [vmem:[#allocation7 + $0x130] ss:$24 sps:$4 sm:$0xff]  }
 0x4b7   :  { %10681 = vmatpush1.bf16.msra.mxu1 %v14717_v30  ;;  %v14765_v53 = vld [vmem:[#allocation10 + $0x100] ss:$16 sps:$4 sm:$0xff]  }
 0x4b8   :  { %10682 = vmatprep.subr.bf16.mxu1 %v14725_v31  ;;  %v14659_v30 = vld [vmem:[#allocation7 + $0x3a4] ss:$24 sps:$4 sm:$0xff]  }
 0x4b9   :  { %9251 = vmatpush1.bf16.msra.mxu0 %v14603_v14  ;;  %v14767_v14 = vld [vmem:[#allocation10 + $0x104] ss:$16 sps:$4 sm:$0xff]  }
 0x4ba   :  { %9252 = vmatprep.subr.bf16.mxu0 %v14608_v62  ;;  %v14650_v62 = vld [vmem:[#allocation7 + $0x314] ss:$24 sps:$4 sm:$0xff]  }
 0x4bb   :  { %10683 = vmatpush1.bf16.msra.mxu1 %v14723_v10  ;;  %v14795_v10 = vld [vmem:[#allocation10 + $0x1a0] ss:$16 sps:$4 sm:$0xff]   ;;  %v14797_v31 = vld [vmem:[#allocation10 + $0x1a4] ss:$16 sps:$4 sm:$0xff]  }
 0x4bc   :  { %10684 = vmatprep.subr.bf16.mxu1 %v14731_v19  ;;  %v14803_v19 = vld [vmem:[#allocation10 + $0x1c4] ss:$16 sps:$4 sm:$0xff]  }
 0x4bd   :  { %9253 = vmatpush1.bf16.msra.mxu0 %v14606_v48  ;;  %v14648_v48 = vld [vmem:[#allocation7 + $0x310] ss:$24 sps:$4 sm:$0xff]  }
 0x4be   :  { %9254 = vmatprep.subr.bf16.mxu0 %v14611_v16  ;;  %v14771_v16 = vld [vmem:[#allocation10 + $0x120] ss:$16 sps:$4 sm:$0xff]  }
 0x4bf   :  { %10685 = vmatpush1.bf16.msra.mxu1 %v14729_v40  ;;  %v14668_v40 = vld [vmem:[#allocation7 + $0x434] ss:$24 sps:$4 sm:$0xff]  }
 0x4c0   :  { %10686 = vmatprep.subr.bf16.mxu1 %v14737_v37  ;;  %v14809_v37 = vld [vmem:[#allocation10 + $0x1e4] ss:$16 sps:$4 sm:$0xff]  }
 0x4c1   :  { %9255 = vmatpush1.bf16.msra.mxu0 %v14609_v17  ;;  %v14773_v17 = vld [vmem:[#allocation10 + $0x124] ss:$16 sps:$4 sm:$0xff]  }
 0x4c2   :  { %9256 = vmatprep.subr.bf16.mxu0 %v14614_v18  ;;  %v14653_v18 = vld [vmem:[#allocation7 + $0x344] ss:$24 sps:$4 sm:$0xff]  }
 0x4c3   :  { %10687 = vmatpush1.bf16.msra.mxu1 %v14735_v35  ;;  %v14671_v35 = vld [vmem:[#allocation7 + $0x464] ss:$24 sps:$4 sm:$0xff]  }
 0x4c4   :  { %10688 = vmatprep.subr.bf16.mxu1 %v14743_v1  ;;  %v14815_v1 = vld [vmem:[#allocation10 + $0x204] ss:$16 sps:$4 sm:$0xff]  }
 0x4c5   :  { %9257 = vmatpush1.bf16.msra.mxu0 %v14612_v5  ;;  %v14651_v5 = vld [vmem:[#allocation7 + $0x340] ss:$24 sps:$4 sm:$0xff]  }
 0x4c6   :  { %9258 = vmatprep.subr.bf16.mxu0 %v14617_v20  ;;  %v14777_v20 = vld [vmem:[#allocation10 + $0x140] ss:$16 sps:$4 sm:$0xff]  }
 0x4c7   :  { %10689 = vmatpush1.bf16.msra.mxu1 %v14741_v47  ;;  %v14674_v47 = vld [vmem:[#allocation7 + $0x494] ss:$24 sps:$4 sm:$0xff]  }
 0x4c8   :  { %10690 = vmatprep.subr.bf16.mxu1 %v14749_v54  ;;  %v14680_v54 = vld [vmem:[#allocation7 + $0x4f4] ss:$24 sps:$4 sm:$0xff]  }
 0x4c9   :  { %9259 = vmatpush1.bf16.msra.mxu0 %v14615_v52  ;;  %v14779_v52 = vld [vmem:[#allocation10 + $0x144] ss:$16 sps:$4 sm:$0xff]  }
 0x4ca   :  { %9260 = vmatprep.subr.bf16.mxu0 %v14620_v22  ;;  %v14656_v22 = vld [vmem:[#allocation7 + $0x374] ss:$24 sps:$4 sm:$0xff]  }
 0x4cb   :  { %10691 = vmatpush1.bf16.msra.mxu1 %v14747_v51  ;;  %v14675_v51 = vld [vmem:[#allocation7 + $0x4c0] ss:$24 sps:$4 sm:$0xff]  }
 0x4cc   :  { %10692 = vmatprep.subr.bf16.mxu1 %v14755_v0  ;;  %v14686_v0 = vld [vmem:[#allocation7 + $0x554] ss:$24 sps:$4 sm:$0xff]  }
 0x4cd   :  { %9261 = vmatpush1.bf16.msra.mxu0 %v14618_v12  ;;  %v14654_v12 = vld [vmem:[#allocation7 + $0x370] ss:$24 sps:$4 sm:$0xff]  }
 0x4ce   :  { %9262 = vmatprep.subr.bf16.mxu0 %v14623_v23  ;;  %v14783_v23 = vld [vmem:[#allocation10 + $0x160] ss:$16 sps:$4 sm:$0xff]  }
 0x4cf   :  { %10693 = vmatpush1.bf16.msra.mxu1 %v14753_v63  ;;  %v14681_v63 = vld [vmem:[#allocation7 + $0x520] ss:$24 sps:$4 sm:$0xff]  }
 0x4d0   :  { %10694 = vmatprep.subr.bf16.mxu1 %v14761_v6  ;;  %v14692_v6 = vld [vmem:[#allocation7 + $0x5b4] ss:$24 sps:$4 sm:$0xff]  }
 0x4d1   :  { %9263 = vmatpush1.bf16.msra.mxu0 %v14621_v24  ;;  %v14785_v24 = vld [vmem:[#allocation10 + $0x164] ss:$16 sps:$4 sm:$0xff]  }
 0x4d2   :  { %9264 = vmatprep.subr.bf16.mxu0 %v14626_v41  ;;  %v14791_v41 = vld [vmem:[#allocation10 + $0x184] ss:$16 sps:$4 sm:$0xff]  }
 0x4d3   :  { %10695 = vmatpush1.bf16.msra.mxu1 %v14759_v4  ;;  %v14687_v4 = vld [vmem:[#allocation7 + $0x580] ss:$24 sps:$4 sm:$0xff]  }
 0x4d4   :  { %10696 = vmatprep.subr.bf16.mxu1 %v14767_v14  ;;  %v14698_v14 = vld [vmem:[#allocation7 + $0x614] ss:$24 sps:$4 sm:$0xff]  }
 0x4d5   :  { %9265 = vmatpush1.bf16.msra.mxu0 %v14624_v27  ;;  %v14660_v27 = vld [vmem:[#allocation7 + $0x3d0] ss:$24 sps:$4 sm:$0xff]  }
 0x4d6   :  { %9266 = vmatprep.subr.bf16.mxu0 %v14629_v32  ;;  %v14665_v32 = vld [vmem:[#allocation7 + $0x404] ss:$24 sps:$4 sm:$0xff]  }
 0x4d7   :  { %10697 = vmatpush1.bf16.msra.mxu1 %v14765_v53  ;;  %v14693_v53 = vld [vmem:[#allocation7 + $0x5e0] ss:$24 sps:$4 sm:$0xff]  }
 0x4d8   :  { %10698 = vmatprep.subr.bf16.mxu1 %v14773_v17  ;;  %v14704_v17 = vld [vmem:[#allocation7 + $0x674] ss:$24 sps:$4 sm:$0xff]  }
 0x4d9   :  { %9267 = vmatpush1.bf16.msra.mxu0 %v14627_v15  ;;  %v14663_v15 = vld [vmem:[#allocation7 + $0x400] ss:$24 sps:$4 sm:$0xff]  }
 0x4da   :  { %9268 = vmatprep.subr.bf16.mxu0 %v14632_v33  ;;  %v14801_v33 = vld [vmem:[#allocation10 + $0x1c0] ss:$16 sps:$4 sm:$0xff]  }
 0x4db   :  { %10699 = vmatpush1.bf16.msra.mxu1 %v14771_v16  ;;  %v14699_v16 = vld [vmem:[#allocation7 + $0x640] ss:$24 sps:$4 sm:$0xff]  }
 0x4dc   :  { %10700 = vmatprep.subr.bf16.mxu1 %v14779_v52  ;;  %v14710_v52 = vld [vmem:[#allocation7 + $0x6d4] ss:$24 sps:$4 sm:$0xff]  }
 0x4dd   :  { %9269 = vmatpush1.bf16.msra.mxu0 %v14630_v34  ;;  %v14666_v34 = vld [vmem:[#allocation7 + $0x430] ss:$24 sps:$4 sm:$0xff]  }
 0x4de   :  { %9270 = vmatprep.subr.bf16.mxu0 %v14635_v38  ;;  %v14807_v38 = vld [vmem:[#allocation10 + $0x1e0] ss:$16 sps:$4 sm:$0xff]  }
 0x4df   :  { %10701 = vmatpush1.bf16.msra.mxu1 %v14777_v20  ;;  %v14705_v20 = vld [vmem:[#allocation7 + $0x6a0] ss:$24 sps:$4 sm:$0xff]  }
 0x4e0   :  { %10702 = vmatprep.subr.bf16.mxu1 %v14785_v24  ;;  %v14722_v24 = vld [vmem:[#allocation7 + $0x764] ss:$24 sps:$4 sm:$0xff]  }
 0x4e1   :  { %9271 = vmatpush1.bf16.msra.mxu0 %v14633_v46  ;;  %v14669_v46 = vld [vmem:[#allocation7 + $0x460] ss:$24 sps:$4 sm:$0xff]  }
 0x4e2   :  { %9272 = vmatprep.subr.bf16.mxu0 %v14638_v49  ;;  %v14672_v49 = vld [vmem:[#allocation7 + $0x490] ss:$24 sps:$4 sm:$0xff]  }
 0x4e3   :  { %10703 = vmatpush1.bf16.msra.mxu1 %v14783_v23  ;;  %v14716_v23 = vld [vmem:[#allocation7 + $0x734] ss:$24 sps:$4 sm:$0xff]  }
 0x4e4   :  { %10704 = vmatprep.subr.bf16.mxu1 %v14791_v41  ;;  %v14734_v41 = vld [vmem:[#allocation7 + $0x7c4] ss:$24 sps:$4 sm:$0xff]  }
 0x4e5   :  { %9273 = vmatpush1.bf16.msra.mxu0 %v14636_v50  ;;  %v14677_v50 = vld [vmem:[#allocation7 + $0x4c4] ss:$24 sps:$4 sm:$0xff]  }
 0x4e6   :  { %9274 = vmatprep.subr.bf16.mxu0 %v14641_v56  ;;  %v14678_v56 = vld [vmem:[#allocation7 + $0x4f0] ss:$24 sps:$4 sm:$0xff]  }
 0x4e7   :  { %10705 = vmatpush1.bf16.msra.mxu1 %v14789_v26  ;;  %v14726_v26 = vld [vmem:[#allocation7 + $0x790] ss:$24 sps:$4 sm:$0xff]  }
 0x4e8   :  { %10706 = vmatprep.subr.bf16.mxu1 %v14797_v31  ;;  %v14746_v31 = vld [vmem:[#allocation7 + $0x824] ss:$24 sps:$4 sm:$0xff]  }
 0x4e9   :  { %9275 = vmatpush1.bf16.msra.mxu0 %v14639_v60  ;;  %v14683_v60 = vld [vmem:[#allocation7 + $0x524] ss:$24 sps:$4 sm:$0xff]  }
 0x4ea   :  { %9276 = vmatprep.subr.bf16.mxu0 %v14644_v44  ;;  %v14684_v44 = vld [vmem:[#allocation7 + $0x550] ss:$24 sps:$4 sm:$0xff]  }
 0x4eb   :  { %10707 = vmatpush1.bf16.msra.mxu1 %v14795_v10  ;;  %v14738_v10 = vld [vmem:[#allocation7 + $0x7f0] ss:$24 sps:$4 sm:$0xff]  }
 0x4ec   :  { %10708 = vmatprep.subr.bf16.mxu1 %v14803_v19  ;;  %v14758_v19 = vld [vmem:[#allocation7 + $0x884] ss:$24 sps:$4 sm:$0xff]  }
 0x4ed   :  { %9277 = vmatpush1.bf16.msra.mxu0 %v14642_v2  ;;  %v14689_v2 = vld [vmem:[#allocation7 + $0x584] ss:$24 sps:$4 sm:$0xff]  }
 0x4ee   :  { %9278 = vmatprep.subr.bf16.mxu0 %v14647_v7  ;;  %v14690_v7 = vld [vmem:[#allocation7 + $0x5b0] ss:$24 sps:$4 sm:$0xff]  }
 0x4ef   :  { %10709 = vmatpush1.bf16.msra.mxu1 %v14801_v33  ;;  %v14756_v33 = vld [vmem:[#allocation7 + $0x880] ss:$24 sps:$4 sm:$0xff]  }
 0x4f0   :  { %10710 = vmatprep.subr.bf16.mxu1 %v14809_v37  ;;  %v14770_v37 = vld [vmem:[#allocation7 + $0x8e4] ss:$24 sps:$4 sm:$0xff]  }
 0x4f1   :  { %9279 = vmatpush1.bf16.msra.mxu0 %v14645_v8  ;;  %v14695_v8 = vld [vmem:[#allocation7 + $0x5e4] ss:$24 sps:$4 sm:$0xff]  }
 0x4f2   :  { %9289 = vmatprep.subr.bf16.mxu0 %v14650_v62  ;;  %v14696_v62 = vld [vmem:[#allocation7 + $0x610] ss:$24 sps:$4 sm:$0xff]  }
 0x4f3   :  { %10711 = vmatpush1.bf16.msra.mxu1 %v14807_v38  ;;  %v14768_v38 = vld [vmem:[#allocation7 + $0x8e0] ss:$24 sps:$4 sm:$0xff]  }
 0x4f4   :  { %9281 = vmatmul.mubr.bf16.vlgmr.msra.gmra.mrb[16].mxu0 %v15718_v28  ;;  %v14657_v28 = vld [vmem:[#allocation7 + $0x3a0] ss:$24 sps:$4 sm:$0xff]   ;;  %10721 = vmatprep.subr.bf16.mxu1 %v14815_v1  ;;  %v14782_v1 = vld [vmem:[#allocation7 + $0x944] ss:$24 sps:$4 sm:$0xff]  }
 0x4f5   :  { %9290 = vmatpush1.bf16.msra.mxu0 %v14648_v48  ;;  %9321 = vmatprep.mubr.bf16.mxu0 %v15720_v29  ;;  %v14662_v29 = vld [vmem:[#allocation7 + $0x3d4] ss:$24 sps:$4 sm:$0xff]   ;;  %v14701_v48 = vld [vmem:[#allocation7 + $0x644] ss:$24 sps:$4 sm:$0xff]  }
 0x4f6   :  { %9291 = vmatprep.subr.bf16.mxu0 %v14653_v18  ;;  %v14702_v18 = vld [vmem:[#allocation7 + $0x670] ss:$24 sps:$4 sm:$0xff]  }
 0x4f9   :  { %9292 = vmatpush1.bf16.msra.mxu0 %v14651_v5  ;;  %v14707_v5 = vld [vmem:[#allocation7 + $0x6a4] ss:$24 sps:$4 sm:$0xff]  }
 0x4fa   :  { %9293 = vmatprep.subr.bf16.mxu0 %v14656_v22  ;;  %v14708_v22 = vld [vmem:[#allocation7 + $0x6d0] ss:$24 sps:$4 sm:$0xff]  }
 0x4fd   :  { %9294 = vmatpush1.bf16.msra.mxu0 %v14654_v12  ;;  %v14713_v12 = vld [vmem:[#allocation7 + $0x704] ss:$24 sps:$4 sm:$0xff]  }
 0x4fe   :  { %9295 = vmatprep.subr.bf16.mxu0 %v14659_v30  ;;  %v14720_v30 = vld [vmem:[#allocation7 + $0x760] ss:$24 sps:$4 sm:$0xff]  }
 0x501   :  { %9296 = vmatpush1.bf16.msra.mxu0 %v14657_v28  ;;  %v14728_v28 = vld [vmem:[#allocation7 + $0x794] ss:$24 sps:$4 sm:$0xff]  }
 0x502   :  { %9297 = vmatprep.subr.bf16.mxu0 %v14662_v29  ;;  %v14732_v29 = vld [vmem:[#allocation7 + $0x7c0] ss:$24 sps:$4 sm:$0xff]  }
 0x505   :  { %9298 = vmatpush1.bf16.msra.mxu0 %v14660_v27  ;;  %v14740_v27 = vld [vmem:[#allocation7 + $0x7f4] ss:$24 sps:$4 sm:$0xff]  }
 0x506   :  { %9299 = vmatprep.subr.bf16.mxu0 %v14665_v32  ;;  %v14744_v32 = vld [vmem:[#allocation7 + $0x820] ss:$24 sps:$4 sm:$0xff]  }
 0x509   :  { %9300 = vmatpush1.bf16.msra.mxu0 %v14663_v15  ;;  %v14752_v15 = vld [vmem:[#allocation7 + $0x854] ss:$24 sps:$4 sm:$0xff]  }
 0x50a   :  { %9301 = vmatprep.subr.bf16.mxu0 %v14668_v40  ;;  %v14750_v40 = vld [vmem:[#allocation7 + $0x850] ss:$24 sps:$4 sm:$0xff]  }
 0x50d   :  { %9302 = vmatpush1.bf16.msra.mxu0 %v14666_v34  ;;  %v14764_v34 = vld [vmem:[#allocation7 + $0x8b4] ss:$24 sps:$4 sm:$0xff]  }
 0x50e   :  { %9303 = vmatprep.subr.bf16.mxu0 %v14671_v35  ;;  %v14762_v35 = vld [vmem:[#allocation7 + $0x8b0] ss:$24 sps:$4 sm:$0xff]  }
 0x511   :  { %9304 = vmatpush1.bf16.msra.mxu0 %v14669_v46  ;;  %v14776_v46 = vld [vmem:[#allocation7 + $0x914] ss:$24 sps:$4 sm:$0xff]  }
 0x512   :  { %9305 = vmatprep.subr.bf16.mxu0 %v14674_v47  ;;  %v14774_v47 = vld [vmem:[#allocation7 + $0x910] ss:$24 sps:$4 sm:$0xff]  }
 0x515   :  { %9306 = vmatpush1.bf16.msra.mxu0 %v14672_v49  ;;  %v14780_v49 = vld [vmem:[#allocation7 + $0x940] ss:$24 sps:$4 sm:$0xff]  }
 0x516   :  { %9307 = vmatprep.subr.bf16.mxu0 %v14677_v50  ;;  %v14788_v50 = vld [vmem:[#allocation7 + $0x974] ss:$24 sps:$4 sm:$0xff]  }
 0x519   :  { %9308 = vmatpush1.bf16.msra.mxu0 %v14675_v51  ;;  %v14786_v51 = vld [vmem:[#allocation7 + $0x970] ss:$24 sps:$4 sm:$0xff]  }
 0x51a   :  { %9309 = vmatprep.subr.bf16.mxu0 %v14680_v54  ;;  %v14794_v54 = vld [vmem:[#allocation7 + $0x9a4] ss:$24 sps:$4 sm:$0xff]  }
 0x51d   :  { %9310 = vmatpush1.bf16.msra.mxu0 %v14678_v56  ;;  %v14792_v56 = vld [vmem:[#allocation7 + $0x9a0] ss:$24 sps:$4 sm:$0xff]  }
 0x51e   :  { %9311 = vmatprep.subr.bf16.mxu0 %v14683_v60  ;;  %v14800_v60 = vld [vmem:[#allocation7 + $0x9d4] ss:$24 sps:$4 sm:$0xff]  }
 0x521   :  { %9312 = vmatpush1.bf16.msra.mxu0 %v14681_v63  ;;  %v14798_v63 = vld [vmem:[#allocation7 + $0x9d0] ss:$24 sps:$4 sm:$0xff]  }
 0x522   :  { %9313 = vmatprep.subr.bf16.mxu0 %v14686_v0  ;;  %v15815_v0 = vld [vmem:[#allocation8] sm:$0x3f] }
 0x525   :  { %9314 = vmatpush1.bf16.msra.mxu0 %v14684_v44  ;;  %v5853_v44 = vrot.slane %v15815_v0, %v15686_v45 }
 0x526   :  { %9315 = vmatprep.subr.bf16.mxu0 %v14689_v2  ;;  %v14804_v2 = vld [vmem:[#allocation7 + $0xa00] ss:$24 sps:$4 sm:$0xff]  }
 0x529   :  { %9316 = vmatpush1.bf16.msra.mxu0 %v14687_v4  ;;  %v5861_v4 = vrot.slane %v15815_v0, %v15710_v9 }
 0x52a   :  { %9317 = vmatprep.subr.bf16.mxu0 %v14692_v6  ;;  %v14812_v6 = vld [vmem:[#allocation7 + $0xa34] ss:$24 sps:$4 sm:$0xff]  }
 0x52d   :  { %9318 = vmatpush1.bf16.msra.mxu0 %v14690_v7 }
 0x52e   :  { %9319 = vmatprep.subr.bf16.mxu0 %v14695_v8 }
 0x531   :  { %9320 = vmatpush1.bf16.msra.mxu0 %v14693_v53 }
 0x532   :  { %9330 = vmatprep.subr.bf16.mxu0 %v14698_v14 }
 0x534   :  { %9322 = vmatmul.mubr.bf16.vlgmr.msra.gmra.mrb[16].mxu0 %v15739_v58  ;;  %v14711_v58 = vld [vmem:[#allocation7 + $0x700] ss:$24 sps:$4 sm:$0xff]  }
 0x535   :  { %9331 = vmatpush1.bf16.msra.mxu0 %v14696_v62  ;;  %9362 = vmatprep.mubr.bf16.mxu0 %v15741_v59  ;;  %v14714_v59 = vld [vmem:[#allocation7 + $0x730] ss:$24 sps:$4 sm:$0xff]  }
 0x536   :  { %9332 = vmatprep.subr.bf16.mxu0 %v14701_v48 }
 0x539   :  { %9333 = vmatpush1.bf16.msra.mxu0 %v14699_v16 }
 0x53a   :  { %9334 = vmatprep.subr.bf16.mxu0 %v14704_v17  ;;  %v14810_v17 = vld [vmem:[#allocation7 + $0xa30] ss:$24 sps:$4 sm:$0xff]  }
 0x53d   :  { %9335 = vmatpush1.bf16.msra.mxu0 %v14702_v18 }
 0x53e   :  { %9336 = vmatprep.subr.bf16.mxu0 %v14707_v5 }
 0x541   :  { %9337 = vmatpush1.bf16.msra.mxu0 %v14705_v20 }
 0x542   :  { %9338 = vmatprep.subr.bf16.mxu0 %v14710_v52 }
 0x545   :  { %9339 = vmatpush1.bf16.msra.mxu0 %v14708_v22  ;;  %v14818_v22 = vld [vmem:[#allocation7 + $0xa64] ss:$24 sps:$4 sm:$0xff]  }
 0x546   :  { %9340 = vmatprep.subr.bf16.mxu0 %v14713_v12 }
 0x549   :  { %9341 = vmatpush1.bf16.msra.mxu0 %v14711_v58 }
 0x54a   :  { %9342 = vmatprep.subr.bf16.mxu0 %v14716_v23 }
 0x54d   :  { %9343 = vmatpush1.bf16.msra.mxu0 %v14714_v59 }
 0x54e   :  { %9344 = vmatprep.subr.bf16.mxu0 %v14722_v24  ;;  %v14813_v24 = vld [vmem:[#allocation10 + $0x200] ss:$16 sps:$4 sm:$0xff]  }
 0x551   :  { %9345 = vmatpush1.bf16.msra.mxu0 %v14720_v30  ;;  %v14816_v30 = vld [vmem:[#allocation7 + $0xa60] ss:$24 sps:$4 sm:$0xff]  }
 0x552   :  { %9346 = vmatprep.subr.bf16.mxu0 %v14728_v28 }
 0x555   :  { %9347 = vmatpush1.bf16.msra.mxu0 %v14726_v26  ;;  %v14821_v26 = vld [vmem:[#allocation10 + $0x224] ss:$16 sps:$4 sm:$0xff]  }
 0x556   :  { %9348 = vmatprep.subr.bf16.mxu0 %v14734_v41  ;;  %v14824_v41 = vld [vmem:[#allocation7 + $0xa94] ss:$24 sps:$4 sm:$0xff]  }
 0x559   :  { %9349 = vmatpush1.bf16.msra.mxu0 %v14732_v29 }
 0x55a   :  { %9350 = vmatprep.subr.bf16.mxu0 %v14740_v27  ;;  %v14819_v27 = vld [vmem:[#allocation10 + $0x220] ss:$16 sps:$4 sm:$0xff]  }
 0x55d   :  { %9351 = vmatpush1.bf16.msra.mxu0 %v14738_v10  ;;  %v14822_v10 = vld [vmem:[#allocation7 + $0xa90] ss:$24 sps:$4 sm:$0xff]  }
 0x55e   :  { %9352 = vmatprep.subr.bf16.mxu0 %v14746_v31  ;;  %v14827_v31 = vld [vmem:[#allocation10 + $0x244] ss:$16 sps:$4 sm:$0xff]  }
 0x561   :  { %9353 = vmatpush1.bf16.msra.mxu0 %v14744_v32  ;;  %v14830_v32 = vld [vmem:[#allocation7 + $0xac4] ss:$24 sps:$4 sm:$0xff]  }
 0x562   :  { %9354 = vmatprep.subr.bf16.mxu0 %v14752_v15  ;;  %v14825_v15 = vld [vmem:[#allocation10 + $0x240] ss:$16 sps:$4 sm:$0xff]  }
 0x565   :  { %9355 = vmatpush1.bf16.msra.mxu0 %v14750_v40  ;;  %v14828_v40 = vld [vmem:[#allocation7 + $0xac0] ss:$24 sps:$4 sm:$0xff]  }
 0x566   :  { %9356 = vmatprep.subr.bf16.mxu0 %v14758_v19  ;;  %v14833_v19 = vld [vmem:[#allocation10 + $0x264] ss:$16 sps:$4 sm:$0xff]  }
 0x569   :  { %9357 = vmatpush1.bf16.msra.mxu0 %v14756_v33  ;;  %v14836_v33 = vld [vmem:[#allocation7 + $0xaf4] ss:$24 sps:$4 sm:$0xff]  }
 0x56a   :  { %9358 = vmatprep.subr.bf16.mxu0 %v14764_v34  ;;  %v14831_v34 = vld [vmem:[#allocation10 + $0x260] ss:$16 sps:$4 sm:$0xff]  }
 0x56d   :  { %9359 = vmatpush1.bf16.msra.mxu0 %v14762_v35  ;;  %v14834_v35 = vld [vmem:[#allocation7 + $0xaf0] ss:$24 sps:$4 sm:$0xff]  }
 0x56e   :  { %9360 = vmatprep.subr.bf16.mxu0 %v14770_v37  ;;  %v14839_v37 = vld [vmem:[#allocation10 + $0x284] ss:$16 sps:$4 sm:$0xff]  }
 0x571   :  { %9361 = vmatpush1.bf16.msra.mxu0 %v14768_v38  ;;  %v14842_v38 = vld [vmem:[#allocation7 + $0xb24] ss:$24 sps:$4 sm:$0xff]  }
 0x572   :  { %9371 = vmatprep.subr.bf16.mxu0 %v14776_v46  ;;  %v14837_v46 = vld [vmem:[#allocation10 + $0x280] ss:$16 sps:$4 sm:$0xff]  }
 0x574   :  { %9363 = vmatmul.mubr.bf16.vlgmr.msra.gmra.mrb[16].mxu0 %v15755_v21  ;;  %v14806_v21 = vld [vmem:[#allocation7 + $0xa04] ss:$24 sps:$4 sm:$0xff]  }
 0x575   :  { %9372 = vmatpush1.bf16.msra.mxu0 %v14774_v47  ;;  %9403 = vmatprep.mubr.bf16.mxu0 %v15757_v57  ;;  %v5849_v57 = vrot.slane %v15815_v0, %v15707_v3  ;;  %v14840_v47 = vld [vmem:[#allocation7 + $0xb20] ss:$24 sps:$4 sm:$0xff]  }
 0x576   :  { %9373 = vmatprep.subr.bf16.mxu0 %v14782_v1  ;;  %v14845_v1 = vld [vmem:[#allocation10 + $0x2a4] ss:$16 sps:$4 sm:$0xff]  }
 0x579   :  { %9374 = vmatpush1.bf16.msra.mxu0 %v14780_v49  ;;  %v14848_v49 = vld [vmem:[#allocation7 + $0xb54] ss:$24 sps:$4 sm:$0xff]  }
 0x57a   :  { %9375 = vmatprep.subr.bf16.mxu0 %v14788_v50  ;;  %v14843_v50 = vld [vmem:[#allocation10 + $0x2a0] ss:$16 sps:$4 sm:$0xff]  }
 0x57d   :  { %9376 = vmatpush1.bf16.msra.mxu0 %v14786_v51  ;;  %v14846_v51 = vld [vmem:[#allocation7 + $0xb50] ss:$24 sps:$4 sm:$0xff]  }
 0x57e   :  { %9377 = vmatprep.subr.bf16.mxu0 %v14794_v54  ;;  %v14851_v54 = vld [vmem:[#allocation10 + $0x2c4] ss:$16 sps:$4 sm:$0xff]  }
 0x581   :  { %9378 = vmatpush1.bf16.msra.mxu0 %v14792_v56  ;;  %v14854_v56 = vld [vmem:[#allocation7 + $0xb84] ss:$24 sps:$4 sm:$0xff]  }
 0x582   :  { %9379 = vmatprep.subr.bf16.mxu0 %v14800_v60  ;;  %v14849_v60 = vld [vmem:[#allocation10 + $0x2c0] ss:$16 sps:$4 sm:$0xff]  }
 0x585   :  { %9380 = vmatpush1.bf16.msra.mxu0 %v14798_v63  ;;  %v14852_v63 = vld [vmem:[#allocation7 + $0xb80] ss:$24 sps:$4 sm:$0xff]  }
 0x586   :  { %9381 = vmatprep.subr.bf16.mxu0 %v14806_v21  ;;  %v14857_v21 = vld [vmem:[#allocation10 + $0x2e4] ss:$16 sps:$4 sm:$0xff]  }
 0x587   :  { %v8995_v7 = vpop.f32.mrb[12].mxu0 }
 0x588   :  { %v12833_v8 = vadd.f32 %v8995_v7, %v5849_v57  ;;  %v15823_v53 = vpop.f32.mrb[12].mxu1  ;;  %v8997_v14 = vpop.f32.mrb[13].mxu0  ;;  %v14860_v57 = vld [vmem:[#allocation7 + $0xbb4] ss:$24 sps:$4 sm:$0xff]  }
 0x589   :  { %v12834_v62 = vadd.f32 %v8997_v14, %v5853_v44  ;;  %v9243_v48 = vpop.f32.mrb[13].mxu1  ;;  %v8999_v16 = vpop.f32.mrb[14].mxu0  ;;  %9382 = vmatpush1.bf16.msra.mxu0 %v14804_v2  ;;  %v14855_v44 = vld [vmem:[#allocation10 + $0x2e0] ss:$16 sps:$4 sm:$0xff]   ;;  %v14869_v14 = vld [vmem:[#allocation10 + $0x324] ss:$16 sps:$4 sm:$0xff]  }
 0x58a   :  { %v9494_v18 = vmax.f32 %v12833_v8, 0.0  ;;  %v12836_v5 = vadd.f32 %v9243_v48, %v5861_v4  ;;  %v9245_v20 = vpop.f32.mrb[14].mxu1  ;;  %v9000_v52 = vpop.f32.mrb[15].mxu0  ;;  %9383 = vmatprep.subr.bf16.mxu0 %v14812_v6  ;;  %v14858_v2 = vld [vmem:[#allocation7 + $0xbb0] ss:$24 sps:$4 sm:$0xff]  }
 0x58b   :  { %v9495_v12 = vmax.f32 %v12834_v62, 0.0  ;;  %v9246_v58 = vpop.f32.mrb[15].mxu1  ;;  %v14863_v4 = vld [vmem:[#allocation10 + $0x304] ss:$16 sps:$4 sm:$0xff]   ;;  %v14861_v7 = vld [vmem:[#allocation10 + $0x300] ss:$16 sps:$4 sm:$0xff]  }
 0x58c   :  { %v9497_v23 = vmax.f32 %v12836_v5, 0.0  ;;  %v15827_v28 = vpack.c.bf16 %v9494_v18, %v9494_v18  ;;  %v14866_v6 = vld [vmem:[#allocation7 + $0xbe4] ss:$24 sps:$4 sm:$0xff]   ;;  %v14864_v8 = vld [vmem:[#allocation7 + $0xbe0] ss:$24 sps:$4 sm:$0xff]  }
 0x58d   :  { %v15825_v59 = vpack.c.bf16 %v9495_v12, %v9495_v12  ;;  %9384 = vmatpush1.bf16.msra.mxu0 %v14810_v17  ;;  %v14872_v62 = vld [vmem:[#allocation7 + $0xc14] ss:$24 sps:$4 sm:$0xff]   ;;  %v14870_v16 = vld [vmem:[#allocation7 + $0xc10] ss:$24 sps:$4 sm:$0xff]   ;;  %v14878_v18 = vld [vmem:[#allocation7 + $0xc44] ss:$24 sps:$4 sm:$0xff]  }
 0x58e   :  { %9385 = vmatprep.subr.bf16.mxu0 %v14818_v22  ;;  %v15830_v29 = vpack.c.bf16 %v9497_v23, %v9497_v23  ;;  %v14867_v48 = vld [vmem:[#allocation10 + $0x320] ss:$16 sps:$4 sm:$0xff]   ;;  %v14875_v17 = vld [vmem:[#allocation10 + $0x344] ss:$16 sps:$4 sm:$0xff]  }
 0x58f   :  { %10712 = vmatprep.mubr.bf16.mxu1 %v15825_v59  ;;  %v14873_v5 = vld [vmem:[#allocation10 + $0x340] ss:$16 sps:$4 sm:$0xff]   ;;  %v14881_v52 = vld [vmem:[#allocation10 + $0x364] ss:$16 sps:$4 sm:$0xff]  }
 0x590   :  { %10713 = vmatmul.mubr.bf16.vlgmr.msra.gmra.mrb[16].mxu1 %v15827_v28  ;;  %v14876_v20 = vld [vmem:[#allocation7 + $0xc40] ss:$24 sps:$4 sm:$0xff]   ;;  %v14884_v22 = vld [vmem:[#allocation7 + $0xc74] ss:$24 sps:$4 sm:$0xff]   ;;  %v14882_v58 = vld [vmem:[#allocation7 + $0xc70] ss:$24 sps:$4 sm:$0xff]  }
 0x591   :  { %10722 = vmatpush1.bf16.msra.mxu1 %v14813_v24  ;;  %9386 = vmatpush1.bf16.msra.mxu0 %v14816_v30  ;;  %v14879_v12 = vld [vmem:[#allocation10 + $0x360] ss:$16 sps:$4 sm:$0xff]   ;;  %v14887_v23 = vld [vmem:[#allocation10 + $0x384] ss:$16 sps:$4 sm:$0xff]  }
 0x592   :  { %10753 = vmatprep.mubr.bf16.mxu1 %v15830_v29  ;;  %10723 = vmatprep.subr.bf16.mxu1 %v14821_v26  ;;  %v14890_v24 = vld [vmem:[#allocation7 + $0xca4] ss:$24 sps:$4 sm:$0xff]   ;;  %v14888_v30 = vld [vmem:[#allocation7 + $0xca0] ss:$24 sps:$4 sm:$0xff]  }
 0x593   :  { %9387 = vmatprep.subr.bf16.mxu0 %v14824_v41  ;;  %v14893_v26 = vld [vmem:[#allocation10 + $0x3a4] ss:$16 sps:$4 sm:$0xff]   ;;  %v14891_v41 = vld [vmem:[#allocation10 + $0x3a0] ss:$16 sps:$4 sm:$0xff]  }
 0x595   :  { %10724 = vmatpush1.bf16.msra.mxu1 %v14819_v27  ;;  %9388 = vmatpush1.bf16.msra.mxu0 %v14822_v10  ;;  %v14894_v27 = vld [vmem:[#allocation7 + $0xcd0] ss:$24 sps:$4 sm:$0xff]   ;;  %v5857_v10 = vrot.slane %v15815_v0, %v15727_v25 }
 0x596   :  { %10725 = vmatprep.subr.bf16.mxu1 %v14827_v31  ;;  %9389 = vmatprep.subr.bf16.mxu0 %v14830_v32  ;;  %v14899_v31 = vld [vmem:[#allocation10 + $0x3c4] ss:$16 sps:$4 sm:$0xff]  }
 0x597   :  { %v14902_v32 = vld [vmem:[#allocation7 + $0xd04] ss:$24 sps:$4 sm:$0xff]  }
 0x599   :  { %10726 = vmatpush1.bf16.msra.mxu1 %v14825_v15  ;;  %9390 = vmatpush1.bf16.msra.mxu0 %v14828_v40  ;;  %v14897_v15 = vld [vmem:[#allocation10 + $0x3c0] ss:$16 sps:$4 sm:$0xff]  }
 0x59a   :  { %10727 = vmatprep.subr.bf16.mxu1 %v14833_v19  ;;  %9391 = vmatprep.subr.bf16.mxu0 %v14836_v33  ;;  %v14900_v40 = vld [vmem:[#allocation7 + $0xd00] ss:$24 sps:$4 sm:$0xff]   ;;  %v12835_v19 = vadd.f32 %v15823_v53, %v5857_v10  ;;  %v14914_v53 = vld [vmem:[#allocation7 + $0xd94] ss:$24 sps:$4 sm:$0xff]   ;;  %v14936_v10 = vld [vmem:[#allocation7 + $0xf10] ss:$24 sps:$4 sm:$0xff]  }
 0x59b   :  { %v14905_v33 = vld [vmem:[#allocation10 + $0x3e4] ss:$16 sps:$4 sm:$0xff]  }
 0x59d   :  { %10728 = vmatpush1.bf16.msra.mxu1 %v14831_v34  ;;  %9392 = vmatpush1.bf16.msra.mxu0 %v14834_v35  ;;  %v14908_v34 = vld [vmem:[#allocation7 + $0xd34] ss:$24 sps:$4 sm:$0xff]  }
 0x59e   :  { %10729 = vmatprep.subr.bf16.mxu1 %v14839_v37  ;;  %9393 = vmatprep.subr.bf16.mxu0 %v14842_v38  ;;  %v14903_v35 = vld [vmem:[#allocation10 + $0x3e0] ss:$16 sps:$4 sm:$0xff]   ;;  %v9496_v38 = vmax.f32 %v12835_v19, 0.0 }
 0x59f   :  { %v14906_v37 = vld [vmem:[#allocation7 + $0xd30] ss:$24 sps:$4 sm:$0xff]   ;;  %v14944_v19 = vld [vmem:[#allocation7 + $0xf74] ss:$24 sps:$4 sm:$0xff]  }
 0x5a1   :  { %10730 = vmatpush1.bf16.msra.mxu1 %v14837_v46  ;;  %9394 = vmatpush1.bf16.msra.mxu0 %v14840_v47  ;;  %v14911_v46 = vld [vmem:[#allocation7 + $0xd64] ss:$24 sps:$4 sm:$0xff]  }
 0x5a2   :  { %10731 = vmatprep.subr.bf16.mxu1 %v14845_v1  ;;  %9395 = vmatprep.subr.bf16.mxu0 %v14848_v49  ;;  %v14986_v47 = vld [vmem:[#allocation10 + $0x404] ss:$16 sps:$4 sm:$0xff]   ;;  %v14984_v49 = vld [vmem:[#allocation10 + $0x400] ss:$16 sps:$4 sm:$0xff]  }
 0x5a3   :  { %v14909_v1 = vld [vmem:[#allocation7 + $0xd60] ss:$24 sps:$4 sm:$0xff]  }
 0x5a5   :  { %10732 = vmatpush1.bf16.msra.mxu1 %v14843_v50  ;;  %9396 = vmatpush1.bf16.msra.mxu0 %v14846_v51  ;;  %v15839_v50 = vpack.c.bf16 %v9496_v38, %v9496_v38  ;;  %v14989_v51 = vld [vmem:[#allocation10 + $0x424] ss:$16 sps:$4 sm:$0xff]   ;;  %v15017_v38 = vld [vmem:[#allocation10 + $0x560] ss:$16 sps:$4 sm:$0xff]  }
 0x5a6   :  { %10733 = vmatprep.subr.bf16.mxu1 %v14851_v54  ;;  %9397 = vmatprep.subr.bf16.mxu0 %v14854_v56  ;;  %v14912_v54 = vld [vmem:[#allocation7 + $0xd90] ss:$24 sps:$4 sm:$0xff]  }
 0x5a7   :  { %v14987_v56 = vld [vmem:[#allocation10 + $0x420] ss:$16 sps:$4 sm:$0xff]  }
 0x5a9   :  { %10734 = vmatpush1.bf16.msra.mxu1 %v14849_v60  ;;  %9398 = vmatpush1.bf16.msra.mxu0 %v14852_v63  ;;  %v14917_v60 = vld [vmem:[#allocation7 + $0xdc4] ss:$24 sps:$4 sm:$0xff]  }
 0x5aa   :  { %10735 = vmatprep.subr.bf16.mxu1 %v14857_v21  ;;  %9399 = vmatprep.subr.bf16.mxu0 %v14860_v57  ;;  %v14992_v63 = vld [vmem:[#allocation10 + $0x444] ss:$16 sps:$4 sm:$0xff]   ;;  %v14990_v57 = vld [vmem:[#allocation10 + $0x440] ss:$16 sps:$4 sm:$0xff]  }
 0x5ab   :  { %v14915_v21 = vld [vmem:[#allocation7 + $0xdc0] ss:$24 sps:$4 sm:$0xff]  }
 0x5ad   :  { %10736 = vmatpush1.bf16.msra.mxu1 %v14855_v44  ;;  %9400 = vmatpush1.bf16.msra.mxu0 %v14858_v2  ;;  %v14920_v44 = vld [vmem:[#allocation7 + $0xdf4] ss:$24 sps:$4 sm:$0xff]  }
 0x5ae   :  { %10737 = vmatprep.subr.bf16.mxu1 %v14863_v4  ;;  %9401 = vmatprep.subr.bf16.mxu0 %v14866_v6  ;;  %v14995_v2 = vld [vmem:[#allocation10 + $0x464] ss:$16 sps:$4 sm:$0xff]   ;;  %v14993_v6 = vld [vmem:[#allocation10 + $0x460] ss:$16 sps:$4 sm:$0xff]  }
 0x5af   :  { %v14918_v4 = vld [vmem:[#allocation7 + $0xdf0] ss:$24 sps:$4 sm:$0xff]  }
 0x5b1   :  { %10738 = vmatpush1.bf16.msra.mxu1 %v14861_v7  ;;  %9402 = vmatpush1.bf16.msra.mxu0 %v14864_v8  ;;  %v14923_v7 = vld [vmem:[#allocation7 + $0xe24] ss:$24 sps:$4 sm:$0xff]  }
 0x5b2   :  { %10739 = vmatprep.subr.bf16.mxu1 %v14869_v14  ;;  %9412 = vmatprep.subr.bf16.mxu0 %v14872_v62  ;;  %v14998_v8 = vld [vmem:[#allocation10 + $0x484] ss:$16 sps:$4 sm:$0xff]   ;;  %v14996_v62 = vld [vmem:[#allocation10 + $0x480] ss:$16 sps:$4 sm:$0xff]  }
 0x5b3   :  { %v14921_v14 = vld [vmem:[#allocation7 + $0xe20] ss:$24 sps:$4 sm:$0xff]  }
 0x5b4   :  { %9404 = vmatmul.mubr.bf16.vlgmr.msra.gmra.mrb[16].mxu0 %v15783_v43  ;;  %v14885_v43 = vld [vmem:[#allocation10 + $0x380] ss:$16 sps:$4 sm:$0xff]  }
 0x5b5   :  { %10740 = vmatpush1.bf16.msra.mxu1 %v14867_v48  ;;  %9413 = vmatpush1.bf16.msra.mxu0 %v14870_v16  ;;  %v14926_v48 = vld [vmem:[#allocation7 + $0xe54] ss:$24 sps:$4 sm:$0xff]  }
 0x5b6   :  { %9444 = vmatprep.mubr.bf16.mxu0 %v15785_v61  ;;  %10741 = vmatprep.subr.bf16.mxu1 %v14875_v17  ;;  %v14896_v61 = vld [vmem:[#allocation7 + $0xcd4] ss:$24 sps:$4 sm:$0xff]   ;;  %v14924_v17 = vld [vmem:[#allocation7 + $0xe50] ss:$24 sps:$4 sm:$0xff]  }
 0x5b7   :  { %9414 = vmatprep.subr.bf16.mxu0 %v14878_v18  ;;  %v15001_v16 = vld [vmem:[#allocation10 + $0x4a4] ss:$16 sps:$4 sm:$0xff]   ;;  %v14999_v18 = vld [vmem:[#allocation10 + $0x4a0] ss:$16 sps:$4 sm:$0xff]  }
 0x5b9   :  { %10742 = vmatpush1.bf16.msra.mxu1 %v14873_v5  ;;  %9415 = vmatpush1.bf16.msra.mxu0 %v14876_v20  ;;  %v14929_v5 = vld [vmem:[#allocation7 + $0xe84] ss:$24 sps:$4 sm:$0xff]  }
 0x5ba   :  { %10743 = vmatprep.subr.bf16.mxu1 %v14881_v52  ;;  %9416 = vmatprep.subr.bf16.mxu0 %v14884_v22  ;;  %v15004_v20 = vld [vmem:[#allocation10 + $0x4c4] ss:$16 sps:$4 sm:$0xff]   ;;  %v15002_v22 = vld [vmem:[#allocation10 + $0x4c0] ss:$16 sps:$4 sm:$0xff]  }
 0x5bb   :  { %v14927_v52 = vld [vmem:[#allocation7 + $0xe80] ss:$24 sps:$4 sm:$0xff]  }
 0x5bd   :  { %10744 = vmatpush1.bf16.msra.mxu1 %v14879_v12  ;;  %9417 = vmatpush1.bf16.msra.mxu0 %v14882_v58  ;;  %v14932_v12 = vld [vmem:[#allocation7 + $0xeb4] ss:$24 sps:$4 sm:$0xff]  }
 0x5be   :  { %10745 = vmatprep.subr.bf16.mxu1 %v14887_v23  ;;  %9418 = vmatprep.subr.bf16.mxu0 %v14890_v24  ;;  %v15007_v58 = vld [vmem:[#allocation10 + $0x4e4] ss:$16 sps:$4 sm:$0xff]   ;;  %v15005_v24 = vld [vmem:[#allocation10 + $0x4e0] ss:$16 sps:$4 sm:$0xff]  }
 0x5bf   :  { %v14930_v23 = vld [vmem:[#allocation7 + $0xeb0] ss:$24 sps:$4 sm:$0xff]  }
 0x5c1   :  { %10746 = vmatpush1.bf16.msra.mxu1 %v14885_v43  ;;  %9419 = vmatpush1.bf16.msra.mxu0 %v14888_v30  ;;  %v14935_v43 = vld [vmem:[#allocation7 + $0xee4] ss:$24 sps:$4 sm:$0xff]  }
 0x5c2   :  { %10747 = vmatprep.subr.bf16.mxu1 %v14893_v26  ;;  %9420 = vmatprep.subr.bf16.mxu0 %v14896_v61  ;;  %v15010_v30 = vld [vmem:[#allocation10 + $0x504] ss:$16 sps:$4 sm:$0xff]   ;;  %v15008_v61 = vld [vmem:[#allocation10 + $0x500] ss:$16 sps:$4 sm:$0xff]  }
 0x5c3   :  { %v14933_v26 = vld [vmem:[#allocation7 + $0xee0] ss:$24 sps:$4 sm:$0xff]  }
 0x5c5   :  { %10748 = vmatpush1.bf16.msra.mxu1 %v14891_v41  ;;  %9421 = vmatpush1.bf16.msra.mxu0 %v14894_v27  ;;  %v14938_v41 = vld [vmem:[#allocation7 + $0xf14] ss:$24 sps:$4 sm:$0xff]  }
 0x5c6   :  { %10749 = vmatprep.subr.bf16.mxu1 %v14899_v31  ;;  %9422 = vmatprep.subr.bf16.mxu0 %v14902_v32  ;;  %v15013_v27 = vld [vmem:[#allocation10 + $0x524] ss:$16 sps:$4 sm:$0xff]   ;;  %v15011_v32 = vld [vmem:[#allocation10 + $0x520] ss:$16 sps:$4 sm:$0xff]  }
 0x5c7   :  { %v14941_v31 = vld [vmem:[#allocation7 + $0xf44] ss:$24 sps:$4 sm:$0xff]  }
 0x5c9   :  { %10750 = vmatpush1.bf16.msra.mxu1 %v14897_v15  ;;  %9423 = vmatpush1.bf16.msra.mxu0 %v14900_v40  ;;  %v15016_v15 = vld [vmem:[#allocation10 + $0x544] ss:$16 sps:$4 sm:$0xff]  }
 0x5ca   :  { %10751 = vmatprep.subr.bf16.mxu1 %v14905_v33  ;;  %9424 = vmatprep.subr.bf16.mxu0 %v14908_v34  ;;  %v14939_v40 = vld [vmem:[#allocation7 + $0xf40] ss:$24 sps:$4 sm:$0xff]  }
 0x5cb   :  { %v15014_v33 = vld [vmem:[#allocation10 + $0x540] ss:$16 sps:$4 sm:$0xff]   ;;  %v15019_v34 = vld [vmem:[#allocation10 + $0x564] ss:$16 sps:$4 sm:$0xff]  }
 0x5cd   :  { %10752 = vmatpush1.bf16.msra.mxu1 %v14903_v35  ;;  %9425 = vmatpush1.bf16.msra.mxu0 %v14906_v37  ;;  %v14942_v35 = vld [vmem:[#allocation7 + $0xf70] ss:$24 sps:$4 sm:$0xff]   ;;  %v14947_v37 = vld [vmem:[#allocation7 + $0xfa4] ss:$24 sps:$4 sm:$0xff]  }
 0x5ce   :  { %9426 = vmatprep.subr.bf16.mxu0 %v14911_v46  ;;  %10762 = vmatprep.subr.bf16.mxu1 %v14986_v47  ;;  %v15022_v46 = vld [vmem:[#allocation10 + $0x584] ss:$16 sps:$4 sm:$0xff]  }
 0x5cf   :  { %v14950_v47 = vld [vmem:[#allocation7 + $0xfd4] ss:$24 sps:$4 sm:$0xff]  }
 0x5d0   :  { %10754 = vmatmul.mubr.bf16.vlgmr.msra.gmra.mrb[16].mxu1 %v15839_v50 }
 0x5d1   :  { %9427 = vmatpush1.bf16.msra.mxu0 %v14909_v1  ;;  %10763 = vmatpush1.bf16.msra.mxu1 %v14984_v49  ;;  %v15025_v1 = vld [vmem:[#allocation10 + $0x5a4] ss:$16 sps:$4 sm:$0xff]  }
 0x5d2   :  { %9428 = vmatprep.subr.bf16.mxu0 %v14914_v53  ;;  %10764 = vmatprep.subr.bf16.mxu1 %v14989_v51  ;;  %v14948_v49 = vld [vmem:[#allocation7 + $0xfd0] ss:$24 sps:$4 sm:$0xff]   ;;  %v14953_v53 = vld [vmem:[#allocation7 + $0x1004] ss:$24 sps:$4 sm:$0xff]  }
 0x5d3   :  { %v15023_v51 = vld [vmem:[#allocation10 + $0x5a0] ss:$16 sps:$4 sm:$0xff]  }
 0x5d5   :  { %9429 = vmatpush1.bf16.msra.mxu0 %v14912_v54  ;;  %10765 = vmatpush1.bf16.msra.mxu1 %v14987_v56  ;;  %v14951_v54 = vld [vmem:[#allocation7 + $0x1000] ss:$24 sps:$4 sm:$0xff]   ;;  %v14956_v56 = vld [vmem:[#allocation7 + $0x1034] ss:$24 sps:$4 sm:$0xff]  }
 0x5d6   :  { %9430 = vmatprep.subr.bf16.mxu0 %v14917_v60  ;;  %10766 = vmatprep.subr.bf16.mxu1 %v14992_v63  ;;  %v14954_v60 = vld [vmem:[#allocation7 + $0x1030] ss:$24 sps:$4 sm:$0xff]   ;;  %v14959_v63 = vld [vmem:[#allocation7 + $0x1064] ss:$24 sps:$4 sm:$0xff]  }
 0x5d9   :  { %9431 = vmatpush1.bf16.msra.mxu0 %v14915_v21  ;;  %10767 = vmatpush1.bf16.msra.mxu1 %v14990_v57  ;;  %v14957_v21 = vld [vmem:[#allocation7 + $0x1060] ss:$24 sps:$4 sm:$0xff]   ;;  %v14962_v57 = vld [vmem:[#allocation7 + $0x1094] ss:$24 sps:$4 sm:$0xff]  }
 0x5da   :  { %9432 = vmatprep.subr.bf16.mxu0 %v14920_v44  ;;  %10768 = vmatprep.subr.bf16.mxu1 %v14995_v2  ;;  %v14960_v44 = vld [vmem:[#allocation7 + $0x1090] ss:$24 sps:$4 sm:$0xff]   ;;  %v14965_v2 = vld [vmem:[#allocation7 + $0x10c4] ss:$24 sps:$4 sm:$0xff]  }
 0x5dd   :  { %9433 = vmatpush1.bf16.msra.mxu0 %v14918_v4  ;;  %10769 = vmatpush1.bf16.msra.mxu1 %v14993_v6  ;;  %v14963_v4 = vld [vmem:[#allocation7 + $0x10c0] ss:$24 sps:$4 sm:$0xff]   ;;  %v14968_v6 = vld [vmem:[#allocation7 + $0x10f4] ss:$24 sps:$4 sm:$0xff]  }
 0x5de   :  { %9434 = vmatprep.subr.bf16.mxu0 %v14923_v7  ;;  %10770 = vmatprep.subr.bf16.mxu1 %v14998_v8  ;;  %v14966_v7 = vld [vmem:[#allocation7 + $0x10f0] ss:$24 sps:$4 sm:$0xff]   ;;  %v14971_v8 = vld [vmem:[#allocation7 + $0x1124] ss:$24 sps:$4 sm:$0xff]  }
 0x5e1   :  { %9435 = vmatpush1.bf16.msra.mxu0 %v14921_v14  ;;  %10771 = vmatpush1.bf16.msra.mxu1 %v14996_v62  ;;  %v14969_v14 = vld [vmem:[#allocation7 + $0x1120] ss:$24 sps:$4 sm:$0xff]   ;;  %v14974_v62 = vld [vmem:[#allocation7 + $0x1154] ss:$24 sps:$4 sm:$0xff]  }
 0x5e2   :  { %9436 = vmatprep.subr.bf16.mxu0 %v14926_v48  ;;  %10772 = vmatprep.subr.bf16.mxu1 %v15001_v16  ;;  %v14972_v48 = vld [vmem:[#allocation7 + $0x1150] ss:$24 sps:$4 sm:$0xff]   ;;  %v14977_v16 = vld [vmem:[#allocation7 + $0x1184] ss:$24 sps:$4 sm:$0xff]  }
 0x5e5   :  { %9437 = vmatpush1.bf16.msra.mxu0 %v14924_v17  ;;  %10773 = vmatpush1.bf16.msra.mxu1 %v14999_v18  ;;  %v14975_v17 = vld [vmem:[#allocation7 + $0x1180] ss:$24 sps:$4 sm:$0xff]   ;;  %v14980_v18 = vld [vmem:[#allocation7 + $0x11b4] ss:$24 sps:$4 sm:$0xff]  }
 0x5e6   :  { %9438 = vmatprep.subr.bf16.mxu0 %v14929_v5  ;;  %10774 = vmatprep.subr.bf16.mxu1 %v15004_v20  ;;  %v14978_v5 = vld [vmem:[#allocation7 + $0x11b0] ss:$24 sps:$4 sm:$0xff]   ;;  %v14983_v20 = vld [vmem:[#allocation7 + $0x11e4] ss:$24 sps:$4 sm:$0xff]  }
 0x5e9   :  { %9439 = vmatpush1.bf16.msra.mxu0 %v14927_v52  ;;  %10775 = vmatpush1.bf16.msra.mxu1 %v15002_v22  ;;  %v14981_v52 = vld [vmem:[#allocation7 + $0x11e0] ss:$24 sps:$4 sm:$0xff]  }
 0x5ea   :  { %9440 = vmatprep.subr.bf16.mxu0 %v14932_v12  ;;  %10776 = vmatprep.subr.bf16.mxu1 %v15007_v58  ;;  %v15028_v22 = vld [vmem:[#allocation10 + $0x5c4] ss:$16 sps:$4 sm:$0xff]   ;;  %v15026_v12 = vld [vmem:[#allocation10 + $0x5c0] ss:$16 sps:$4 sm:$0xff]  }
 0x5eb   :  { %v15031_v58 = vld [vmem:[#allocation10 + $0x5e4] ss:$16 sps:$4 sm:$0xff]  }
 0x5ed   :  { %9441 = vmatpush1.bf16.msra.mxu0 %v14930_v23  ;;  %10777 = vmatpush1.bf16.msra.mxu1 %v15005_v24  ;;  %v15029_v23 = vld [vmem:[#allocation10 + $0x5e0] ss:$16 sps:$4 sm:$0xff]   ;;  %v15034_v24 = vld [vmem:[#allocation10 + $0xc] ss:$16 sps:$4 sm:$0xff]  }
 0x5ee   :  { %9442 = vmatprep.subr.bf16.mxu0 %v14935_v43  ;;  %10778 = vmatprep.subr.bf16.mxu1 %v15010_v30  ;;  %v5865_v43 = vrot.slane %v15815_v0, %v833_v55  ;;  %v5869_v30 = vrot.slane %v15815_v0, %v837_v13  ;;  %v15040_v13 = vld [vmem:[#allocation10 + $0x4c] ss:$16 sps:$4 sm:$0xff]   ;;  %v15038_v55 = vld [vmem:[#allocation10 + $0x48] ss:$16 sps:$4 sm:$0xff]  }
 0x5ef   :  { %v15043_v0 = vld [vmem:[#allocation10 + $0x6c] ss:$16 sps:$4 sm:$0xff]  }
 0x5f1   :  { %9443 = vmatpush1.bf16.msra.mxu0 %v14933_v26  ;;  %10779 = vmatpush1.bf16.msra.mxu1 %v15008_v61 }
 0x5f2   :  { %9453 = vmatprep.subr.bf16.mxu0 %v14938_v41  ;;  %10780 = vmatprep.subr.bf16.mxu1 %v15013_v27 }
 0x5f4   :  { %9445 = vmatmul.mubr.bf16.vlgmr.msra.gmra.mrb[16].mxu0 %v15795_v42  ;;  %v14945_v42 = vld [vmem:[#allocation7 + $0xfa0] ss:$24 sps:$4 sm:$0xff]  }
 0x5f5   :  { %9454 = vmatpush1.bf16.msra.mxu0 %v14936_v10  ;;  %9485 = vmatprep.mubr.bf16.mxu0 %v15797_v39  ;;  %v15020_v39 = vld [vmem:[#allocation10 + $0x580] ss:$16 sps:$4 sm:$0xff]  }
 0x5f6   :  { %9455 = vmatprep.subr.bf16.mxu0 %v14941_v31  ;;  %10781 = vmatpush1.bf16.msra.mxu1 %v15011_v32 }
 0x5f7   :  { %10782 = vmatprep.subr.bf16.mxu1 %v15016_v15 }
 0x5f9   :  { %9456 = vmatpush1.bf16.msra.mxu0 %v14939_v40  ;;  %v15032_v40 = vld [vmem:[#allocation10 + $0x8] ss:$16 sps:$4 sm:$0xff]  }
 0x5fa   :  { %9457 = vmatprep.subr.bf16.mxu0 %v14944_v19  ;;  %10783 = vmatpush1.bf16.msra.mxu1 %v15014_v33  ;;  %v15037_v33 = vld [vmem:[#allocation10 + $0x2c] ss:$16 sps:$4 sm:$0xff]  }
 0x5fb   :  { %10784 = vmatprep.subr.bf16.mxu1 %v15019_v34  ;;  %v15041_v34 = vld [vmem:[#allocation10 + $0x68] ss:$16 sps:$4 sm:$0xff]  }
 0x5fd   :  { %9458 = vmatpush1.bf16.msra.mxu0 %v14942_v35  ;;  %v15046_v35 = vld [vmem:[#allocation10 + $0x8c] ss:$16 sps:$4 sm:$0xff]  }
 0x5fe   :  { %9459 = vmatprep.subr.bf16.mxu0 %v14947_v37  ;;  %10785 = vmatpush1.bf16.msra.mxu1 %v15017_v38  ;;  %v15044_v37 = vld [vmem:[#allocation10 + $0x88] ss:$16 sps:$4 sm:$0xff]   ;;  %v15049_v38 = vld [vmem:[#allocation10 + $0xac] ss:$16 sps:$4 sm:$0xff]  }
 0x5ff   :  { %10786 = vmatprep.subr.bf16.mxu1 %v15022_v46  ;;  %v15047_v46 = vld [vmem:[#allocation10 + $0xa8] ss:$16 sps:$4 sm:$0xff]  }
 0x601   :  { %9460 = vmatpush1.bf16.msra.mxu0 %v14945_v42  ;;  %v15052_v42 = vld [vmem:[#allocation10 + $0xcc] ss:$16 sps:$4 sm:$0xff]  }
 0x602   :  { %9461 = vmatprep.subr.bf16.mxu0 %v14950_v47  ;;  %10787 = vmatpush1.bf16.msra.mxu1 %v15020_v39  ;;  %v15055_v47 = vld [vmem:[#allocation10 + $0xec] ss:$16 sps:$4 sm:$0xff]   ;;  %v15053_v39 = vld [vmem:[#allocation10 + $0xe8] ss:$16 sps:$4 sm:$0xff]  }
 0x603   :  { %10788 = vmatprep.subr.bf16.mxu1 %v15025_v1  ;;  %v15058_v1 = vld [vmem:[#allocation10 + $0x10c] ss:$16 sps:$4 sm:$0xff]  }
 0x605   :  { %9462 = vmatpush1.bf16.msra.mxu0 %v14948_v49  ;;  %v15056_v49 = vld [vmem:[#allocation10 + $0x108] ss:$16 sps:$4 sm:$0xff]  }
 0x606   :  { %9463 = vmatprep.subr.bf16.mxu0 %v14953_v53  ;;  %10789 = vmatpush1.bf16.msra.mxu1 %v15023_v51  ;;  %v15061_v53 = vld [vmem:[#allocation10 + $0x12c] ss:$16 sps:$4 sm:$0xff]   ;;  %v15059_v51 = vld [vmem:[#allocation10 + $0x128] ss:$16 sps:$4 sm:$0xff]  }
 0x607   :  { %10790 = vmatprep.subr.bf16.mxu1 %v15028_v22  ;;  %v15088_v22 = vld [vmem:[#allocation10 + $0x24c] ss:$16 sps:$4 sm:$0xff]  }
 0x609   :  { %9464 = vmatpush1.bf16.msra.mxu0 %v14951_v54  ;;  %v15064_v54 = vld [vmem:[#allocation10 + $0x14c] ss:$16 sps:$4 sm:$0xff]  }
 0x60a   :  { %9465 = vmatprep.subr.bf16.mxu0 %v14956_v56  ;;  %10791 = vmatpush1.bf16.msra.mxu1 %v15026_v12  ;;  %v15062_v56 = vld [vmem:[#allocation10 + $0x148] ss:$16 sps:$4 sm:$0xff]  }
 0x60b   :  { %10792 = vmatprep.subr.bf16.mxu1 %v15031_v58  ;;  %v15181_v12 = vld [vmem:[#allocation13 + $0x10] sm:$0xff]   ;;  %v15182_v58 = vld [vmem:[#allocation13 + $0x58] sm:$0xff]  }
 0x60d   :  { %9466 = vmatpush1.bf16.msra.mxu0 %v14954_v60  ;;  %v15067_v60 = vld [vmem:[#allocation10 + $0x16c] ss:$16 sps:$4 sm:$0xff]  }
 0x60e   :  { %9467 = vmatprep.subr.bf16.mxu0 %v14959_v63  ;;  %10793 = vmatpush1.bf16.msra.mxu1 %v15029_v23  ;;  %v15065_v63 = vld [vmem:[#allocation10 + $0x168] ss:$16 sps:$4 sm:$0xff]  }
 0x60f   :  { %10803 = vmatprep.subr.bf16.mxu1 %v15034_v24  ;;  %v15086_v23 = vld [vmem:[#allocation10 + $0x248] ss:$16 sps:$4 sm:$0xff]   ;;  %v15091_v24 = vld [vmem:[#allocation10 + $0x26c] ss:$16 sps:$4 sm:$0xff]  }
 0x611   :  { %9468 = vmatpush1.bf16.msra.mxu0 %v14957_v21  ;;  %v15070_v21 = vld [vmem:[#allocation10 + $0x18c] ss:$16 sps:$4 sm:$0xff]  }
 0x612   :  { %9469 = vmatprep.subr.bf16.mxu0 %v14962_v57  ;;  %v15068_v57 = vld [vmem:[#allocation10 + $0x188] ss:$16 sps:$4 sm:$0xff]  }
 0x615   :  { %9470 = vmatpush1.bf16.msra.mxu0 %v14960_v44  ;;  %v15073_v44 = vld [vmem:[#allocation10 + $0x1ac] ss:$16 sps:$4 sm:$0xff]  }
 0x616   :  { %9471 = vmatprep.subr.bf16.mxu0 %v14965_v2  ;;  %v15071_v2 = vld [vmem:[#allocation10 + $0x1a8] ss:$16 sps:$4 sm:$0xff]  }
 0x619   :  { %9472 = vmatpush1.bf16.msra.mxu0 %v14963_v4  ;;  %v15076_v4 = vld [vmem:[#allocation10 + $0x1cc] ss:$16 sps:$4 sm:$0xff]  }
 0x61a   :  { %9473 = vmatprep.subr.bf16.mxu0 %v14968_v6  ;;  %v15074_v6 = vld [vmem:[#allocation10 + $0x1c8] ss:$16 sps:$4 sm:$0xff]  }
 0x61d   :  { %9474 = vmatpush1.bf16.msra.mxu0 %v14966_v7  ;;  %v15079_v7 = vld [vmem:[#allocation10 + $0x1ec] ss:$16 sps:$4 sm:$0xff]  }
 0x61e   :  { %9475 = vmatprep.subr.bf16.mxu0 %v14971_v8  ;;  %v15077_v8 = vld [vmem:[#allocation10 + $0x1e8] ss:$16 sps:$4 sm:$0xff]  }
 0x621   :  { %9476 = vmatpush1.bf16.msra.mxu0 %v14969_v14  ;;  %v15082_v14 = vld [vmem:[#allocation10 + $0x20c] ss:$16 sps:$4 sm:$0xff]  }
 0x622   :  { %9477 = vmatprep.subr.bf16.mxu0 %v14974_v62  ;;  %v15176_v62 = vld [vmem:[#allocation13 + $0x40] sm:$0xff]  }
 0x625   :  { %9478 = vmatpush1.bf16.msra.mxu0 %v14972_v48  ;;  %v15080_v48 = vld [vmem:[#allocation10 + $0x208] ss:$16 sps:$4 sm:$0xff]  }
 0x626   :  { %9479 = vmatprep.subr.bf16.mxu0 %v14977_v16  ;;  %v15177_v16 = vld [vmem:[#allocation13] sm:$0xff]  }
 0x629   :  { %9480 = vmatpush1.bf16.msra.mxu0 %v14975_v17  ;;  %v15085_v17 = vld [vmem:[#allocation10 + $0x22c] ss:$16 sps:$4 sm:$0xff]  }
 0x62a   :  { %9481 = vmatprep.subr.bf16.mxu0 %v14980_v18  ;;  %v15178_v18 = vld [vmem:[#allocation13 + $0x48] sm:$0xff]  }
 0x62d   :  { %9482 = vmatpush1.bf16.msra.mxu0 %v14978_v5  ;;  %v15179_v5 = vld [vmem:[#allocation13 + $0x8] sm:$0xff]  }
 0x62e   :  { %9483 = vmatprep.subr.bf16.mxu0 %v14983_v20  ;;  %v15180_v20 = vld [vmem:[#allocation13 + $0x50] sm:$0xff]  }
 0x631   :  { %9484 = vmatpush1.bf16.msra.mxu0 %v14981_v52  ;;  %v15083_v52 = vld [vmem:[#allocation10 + $0x228] ss:$16 sps:$4 sm:$0xff]  }
 0x632   :  { %12777 = vmatprep.subr.bf16.mxu0 %v15176_v62  ;;  %v15145_v62 = vld [vmem:[#allocation10 + $0x4ac] ss:$16 sps:$4 sm:$0xff]  }
 0x634   :  { %9486 = vmatmul.mubr.bf16.vlgmr.msra.gmra.mrb[16].mxu0 %v15804_v11 }
 0x635   :  { %12778 = vmatpush3.bf16.msra.mxu0 %v15177_v16  ;;  %v15151_v16 = vld [vmem:[#allocation10 + $0x4ec] ss:$16 sps:$4 sm:$0xff]  }
 0x636   :  { %12779 = vmatprep.subr.bf16.mxu0 %v15178_v18  ;;  %v15154_v18 = vld [vmem:[#allocation10 + $0x50c] ss:$16 sps:$4 sm:$0xff]  }
 0x639   :  { %12780 = vmatpush3.bf16.msra.mxu0 %v15179_v5  ;;  %v15152_v5 = vld [vmem:[#allocation10 + $0x508] ss:$16 sps:$4 sm:$0xff]  }
 0x63a   :  { %12781 = vmatprep.subr.bf16.mxu0 %v15180_v20  ;;  %v15157_v20 = vld [vmem:[#allocation10 + $0x52c] ss:$16 sps:$4 sm:$0xff]  }
 0x63d   :  { %12782 = vmatpush3.bf16.msra.mxu0 %v15181_v12  ;;  %v15158_v12 = vld [vmem:[#allocation10 + $0x548] ss:$16 sps:$4 sm:$0xff]  }
 0x63e   :  { %12783 = vmatprep.subr.bf16.mxu0 %v15182_v58  ;;  %v15163_v58 = vld [vmem:[#allocation10 + $0x56c] ss:$16 sps:$4 sm:$0xff]  }
 0x707   :  { %v9487_v26 = vpop.f32.mrb[16].mxu0 }
 0x708   :  { %v12837_v11 = vadd.f32 %v9487_v26, %v5865_v43  ;;  %v9489_v61 = vpop.f32.mrb[17].mxu0  ;;  %v15184_v43 = vld [vmem:[#allocation13 + $0x60] sm:$0xff]  }
 0x709   :  { %v12838_v41 = vadd.f32 %v9489_v61, %v5869_v30  ;;  %v9491_v27 = vpop.f32.mrb[18].mxu0  ;;  %v15089_v30 = vld [vmem:[#allocation10 + $0x268] ss:$16 sps:$4 sm:$0xff]  }
 0x70a   :  { %v9498_v10 = vmax.f32 %v12837_v11, 0.0  ;;  %v9492_v31 = vpop.f32.mrb[19].mxu0  ;;  %v15185_v26 = vld [vmem:[#allocation13 + $0x20] sm:$0xff]   ;;  %v15186_v11 = vld [vmem:[#allocation13 + $0x68] sm:$0xff]  }
 0x70b   :  { %v9499_v32 = vmax.f32 %v12838_v41, 0.0  ;;  %v15092_v61 = vld [vmem:[#allocation10 + $0x288] ss:$16 sps:$4 sm:$0xff]   ;;  %v15097_v41 = vld [vmem:[#allocation10 + $0x2ac] ss:$16 sps:$4 sm:$0xff]  }
 0x70c   :  { %v15853_v19 = vpack.c.bf16 %v9498_v10, %v9498_v10  ;;  %v15187_v27 = vld [vmem:[#allocation13 + $0x28] sm:$0xff]   ;;  %v15095_v10 = vld [vmem:[#allocation10 + $0x2a8] ss:$16 sps:$4 sm:$0xff]  }
 0x70d   :  { %v15851_v15 = vpack.c.bf16 %v9499_v32, %v9499_v32  ;;  %v15100_v31 = vld [vmem:[#allocation10 + $0x2cc] ss:$16 sps:$4 sm:$0xff]   ;;  %v15188_v32 = vld [vmem:[#allocation13 + $0x70] sm:$0xff]  }
 0x70f   :  { %10794 = vmatprep.mubr.bf16.mxu1 %v15851_v15 }
 0x710   :  { %10795 = vmatmul.mubr.bf16.vlgmr.msra.gmra.mrb[16].mxu1 %v15853_v19 }
 0x711   :  { %10804 = vmatpush1.bf16.msra.mxu1 %v15032_v40  ;;  %10835 = vmatprep.mubr.bf16.mxu1 %v15825_v59  ;;  %v15050_v59 = vld [vmem:[#allocation10 + $0xc8] ss:$16 sps:$4 sm:$0xff]  }
 0x712   :  { %10805 = vmatprep.subr.bf16.mxu1 %v15037_v33  ;;  %v15098_v40 = vld [vmem:[#allocation10 + $0x2c8] ss:$16 sps:$4 sm:$0xff]  }
 0x713   :  { %v15189_v33 = vld [vmem:[#allocation13 + $0x30] sm:$0xff]  }
 0x715   :  { %10806 = vmatpush1.bf16.msra.mxu1 %v15035_v36  ;;  %v15103_v36 = vld [vmem:[#allocation10 + $0x2ec] ss:$16 sps:$4 sm:$0xff]  }
 0x716   :  { %10807 = vmatprep.subr.bf16.mxu1 %v15040_v13  ;;  %v15190_v13 = vld [vmem:[#allocation13 + $0x78] sm:$0xff]  }
 0x719   :  { %10808 = vmatpush1.bf16.msra.mxu1 %v15038_v55  ;;  %v15101_v55 = vld [vmem:[#allocation10 + $0x2e8] ss:$16 sps:$4 sm:$0xff]  }
 0x71a   :  { %10809 = vmatprep.subr.bf16.mxu1 %v15043_v0  ;;  %v15191_v0 = vld [vmem:[#allocation13 + $0x38] sm:$0xff]  }
 0x71d   :  { %10810 = vmatpush1.bf16.msra.mxu1 %v15041_v34  ;;  %v15106_v34 = vld [vmem:[#allocation10 + $0x30c] ss:$16 sps:$4 sm:$0xff]  }
 0x71e   :  { %10811 = vmatprep.subr.bf16.mxu1 %v15046_v35  ;;  %v15104_v35 = vld [vmem:[#allocation10 + $0x308] ss:$16 sps:$4 sm:$0xff]  }
 0x721   :  { %10812 = vmatpush1.bf16.msra.mxu1 %v15044_v37  ;;  %v15109_v37 = vld [vmem:[#allocation10 + $0x32c] ss:$16 sps:$4 sm:$0xff]  }
 0x722   :  { %10813 = vmatprep.subr.bf16.mxu1 %v15049_v38  ;;  %v15107_v38 = vld [vmem:[#allocation10 + $0x328] ss:$16 sps:$4 sm:$0xff]  }
 0x725   :  { %10814 = vmatpush1.bf16.msra.mxu1 %v15047_v46  ;;  %v15112_v46 = vld [vmem:[#allocation10 + $0x34c] ss:$16 sps:$4 sm:$0xff]  }
 0x726   :  { %10815 = vmatprep.subr.bf16.mxu1 %v15052_v42  ;;  %v15110_v42 = vld [vmem:[#allocation10 + $0x348] ss:$16 sps:$4 sm:$0xff]  }
 0x729   :  { %10816 = vmatpush1.bf16.msra.mxu1 %v15050_v59  ;;  %v15115_v59 = vld [vmem:[#allocation10 + $0x36c] ss:$16 sps:$4 sm:$0xff]  }
 0x72a   :  { %10817 = vmatprep.subr.bf16.mxu1 %v15055_v47  ;;  %v15113_v47 = vld [vmem:[#allocation10 + $0x368] ss:$16 sps:$4 sm:$0xff]  }
 0x72d   :  { %10818 = vmatpush1.bf16.msra.mxu1 %v15053_v39  ;;  %v15118_v39 = vld [vmem:[#allocation10 + $0x38c] ss:$16 sps:$4 sm:$0xff]  }
 0x72e   :  { %10819 = vmatprep.subr.bf16.mxu1 %v15058_v1  ;;  %v15116_v1 = vld [vmem:[#allocation10 + $0x388] ss:$16 sps:$4 sm:$0xff]  }
 0x731   :  { %10820 = vmatpush1.bf16.msra.mxu1 %v15056_v49  ;;  %v15121_v49 = vld [vmem:[#allocation10 + $0x3ac] ss:$16 sps:$4 sm:$0xff]  }
 0x732   :  { %10821 = vmatprep.subr.bf16.mxu1 %v15061_v53  ;;  %v15119_v53 = vld [vmem:[#allocation10 + $0x3a8] ss:$16 sps:$4 sm:$0xff]  }
 0x735   :  { %10822 = vmatpush1.bf16.msra.mxu1 %v15059_v51  ;;  %v15124_v51 = vld [vmem:[#allocation10 + $0x3cc] ss:$16 sps:$4 sm:$0xff]  }
 0x736   :  { %10823 = vmatprep.subr.bf16.mxu1 %v15064_v54  ;;  %v15122_v54 = vld [vmem:[#allocation10 + $0x3c8] ss:$16 sps:$4 sm:$0xff]  }
 0x739   :  { %10824 = vmatpush1.bf16.msra.mxu1 %v15062_v56  ;;  %v15127_v56 = vld [vmem:[#allocation10 + $0x3ec] ss:$16 sps:$4 sm:$0xff]  }
 0x73a   :  { %10825 = vmatprep.subr.bf16.mxu1 %v15067_v60  ;;  %v15125_v60 = vld [vmem:[#allocation10 + $0x3e8] ss:$16 sps:$4 sm:$0xff]  }
 0x73d   :  { %10826 = vmatpush1.bf16.msra.mxu1 %v15065_v63  ;;  %v15130_v63 = vld [vmem:[#allocation10 + $0x40c] ss:$16 sps:$4 sm:$0xff]  }
 0x73e   :  { %10827 = vmatprep.subr.bf16.mxu1 %v15070_v21  ;;  %v15128_v21 = vld [vmem:[#allocation10 + $0x408] ss:$16 sps:$4 sm:$0xff]  }
 0x741   :  { %10828 = vmatpush1.bf16.msra.mxu1 %v15068_v57  ;;  %v15133_v57 = vld [vmem:[#allocation10 + $0x42c] ss:$16 sps:$4 sm:$0xff]  }
 0x742   :  { %10829 = vmatprep.subr.bf16.mxu1 %v15073_v44  ;;  %v15131_v44 = vld [vmem:[#allocation10 + $0x428] ss:$16 sps:$4 sm:$0xff]  }
 0x745   :  { %10830 = vmatpush1.bf16.msra.mxu1 %v15071_v2  ;;  %v15136_v2 = vld [vmem:[#allocation10 + $0x44c] ss:$16 sps:$4 sm:$0xff]  }
 0x746   :  { %10831 = vmatprep.subr.bf16.mxu1 %v15076_v4  ;;  %v15134_v4 = vld [vmem:[#allocation10 + $0x448] ss:$16 sps:$4 sm:$0xff]  }
 0x749   :  { %10832 = vmatpush1.bf16.msra.mxu1 %v15074_v6  ;;  %v15139_v6 = vld [vmem:[#allocation10 + $0x46c] ss:$16 sps:$4 sm:$0xff]  }
 0x74a   :  { %10833 = vmatprep.subr.bf16.mxu1 %v15079_v7  ;;  %v15137_v7 = vld [vmem:[#allocation10 + $0x468] ss:$16 sps:$4 sm:$0xff]  }
 0x74d   :  { %10834 = vmatpush1.bf16.msra.mxu1 %v15077_v8  ;;  %v15142_v8 = vld [vmem:[#allocation10 + $0x48c] ss:$16 sps:$4 sm:$0xff]  }
 0x74e   :  { %10844 = vmatprep.subr.bf16.mxu1 %v15082_v14  ;;  %v15140_v14 = vld [vmem:[#allocation10 + $0x488] ss:$16 sps:$4 sm:$0xff]  }
 0x750   :  { %10836 = vmatmul.mubr.bf16.vlgmr.msra.gmra.mrb[20].mxu1 %v15827_v28  ;;  %v15183_v28 = vld [vmem:[#allocation13 + $0x18] sm:$0xff]  }
 0x751   :  { %10845 = vmatpush1.bf16.msra.mxu1 %v15080_v48  ;;  %10876 = vmatprep.mubr.bf16.mxu1 %v15830_v29  ;;  %v15094_v29 = vld [vmem:[#allocation10 + $0x28c] ss:$16 sps:$4 sm:$0xff]  }
 0x752   :  { %10846 = vmatprep.subr.bf16.mxu1 %v15085_v17  ;;  %12784 = vmatpush3.bf16.msra.mxu0 %v15183_v28  ;;  %v15148_v48 = vld [vmem:[#allocation10 + $0x4cc] ss:$16 sps:$4 sm:$0xff]   ;;  %v15149_v17 = vld [vmem:[#allocation10 + $0x4e8] ss:$16 sps:$4 sm:$0xff]  }
 0x753   :  { %12785 = vmatprep.subr.bf16.mxu0 %v15184_v43  ;;  %v15164_v28 = vld [vmem:[#allocation10 + $0x588] ss:$16 sps:$4 sm:$0xff]   ;;  %v15169_v43 = vld [vmem:[#allocation10 + $0x5ac] ss:$16 sps:$4 sm:$0xff]  }
 0x755   :  { %10847 = vmatpush1.bf16.msra.mxu1 %v15083_v52  ;;  %v15155_v52 = vld [vmem:[#allocation10 + $0x528] ss:$16 sps:$4 sm:$0xff]  }
 0x756   :  { %10848 = vmatprep.subr.bf16.mxu1 %v15088_v22  ;;  %12786 = vmatpush3.bf16.msra.mxu0 %v15185_v26  ;;  %v15160_v22 = vld [vmem:[#allocation10 + $0x54c] ss:$16 sps:$4 sm:$0xff]   ;;  %v15170_v26 = vld [vmem:[#allocation10 + $0x5c8] ss:$16 sps:$4 sm:$0xff]  }
 0x757   :  { %12787 = vmatprep.subr.bf16.mxu0 %v15186_v11  ;;  %v15175_v11 = vld [vmem:[#allocation10 + $0x5ec] ss:$16 sps:$4 sm:$0xff]  }
 0x759   :  { %10849 = vmatpush1.bf16.msra.mxu1 %v15086_v23  ;;  %v15161_v23 = vld [vmem:[#allocation10 + $0x568] ss:$16 sps:$4 sm:$0xff]  }
 0x75a   :  { %10850 = vmatprep.subr.bf16.mxu1 %v15091_v24  ;;  %12788 = vmatpush3.bf16.msra.mxu0 %v15187_v27  ;;  %v15166_v24 = vld [vmem:[#allocation10 + $0x58c] ss:$16 sps:$4 sm:$0xff]   ;;  %v15193_v27 = vld [vmem:[#allocation13 + $0x80] sm:$0xff]  }
 0x75b   :  { %12789 = vmatprep.subr.bf16.mxu0 %v15188_v32  ;;  %v15196_v32 = vld [vmem:[#allocation13 + $0xd0] sm:$0xff]  }
 0x75d   :  { %10851 = vmatpush1.bf16.msra.mxu1 %v15089_v30  ;;  %v15167_v30 = vld [vmem:[#allocation10 + $0x5a8] ss:$16 sps:$4 sm:$0xff]  }
 0x75e   :  { %10852 = vmatprep.subr.bf16.mxu1 %v15094_v29  ;;  %12790 = vmatpush3.bf16.msra.mxu0 %v15189_v33  ;;  %v15172_v29 = vld [vmem:[#allocation10 + $0x5cc] ss:$16 sps:$4 sm:$0xff]  }
 0x75f   :  { %12791 = vmatprep.subr.bf16.mxu0 %v15190_v13  ;;  %v15198_v33 = vld [vmem:[#allocation13 + $0xd8] sm:$0xff]   ;;  %v15200_v13 = vld [vmem:[#allocation13 + $0xe0] sm:$0xff]  }
 0x761   :  { %10853 = vmatpush1.bf16.msra.mxu1 %v15092_v61  ;;  %v15173_v61 = vld [vmem:[#allocation10 + $0x5e8] ss:$16 sps:$4 sm:$0xff]  }
 0x762   :  { %10854 = vmatprep.subr.bf16.mxu1 %v15097_v41  ;;  %12792 = vmatpush3.bf16.msra.mxu0 %v15191_v0  ;;  %v15192_v41 = vld [vmem:[#allocation13 + $0xc0] sm:$0xff]  }
 0x763   :  { %v15201_v0 = vld [vmem:[#allocation13 + $0xa0] sm:$0xff]  }
 0x765   :  { %10855 = vmatpush1.bf16.msra.mxu1 %v15095_v10  ;;  %v15194_v10 = vld [vmem:[#allocation13 + $0xc8] sm:$0xff]  }
 0x766   :  { %10856 = vmatprep.subr.bf16.mxu1 %v15100_v31  ;;  %v15195_v31 = vld [vmem:[#allocation13 + $0x88] sm:$0xff]  }
 0x769   :  { %10857 = vmatpush1.bf16.msra.mxu1 %v15098_v40  ;;  %v15197_v40 = vld [vmem:[#allocation13 + $0x90] sm:$0xff]  }
 0x76a   :  { %10858 = vmatprep.subr.bf16.mxu1 %v15103_v36  ;;  %v15199_v36 = vld [vmem:[#allocation13 + $0x98] sm:$0xff]  }
 0x76d   :  { %10859 = vmatpush1.bf16.msra.mxu1 %v15101_v55  ;;  %v9698_v55 = vld [vmem:[#allocation11] sm:$0xf] }
 0x76e   :  { %10860 = vmatprep.subr.bf16.mxu1 %v15106_v34  ;;  %v15202_v34 = vld [vmem:[#allocation13 + $0xe8] sm:$0xff]  }
 0x771   :  { %10861 = vmatpush1.bf16.msra.mxu1 %v15104_v35  ;;  %v9703_v35 = vrot.slane %v9698_v55, %v15707_v3  ;;  %v15205_v3 = vld [vmem:[#allocation13 + $0xb0] sm:$0xff]  }
 0x772   :  { %10862 = vmatprep.subr.bf16.mxu1 %v15109_v37  ;;  %v15203_v37 = vld [vmem:[#allocation13 + $0xa8] sm:$0xff]  }
 0x775   :  { %10863 = vmatpush1.bf16.msra.mxu1 %v15107_v38 }
 0x776   :  { %10864 = vmatprep.subr.bf16.mxu1 %v15112_v46 }
 0x779   :  { %10865 = vmatpush1.bf16.msra.mxu1 %v15110_v42 }
 0x77a   :  { %10866 = vmatprep.subr.bf16.mxu1 %v15115_v59 }
 0x77d   :  { %10867 = vmatpush1.bf16.msra.mxu1 %v15113_v47 }
 0x77e   :  { %10868 = vmatprep.subr.bf16.mxu1 %v15118_v39 }
 0x781   :  { %10869 = vmatpush1.bf16.msra.mxu1 %v15116_v1 }
 0x782   :  { %10870 = vmatprep.subr.bf16.mxu1 %v15121_v49 }
 0x785   :  { %10871 = vmatpush1.bf16.msra.mxu1 %v15119_v53 }
 0x786   :  { %10872 = vmatprep.subr.bf16.mxu1 %v15124_v51 }
 0x789   :  { %10873 = vmatpush1.bf16.msra.mxu1 %v15122_v54  ;;  %v15204_v54 = vld [vmem:[#allocation13 + $0xf0] sm:$0xff]  }
 0x78a   :  { %10874 = vmatprep.subr.bf16.mxu1 %v15127_v56  ;;  %v15207_v56 = vld [vmem:[#allocation13 + $0xb8] sm:$0xff]  }
 0x78d   :  { %10875 = vmatpush1.bf16.msra.mxu1 %v15125_v60  ;;  %v9711_v60 = vrot.slane %v9698_v55, %v15727_v25  ;;  %v12744_v25 = vld [vmem:[#allocation14] ss:$0 sm:$0xff] }
 0x78e   :  { %10885 = vmatprep.subr.bf16.mxu1 %v15130_v63  ;;  %v9715_v63 = vrot.slane %v9698_v55, %v15710_v9 }
 0x790   :  { %10877 = vmatmul.mubr.bf16.vlgmr.msra.gmra.mrb[20].mxu1 %v15839_v50  ;;  %v15143_v50 = vld [vmem:[#allocation10 + $0x4a8] ss:$16 sps:$4 sm:$0xff]  }
 0x791   :  { %10886 = vmatpush1.bf16.msra.mxu1 %v15128_v21  ;;  %10917 = vmatprep.mubr.bf16.mxu1 %v15851_v15  ;;  %v15146_v15 = vld [vmem:[#allocation10 + $0x4c8] ss:$16 sps:$4 sm:$0xff]  }
 0x792   :  { %10887 = vmatprep.subr.bf16.mxu1 %v15133_v57 }
 0x795   :  { %10888 = vmatpush1.bf16.msra.mxu1 %v15131_v44 }
 0x796   :  { %10889 = vmatprep.subr.bf16.mxu1 %v15136_v2 }
 0x799   :  { %10890 = vmatpush1.bf16.msra.mxu1 %v15134_v4 }
 0x79a   :  { %10891 = vmatprep.subr.bf16.mxu1 %v15139_v6 }
 0x79d   :  { %10892 = vmatpush1.bf16.msra.mxu1 %v15137_v7 }
 0x79e   :  { %10893 = vmatprep.subr.bf16.mxu1 %v15142_v8 }
 0x7a1   :  { %10894 = vmatpush1.bf16.msra.mxu1 %v15140_v14 }
 0x7a2   :  { %10895 = vmatprep.subr.bf16.mxu1 %v15145_v62 }
 0x7a5   :  { %10896 = vmatpush1.bf16.msra.mxu1 %v15143_v50 }
 0x7a6   :  { %10897 = vmatprep.subr.bf16.mxu1 %v15148_v48 }
 0x7a9   :  { %10898 = vmatpush1.bf16.msra.mxu1 %v15146_v15 }
 0x7aa   :  { %10899 = vmatprep.subr.bf16.mxu1 %v15151_v16 }
 0x7ad   :  { %10900 = vmatpush1.bf16.msra.mxu1 %v15149_v17 }
 0x7ae   :  { %10901 = vmatprep.subr.bf16.mxu1 %v15154_v18 }
 0x7b1   :  { %10902 = vmatpush1.bf16.msra.mxu1 %v15152_v5 }
 0x7b2   :  { %10903 = vmatprep.subr.bf16.mxu1 %v15157_v20 }
 0x7b5   :  { %10904 = vmatpush1.bf16.msra.mxu1 %v15155_v52 }
 0x7b6   :  { %10905 = vmatprep.subr.bf16.mxu1 %v15160_v22 }
 0x7b9   :  { %10906 = vmatpush1.bf16.msra.mxu1 %v15158_v12 }
 0x7ba   :  { %10907 = vmatprep.subr.bf16.mxu1 %v15163_v58 }
 0x7bd   :  { %10908 = vmatpush1.bf16.msra.mxu1 %v15161_v23 }
 0x7be   :  { %10909 = vmatprep.subr.bf16.mxu1 %v15166_v24 }
 0x7c1   :  { %10910 = vmatpush1.bf16.msra.mxu1 %v15164_v28 }
 0x7c2   :  { %10911 = vmatprep.subr.bf16.mxu1 %v15169_v43 }
 0x7c5   :  { %10912 = vmatpush1.bf16.msra.mxu1 %v15167_v30 }
 0x7c6   :  { %10913 = vmatprep.subr.bf16.mxu1 %v15172_v29 }
 0x7c9   :  { %10914 = vmatpush1.bf16.msra.mxu1 %v15170_v26 }
 0x7ca   :  { %10915 = vmatprep.subr.bf16.mxu1 %v15175_v11 }
 0x7cd   :  { %10916 = vmatpush1.bf16.msra.mxu1 %v15173_v61 }
 0x7ce   :  { %12799 = vmatprep.subr.bf16.mxu1 %v15192_v41 }
 0x7d0   :  { %10918 = vmatmul.mubr.bf16.vlgmr.msra.gmra.mrb[20].mxu1 %v15853_v19  ;;  %v9707_v19 = vrot.slane %v9698_v55, %v15686_v45  ;;  %v15206_v45 = vld [vmem:[#allocation13 + $0xf8] sm:$0xff]  }
 0x7d1   :  { %12800 = vmatpush3.bf16.msra.mxu1 %v15193_v27 }
 0x7d2   :  { %12801 = vmatprep.subr.bf16.mxu1 %v15194_v10 }
 0x7d5   :  { %12802 = vmatpush3.bf16.msra.mxu1 %v15195_v31 }
 0x7d6   :  { %12803 = vmatprep.subr.bf16.mxu1 %v15196_v32 }
 0x7d9   :  { %12804 = vmatpush3.bf16.msra.mxu1 %v15197_v40 }
 0x7da   :  { %12805 = vmatprep.subr.bf16.mxu1 %v15198_v33 }
 0x7dd   :  { %12806 = vmatpush3.bf16.msra.mxu1 %v15199_v36 }
 0x7de   :  { %12807 = vmatprep.subr.bf16.mxu1 %v15200_v13 }
 0x7e1   :  { %12808 = vmatpush3.bf16.msra.mxu1 %v15201_v0 }
 0x7e2   :  { %12809 = vmatprep.subr.bf16.mxu1 %v15202_v34 }
 0x7e3   :  { %v10796_v38 = vpop.f32.mrb[16].mxu1 }
 0x7e4   :  { %v12839_v46 = vadd.f32 %v10796_v38, %v9703_v35  ;;  %v10798_v42 = vpop.f32.mrb[17].mxu1 }
 0x7e5   :  { %v12840_v59 = vadd.f32 %v10798_v42, %v9707_v19  ;;  %v10800_v47 = vpop.f32.mrb[18].mxu1  ;;  %12810 = vmatpush3.bf16.msra.mxu1 %v15203_v37 }
 0x7e6   :  { %v10926_v39 = vmax.f32 %v12839_v46, 0.0  ;;  %v10801_v1 = vpop.f32.mrb[19].mxu1  ;;  %12811 = vmatprep.subr.bf16.mxu1 %v15204_v54 }
 0x7e7   :  { %v10927_v49 = vmax.f32 %v12840_v59, 0.0 }
 0x7e8   :  { %v10930_v51 = vpack.c.bf16 %v10926_v39, %v10926_v39 }
 0x7e9   :  { %v10931_v53 = vpack.c.bf16 %v10927_v49, %v10927_v49  ;;  %12812 = vmatpush3.bf16.msra.mxu1 %v15205_v3 }
 0x7ea   :  { %12813 = vmatprep.subr.bf16.mxu1 %v15206_v45 }
 0x7eb   :  { %11229 = vmatprep.mubr.bf16.mxu0 %v10931_v53 }
 0x7ec   :  { %11230 = vmatmul.mubr.bf16.vlgmr.msra.gmra.mrb[20].mxu0 %v10930_v51 }
 0x7ed   :  { %12814 = vmatpush3.bf16.msra.mxu1 %v15207_v56 }
 0x8a3   :  { %v10919_v21 = vpop.f32.mrb[20].mxu1 }
 0x8a4   :  { %v12841_v57 = vadd.f32 %v10919_v21, %v9711_v60  ;;  %v10921_v44 = vpop.f32.mrb[21].mxu1 }
 0x8a5   :  { %v12842_v2 = vadd.f32 %v10921_v44, %v9715_v63  ;;  %v10923_v4 = vpop.f32.mrb[22].mxu1 }
 0x8a6   :  { %v10928_v6 = vmax.f32 %v12841_v57, 0.0  ;;  %v10924_v7 = vpop.f32.mrb[23].mxu1 }
 0x8a7   :  { %v10929_v8 = vmax.f32 %v12842_v2, 0.0 }
 0x8a8   :  { %v10932_v62 = vpack.c.bf16 %v10928_v6, %v10928_v6 }
 0x8a9   :  { %v10933_v14 = vpack.c.bf16 %v10929_v8, %v10929_v8 }
 0x8ab   :  { %11269 = vmatprep.mubr.bf16.mxu1 %v10933_v14 }
 0x8ac   :  { %11270 = vmatmul.mubr.bf16.vlgmr.msra.gmra.mrb[24].mxu1 %v10932_v62 }
 0x8bf   :  { %v12793_v50 = vpop.f32.mrb[20].mxu0 }
 0x8c0   :  { %v12794_v48 = vpop.f32.mrb[21].mxu0 }
 0x8c1   :  { %v12795_v15 = vadd.f32 %v12794_v48, %v12793_v50  ;;  %v12796_v16 = vpop.f32.mrb[22].mxu0 }
 0x8c2   :  { %v12797_v17 = vpop.f32.mrb[23].mxu0 }
 0x8c3   :  { %v11232_v5 = vadd.f32 %v12795_v15, %v12744_v25 }
 0x97f   :  { %v12815_v18 = vpop.f32.mrb[24].mxu1 }
 0x980   :  { %v12816_v9 = vpop.f32.mrb[25].mxu1 }
 0x981   :  { %v12817_v20 = vadd.f32 %v12816_v9, %v12815_v18  ;;  %v12818_v52 = vpop.f32.mrb[26].mxu1 }
 0x982   :  { %v12819_v22 = vpop.f32.mrb[27].mxu1 }
 0x983   :  { %v11272_v12 = vadd.f32 %v12817_v20, %v11232_v5 }
 0x985   :  { %11277 = vst [vmem:[#allocation16] sm:$0xff] %v11272_v12 }
 0x986   :  { %15398 = shalt.err (!%p15395_p12)
}
 0x987   :  { %s15399_s26 = scalar_lea.hbm %s15888_s9, 128 }
 0x988   :  { %p15400_p13 = scmp.ne.s32.totalorder %s15888_s9, %s15399_s26  ;;  %p15403_p0 = scmp.lt.u32.totalorder %s15399_s26, %s15888_s9 }
 0x98a   :  { %p15405_p1 = pnand %p15403_p0, %p15400_p13 }
 0x98c   :  { %15408 = shalt.err (!%p15405_p1)
}
 0x98d   :  { %11287 = dma.vmem_to_hbm [thread:$0]  %s11285_s5, 128, %s15888_s9, [#allocation4]  }
 0x98e   :  { %15419 = dma.done.wait [#allocation4], 128  }
 0x98f   :  { %15420 = vsyncadd [#allocation4], 4294967168 }
 0x990   :  { %11291 = vsyncpa [#allocation3], 1 }
 0x991   :  { %11292 = vsyncpa [#allocation6], 1 }
 0x992   :  { %11293 = vsyncpa [#allocation9], 1 }
 0x993   :  { %11294 = vsyncpa [#allocation12], 1 }
 0x994   :  { %11295 = vsyncpa [#allocation15], 1 }
 0x995   :  { %11296 = vsyncpa [#allocation4], 1 }

</bundles_post_ra>
